<compile_context>
chip_gen: v5e
topology: v5e:2x2
jax: 0.10.0
libtpu: 0.0.40
codegen_flags: <defaults>
</compile_context>

<pallas_src>
import functools

import jax
import jax.numpy as jnp
from jax.experimental import pallas as pl
from jax.experimental.pallas import tpu as pltpu


# --------------------------------------------------------------------------- #
# Kernel
# --------------------------------------------------------------------------- #
def _basic_block_kernel(x_ref, w1_ref, s1_ref, w2_ref, s2_ref, *rest,
                        ksize, pad, shortcut, downsample):
    # x_ref : (TB, L, Cin)      bf16 channels-last activations
    # w1_ref: (K*Cin, Cout)     bf16 BN-folded conv1 weights (im2col row order k*Cin+c)
    # s1_ref: (1, Cout)         f32 folded bias/BN shift
    # w2_ref: (K*Cout, Cout)    bf16 BN-folded conv2 weights
    # s2_ref: (1, Cout)         f32 shift
    # [wd_ref: (Cin, Cout) bf16, sd_ref: (1, Cout) f32]  -- only if shortcut & downsample
    # o_ref : (TB, L, Cout)
    # xpad_ref / hpad_ref: (TB, L + 2*pad, C) f32 zero-padded staging scratch
    if shortcut and downsample:
        wd_ref, sd_ref, o_ref, xpad_ref, hpad_ref = rest
    else:
        o_ref, xpad_ref, hpad_ref = rest
        wd_ref = sd_ref = None

    tb, seq_len, cin = x_ref.shape
    cout = o_ref.shape[-1]
    rows = tb * seq_len

    # Zero only the halo rows; the centre rows are fully overwritten every step.
    if pad > 0:
        xpad_ref[:, :pad, :] = jnp.zeros((tb, pad, cin), xpad_ref.dtype)
        xpad_ref[:, pad + seq_len:, :] = jnp.zeros((tb, pad, cin), xpad_ref.dtype)
        hpad_ref[:, :pad, :] = jnp.zeros((tb, pad, cout), hpad_ref.dtype)
        hpad_ref[:, pad + seq_len:, :] = jnp.zeros((tb, pad, cout), hpad_ref.dtype)

    def im2col_matmul(pad_ref, w_ref):
        # 'same' width-K conv over the whole batch tile as ONE MXU GEMM:
        #   (TB*L, K*C) bf16 @ (K*C, Cout) bf16 -> f32.
        cols = jnp.concatenate(
            [pad_ref[:, k:k + seq_len, :] for k in range(ksize)], axis=-1)
        cols = cols.reshape(rows, -1).astype(jnp.bfloat16)
        return jnp.dot(cols, w_ref[...], preferred_element_type=jnp.float32)

    x_blk = x_ref[...]                                        # (TB, L, Cin) bf16
    xpad_ref[:, pad:pad + seq_len, :] = x_blk.astype(xpad_ref.dtype)

    # conv1 ∘ bn1 ∘ relu  (f32 epilogue)
    h = jnp.maximum(im2col_matmul(xpad_ref, w1_ref) + s1_ref[...], 0.0)
    hpad_ref[:, pad:pad + seq_len, :] = h.reshape(tb, seq_len, cout)

    # conv2 ∘ bn2
    y = im2col_matmul(hpad_ref, w2_ref) + s2_ref[...]         # (TB*L, Cout) f32

    if shortcut:
        if downsample:
            y = y + jnp.dot(x_blk.reshape(rows, cin), wd_ref[...],
                            preferred_element_type=jnp.float32) + sd_ref[...]
        else:
            y = y + x_blk.reshape(rows, cin).astype(jnp.float32)

    o_ref[...] = jnp.maximum(y, 0.0).reshape(tb, seq_len, cout).astype(o_ref.dtype)


# --------------------------------------------------------------------------- #
# Wrapper helpers
# --------------------------------------------------------------------------- #
def _fold_bn_into_conv(w, b, gamma, beta, mean, var, eps):
    """Fold inference-mode BN (and conv bias) into the conv weights.

    w: (Cout, Cin, K) PyTorch layout. Returns ((K*Cin, Cout) bf16, (1, Cout) f32).
    Row order of the folded weight matches the kernel's tap concatenation (k*Cin + c).
    """
    scale = gamma / jnp.sqrt(var + eps)                       # (Cout,)
    w_eff = w * scale[:, None, None]                          # (Cout, Cin, K)
    w_kio = jnp.transpose(w_eff, (2, 1, 0))                   # (K, Cin, Cout)
    k, cin, cout = w_kio.shape
    w_im2col = w_kio.reshape(k * cin, cout).astype(jnp.bfloat16)
    bias = b if b is not None else jnp.zeros_like(mean)
    shift = ((bias - mean) * scale + beta).astype(jnp.float32)
    return w_im2col, shift.reshape(1, -1)


def _vmem_capacity_bytes():
    try:
        return int(pltpu.get_tpu_info().vmem_capacity_bytes)
    except Exception:
        return 64 * 1024 * 1024       # conservative fallback (v7x per-core VMEM)


def _choose_tb(n, l, cin, cout, ksize, out_itemsize, has_ds, vmem_cap,
               target_rows=512):
    """Samples per grid step: fill the MXU (TB*L >= ~target_rows), stay inside a
    generation-aware VMEM budget, keep blocks full, and prefer an even grid length
    so v7x's two TensorCores shard evenly."""
    budget = int(0.40 * vmem_cap)
    # Resident bf16 weights, double-buffered by the pipeline.
    w_bytes = 2 * 2 * (ksize * cin * cout + ksize * cout * cout
                       + (cin * cout if has_ds else 0))
    budget = max(budget - w_bytes, 0)
    # Per-sample: double-buffered bf16 input / out tiles, f32 staging scratch,
    # bf16 im2col column blocks and f32 GEMM intermediates.
    per_sample = (2 * l * cin * 2
                  + 2 * l * cout * out_itemsize
                  + (l + 2) * (cin + cout) * 4
                  + l * ksize * (cin + cout) * 2
                  + 3 * l * cout * 4)
    tb_cap = max(1, budget // max(per_sample, 1))
    tb = max(1, min(n, tb_cap, (target_rows + l - 1) // l))

    def ok(t, want_even_grid):
        return n % t == 0 and (not want_even_grid or (n // t) % 2 == 0)

    for want_even_grid in (True, False):
        t = tb
        while t > 1 and not ok(t, want_even_grid):
            t -= 1
        if ok(t, want_even_grid):
            return int(t)
    return 1


# --------------------------------------------------------------------------- #
# Wrapper
# --------------------------------------------------------------------------- #
def basic_conv_block(x, params, *, shortcut, eps=1e-5, tb=None):
    """x: (N, Cin, L) PyTorch NCL layout.  Returns (N, Cout, L).  Inference-mode BN."""
    N, Cin, L = x.shape
    Cout, _, K = params["w1"].shape
    pad = (K - 1) // 2
    downsample = Cin != Cout
    has_ds = shortcut and downsample

    w1, s1 = _fold_bn_into_conv(params["w1"], params["b1"], params["g1"],
                                params["be1"], params["m1"], params["v1"], eps)
    w2, s2 = _fold_bn_into_conv(params["w2"], params["b2"], params["g2"],
                                params["be2"], params["m2"], params["v2"], eps)
    operands = [w1, s1, w2, s2]
    w_specs = [
        pl.BlockSpec((K * Cin, Cout), lambda b: (0, 0)),      # conv1 (BN-folded, im2col)
        pl.BlockSpec((1, Cout), lambda b: (0, 0)),            # shift1
        pl.BlockSpec((K * Cout, Cout), lambda b: (0, 0)),     # conv2 (BN-folded, im2col)
        pl.BlockSpec((1, Cout), lambda b: (0, 0)),            # shift2
    ]
    if has_ds:                                                # only DMA when actually used
        wd, sd = _fold_bn_into_conv(params["wd"], None, params["gd"],
                                    params["bed"], params["md"], params["vd"], eps)
        operands += [wd, sd]
        w_specs += [pl.BlockSpec((Cin, Cout), lambda b: (0, 0)),   # 1x1 downsample
                    pl.BlockSpec((1, Cout), lambda b: (0, 0))]     # downsample shift

    # channels-last (C -> lanes), bf16 activations for the MXU.
    x_nlc = jnp.transpose(x, (0, 2, 1)).astype(jnp.bfloat16)

    vmem_cap = _vmem_capacity_bytes()
    if tb is None:
        tb = _choose_tb(N, L, Cin, Cout, K, x.dtype.itemsize, has_ds, vmem_cap)
    assert N % tb == 0, f"batch {N} must be divisible by sample tile {tb}"
    grid = (N // tb,)

    flops = 2 * N * L * K * (Cin + Cout) * Cout
    if has_ds:
        flops += 2 * N * L * Cin * Cout
    bytes_accessed = int(N * L * Cin * 2 + N * L * Cout * x.dtype.itemsize
                         + sum(int(op.size) * op.dtype.itemsize for op in operands))

    kernel = functools.partial(_basic_block_kernel, ksize=K, pad=pad,
                               shortcut=shortcut, downsample=downsample)

    out_nlc = pl.pallas_call(
        kernel,
        out_shape=jax.ShapeDtypeStruct((N, L, Cout), x.dtype),
        grid_spec=pltpu.PrefetchScalarGridSpec(
            num_scalar_prefetch=0,
            grid=grid,
            in_specs=[pl.BlockSpec((tb, L, Cin), lambda b: (b, 0, 0))] + w_specs,
            out_specs=pl.BlockSpec((tb, L, Cout), lambda b: (b, 0, 0)),
            scratch_shapes=[
                pltpu.VMEM((tb, L + 2 * pad, Cin), jnp.float32),   # zero-padded x staging
                pltpu.VMEM((tb, L + 2 * pad, Cout), jnp.float32),  # zero-padded h staging
            ],
        ),
        compiler_params=pltpu.CompilerParams(
            dimension_semantics=("parallel",),
            vmem_limit_bytes=min(int(0.75 * vmem_cap), 96 * 1024 * 1024),
        ),
        cost_estimate=pl.CostEstimate(flops=flops, transcendentals=0,
                                      bytes_accessed=bytes_accessed),
    )(x_nlc, *operands)

    return jnp.transpose(out_nlc, (0, 2, 1))                  # back to (N, Cout, L)


# --------------------------------------------------------------------------- #
# Pure-XLA reference (independent of the kernel's decomposition)
# --------------------------------------------------------------------------- #
def basic_conv_block_ref(x, p, *, shortcut, eps=1e-5):
    hp = jax.lax.Precision.HIGHEST

    def conv1d(inp, w, b, padding):
        dn = jax.lax.conv_dimension_numbers(inp.shape, w.shape, ("NCH", "OIH", "NCH"))
        out = jax.lax.conv_general_dilated(inp, w, (1,), [(padding, padding)],
                                           dimension_numbers=dn, precision=hp)
        return out if b is None else out + b[None, :, None]

    def bn(inp, g, be, m, v):
        inv = g / jnp.sqrt(v + eps)
        return (inp - m[None, :, None]) * inv[None, :, None] + be[None, :, None]

    out = jax.nn.relu(bn(conv1d(x, p["w1"], p["b1"], 1),
                         p["g1"], p["be1"], p["m1"], p["v1"]))
    out = bn(conv1d(out, p["w2"], p["b2"], 1), p["g2"], p["be2"], p["m2"], p["v2"])
    if shortcut:
        residual = x
        if p["w1"].shape[1] != p["w1"].shape[0]:              # Cin != Cout -> downsample
            residual = bn(conv1d(x, p["wd"], None, 0),
                          p["gd"], p["bed"], p["md"], p["vd"])
        out = out + residual
    return jax.nn.relu(out)


def _check(out, ref, shape):
    assert out.shape == shape, f"bad shape {out.shape} vs {shape}"
    max_err = float(jnp.max(jnp.abs(out.astype(jnp.float32) - ref)))
    scale = float(jnp.max(jnp.abs(ref))) + 1e-6
    # Kernel runs bf16 MXU GEMMs (f32 accumulation) vs a HIGHEST-precision f32
    # reference; tolerance is sized for that rounding gap.
    assert max_err <= 0.03 * scale + 0.15, f"mismatch: max_err={max_err} scale={scale}"


# --------------------------------------------------------------------------- #
# Demo / smoke test
# --------------------------------------------------------------------------- #
if __name__ == "__main__":
    eps = 1e-5

    def make_params(key, cin, cout, k):
        ks = jax.random.split(key, 17)
        return dict(
            # conv1 + bn1
            w1=0.1 * jax.random.normal(ks[0], (cout, cin, k), jnp.float32),
            b1=0.1 * jax.random.normal(ks[1], (cout,), jnp.float32),
            g1=1.0 + 0.1 * jax.random.normal(ks[2], (cout,), jnp.float32),
            be1=0.1 * jax.random.normal(ks[3], (cout,), jnp.float32),
            m1=0.1 * jax.random.normal(ks[4], (cout,), jnp.float32),
            v1=jax.random.uniform(ks[5], (cout,), jnp.float32, 0.5, 1.5),
            # conv2 + bn2
            w2=0.1 * jax.random.normal(ks[6], (cout, cout, k), jnp.float32),
            b2=0.1 * jax.random.normal(ks[7], (cout,), jnp.float32),
            g2=1.0 + 0.1 * jax.random.normal(ks[8], (cout,), jnp.float32),
            be2=0.1 * jax.random.normal(ks[9], (cout,), jnp.float32),
            m2=0.1 * jax.random.normal(ks[10], (cout,), jnp.float32),
            v2=jax.random.uniform(ks[11], (cout,), jnp.float32, 0.5, 1.5),
            # downsample 1x1 conv (bias=False) + bn
            wd=0.1 * jax.random.normal(ks[12], (cout, cin, 1), jnp.float32),
            gd=1.0 + 0.1 * jax.random.normal(ks[13], (cout,), jnp.float32),
            bed=0.1 * jax.random.normal(ks[14], (cout,), jnp.float32),
            md=0.1 * jax.random.normal(ks[15], (cout,), jnp.float32),
            vd=jax.random.uniform(ks[16], (cout,), jnp.float32, 0.5, 1.5),
        )

    key = jax.random.PRNGKey(0)
    k0, k1, k2, k3 = jax.random.split(key, 4)

    # Case 1: module defaults (Cin=128 -> Cout=256), shortcut with 1x1-downsample residual.
    N, Cin, Cout, L, K = 16, 128, 256, 16, 3
    x = jax.random.normal(k0, (N, Cin, L), jnp.float32)
    p = make_params(k1, Cin, Cout, K)
    out = jax.block_until_ready(basic_conv_block(x, p, shortcut=True, eps=eps))
    _check(out, basic_conv_block_ref(x, p, shortcut=True, eps=eps), (N, Cout, L))

    # Case 2: same shapes, shortcut disabled (plain conv-bn-relu x2).
    out = jax.block_until_ready(basic_conv_block(x, p, shortcut=False, eps=eps))
    _check(out, basic_conv_block_ref(x, p, shortcut=False, eps=eps), (N, Cout, L))

    # Case 3: Cin == Cout -> identity residual branch.
    N2, C2, L2 = 8, 128, 16
    x2 = jax.random.normal(k2, (N2, C2, L2), jnp.float32)
    p2 = make_params(k3, C2, C2, K)
    out = jax.block_until_ready(basic_conv_block(x2, p2, shortcut=True, eps=eps))
    _check(out, basic_conv_block_ref(x2, p2, shortcut=True, eps=eps), (N2, C2, L2))

    print("KERNEL_OK")
</pallas_src>

<mosaic_0001>
module attributes {stable_mosaic.version = 11 : i64} {
  func.func @_basic_block_kernel(%arg0: i32, %arg1: memref<8x16x128xbf16, #tpu.memory_space<vmem>>, %arg2: memref<384x256xbf16, #tpu.memory_space<vmem>>, %arg3: memref<1x256xf32, #tpu.memory_space<vmem>>, %arg4: memref<768x256xbf16, #tpu.memory_space<vmem>>, %arg5: memref<1x256xf32, #tpu.memory_space<vmem>>, %arg6: memref<128x256xbf16, #tpu.memory_space<vmem>>, %arg7: memref<1x256xf32, #tpu.memory_space<vmem>>, %arg8: memref<8x16x256xf32, #tpu.memory_space<vmem>>, %arg9: memref<8x18x128xf32, #tpu.memory_space<vmem>>, %arg10: memref<8x18x256xf32, #tpu.memory_space<vmem>>) attributes {dimension_semantics = [#tpu.dimension_semantics<parallel>], iteration_bounds = array<i64: 2>, scalar_prefetch = 0 : i64, scratch_operands = 2 : i64, tpu.core_type = #tpu.core_type<tc>, window_params = [{transform_indices = @transform_0, window_bounds = array<i64: 8, 16, 128>}, {pipeline_mode = #tpu.pipeline_mode<synchronous>, transform_indices = @transform_1, window_bounds = array<i64: 384, 256>}, {pipeline_mode = #tpu.pipeline_mode<synchronous>, transform_indices = @transform_2, window_bounds = array<i64: 1, 256>}, {pipeline_mode = #tpu.pipeline_mode<synchronous>, transform_indices = @transform_3, window_bounds = array<i64: 768, 256>}, {pipeline_mode = #tpu.pipeline_mode<synchronous>, transform_indices = @transform_4, window_bounds = array<i64: 1, 256>}, {pipeline_mode = #tpu.pipeline_mode<synchronous>, transform_indices = @transform_5, window_bounds = array<i64: 128, 256>}, {pipeline_mode = #tpu.pipeline_mode<synchronous>, transform_indices = @transform_6, window_bounds = array<i64: 1, 256>}, {transform_indices = @transform_7, window_bounds = array<i64: 8, 16, 256>}]} {
    %cst = arith.constant 0.000000e+00 : f32
    %0 = vector.broadcast %cst : f32 to vector<8x1x128xf32>
    %c0 = arith.constant 0 : index
    %c0_0 = arith.constant 0 : index
    %c0_1 = arith.constant 0 : index
    %1 = vector.load %arg9[%c0, %c0_0, %c0_1] : memref<8x18x128xf32, #tpu.memory_space<vmem>>, vector<8x1x128xf32>
    tpu.vector_store %arg9[%c0, %c0_0, %c0_1], %0 {strides = array<i32>} : memref<8x18x128xf32, #tpu.memory_space<vmem>>, vector<8x1x128xf32>,
    %cst_2 = arith.constant 0.000000e+00 : f32
    %2 = vector.broadcast %cst_2 : f32 to vector<8x1x128xf32>
    %c0_3 = arith.constant 0 : index
    %c17 = arith.constant 17 : index
    %c0_4 = arith.constant 0 : index
    %3 = vector.load %arg9[%c0_3, %c17, %c0_4] : memref<8x18x128xf32, #tpu.memory_space<vmem>>, vector<8x1x128xf32>
    tpu.vector_store %arg9[%c0_3, %c17, %c0_4], %2 {strides = array<i32>} : memref<8x18x128xf32, #tpu.memory_space<vmem>>, vector<8x1x128xf32>,
    %cst_5 = arith.constant 0.000000e+00 : f32
    %4 = vector.broadcast %cst_5 : f32 to vector<8x1x256xf32>
    %c0_6 = arith.constant 0 : index
    %c0_7 = arith.constant 0 : index
    %c0_8 = arith.constant 0 : index
    %5 = vector.load %arg10[%c0_6, %c0_7, %c0_8] : memref<8x18x256xf32, #tpu.memory_space<vmem>>, vector<8x1x256xf32>
    tpu.vector_store %arg10[%c0_6, %c0_7, %c0_8], %4 {strides = array<i32>} : memref<8x18x256xf32, #tpu.memory_space<vmem>>, vector<8x1x256xf32>,
    %cst_9 = arith.constant 0.000000e+00 : f32
    %6 = vector.broadcast %cst_9 : f32 to vector<8x1x256xf32>
    %c0_10 = arith.constant 0 : index
    %c17_11 = arith.constant 17 : index
    %c0_12 = arith.constant 0 : index
    %7 = vector.load %arg10[%c0_10, %c17_11, %c0_12] : memref<8x18x256xf32, #tpu.memory_space<vmem>>, vector<8x1x256xf32>
    tpu.vector_store %arg10[%c0_10, %c17_11, %c0_12], %6 {strides = array<i32>} : memref<8x18x256xf32, #tpu.memory_space<vmem>>, vector<8x1x256xf32>,
    %c0_13 = arith.constant 0 : index
    %c0_14 = arith.constant 0 : index
    %c0_15 = arith.constant 0 : index
    %8 = vector.load %arg1[%c0_13, %c0_14, %c0_15] : memref<8x16x128xbf16, #tpu.memory_space<vmem>>, vector<8x16x128xbf16>
    %9 = arith.extf %8 : vector<8x16x128xbf16> to vector<8x16x128xf32>
    %c0_16 = arith.constant 0 : index
    %c1 = arith.constant 1 : index
    %c0_17 = arith.constant 0 : index
    %10 = vector.load %arg9[%c0_16, %c1, %c0_17] : memref<8x18x128xf32, #tpu.memory_space<vmem>>, vector<8x16x128xf32>
    tpu.vector_store %arg9[%c0_16, %c1, %c0_17], %9 {strides = array<i32>} : memref<8x18x128xf32, #tpu.memory_space<vmem>>, vector<8x16x128xf32>,
    %c0_18 = arith.constant 0 : index
    %c0_19 = arith.constant 0 : index
    %c0_20 = arith.constant 0 : index
    %11 = vector.load %arg9[%c0_18, %c0_19, %c0_20] : memref<8x18x128xf32, #tpu.memory_space<vmem>>, vector<8x16x128xf32>
    %c0_21 = arith.constant 0 : index
    %c1_22 = arith.constant 1 : index
    %c0_23 = arith.constant 0 : index
    %12 = vector.load %arg9[%c0_21, %c1_22, %c0_23] : memref<8x18x128xf32, #tpu.memory_space<vmem>>, vector<8x16x128xf32>
    %c0_24 = arith.constant 0 : index
    %c2 = arith.constant 2 : index
    %c0_25 = arith.constant 0 : index
    %13 = vector.load %arg9[%c0_24, %c2, %c0_25] : memref<8x18x128xf32, #tpu.memory_space<vmem>>, vector<8x16x128xf32>
    %14 = tpu.concatenate %11, %12, %13 in 2 : vector<8x16x128xf32>, vector<8x16x128xf32>, vector<8x16x128xf32> -> vector<8x16x384xf32>
    %15 = vector.shape_cast %14 : vector<8x16x384xf32> to vector<128x384xf32>
    %16 = arith.truncf %15 : vector<128x384xf32> to vector<128x384xbf16>
    %c0_26 = arith.constant 0 : index
    %c0_27 = arith.constant 0 : index
    %17 = vector.load %arg2[%c0_26, %c0_27] : memref<384x256xbf16, #tpu.memory_space<vmem>>, vector<384x256xbf16>
    %cst_28 = arith.constant dense<0.000000e+00> : vector<128x256xf32>
    %18 = tpu.matmul %16, %17, %cst_28 {dimension_numbers = #tpu.dot_dimension_numbers<[1], [0], [0], [1], [0, 0, 1, 1], [], []>} : vector<128x384xbf16>, vector<384x256xbf16>, vector<128x256xf32> -> vector<128x256xf32>
    %c0_29 = arith.constant 0 : index
    %c0_30 = arith.constant 0 : index
    %19 = vector.load %arg3[%c0_29, %c0_30] : memref<1x256xf32, #tpu.memory_space<vmem>>, vector<1x256xf32>
    %20 = vector.broadcast %19 : vector<1x256xf32> to vector<128x256xf32>
    %21 = arith.addf %18, %20 : vector<128x256xf32>
    %cst_31 = arith.constant 0.000000e+00 : f32
    %22 = vector.broadcast %cst_31 : f32 to vector<128x256xf32>
    %23 = arith.maximumf %21, %22 : vector<128x256xf32>
    %24 = vector.shape_cast %23 : vector<128x256xf32> to vector<8x16x256xf32>
    %c0_32 = arith.constant 0 : index
    %c1_33 = arith.constant 1 : index
    %c0_34 = arith.constant 0 : index
    %25 = vector.load %arg10[%c0_32, %c1_33, %c0_34] : memref<8x18x256xf32, #tpu.memory_space<vmem>>, vector<8x16x256xf32>
    tpu.vector_store %arg10[%c0_32, %c1_33, %c0_34], %24 {strides = array<i32>} : memref<8x18x256xf32, #tpu.memory_space<vmem>>, vector<8x16x256xf32>,
    %c0_35 = arith.constant 0 : index
    %c0_36 = arith.constant 0 : index
    %c0_37 = arith.constant 0 : index
    %26 = vector.load %arg10[%c0_35, %c0_36, %c0_37] : memref<8x18x256xf32, #tpu.memory_space<vmem>>, vector<8x16x256xf32>
    %c0_38 = arith.constant 0 : index
    %c1_39 = arith.constant 1 : index
    %c0_40 = arith.constant 0 : index
    %27 = vector.load %arg10[%c0_38, %c1_39, %c0_40] : memref<8x18x256xf32, #tpu.memory_space<vmem>>, vector<8x16x256xf32>
    %c0_41 = arith.constant 0 : index
    %c2_42 = arith.constant 2 : index
    %c0_43 = arith.constant 0 : index
    %28 = vector.load %arg10[%c0_41, %c2_42, %c0_43] : memref<8x18x256xf32, #tpu.memory_space<vmem>>, vector<8x16x256xf32>
    %29 = tpu.concatenate %26, %27, %28 in 2 : vector<8x16x256xf32>, vector<8x16x256xf32>, vector<8x16x256xf32> -> vector<8x16x768xf32>
    %30 = vector.shape_cast %29 : vector<8x16x768xf32> to vector<128x768xf32>
    %31 = arith.truncf %30 : vector<128x768xf32> to vector<128x768xbf16>
    %c0_44 = arith.constant 0 : index
    %c0_45 = arith.constant 0 : index
    %32 = vector.load %arg4[%c0_44, %c0_45] : memref<768x256xbf16, #tpu.memory_space<vmem>>, vector<768x256xbf16>
    %cst_46 = arith.constant dense<0.000000e+00> : vector<128x256xf32>
    %33 = tpu.matmul %31, %32, %cst_46 {dimension_numbers = #tpu.dot_dimension_numbers<[1], [0], [0], [1], [0, 0, 1, 1], [], []>} : vector<128x768xbf16>, vector<768x256xbf16>, vector<128x256xf32> -> vector<128x256xf32>
    %c0_47 = arith.constant 0 : index
    %c0_48 = arith.constant 0 : index
    %34 = vector.load %arg5[%c0_47, %c0_48] : memref<1x256xf32, #tpu.memory_space<vmem>>, vector<1x256xf32>
    %35 = vector.broadcast %34 : vector<1x256xf32> to vector<128x256xf32>
    %36 = arith.addf %33, %35 : vector<128x256xf32>
    %37 = vector.shape_cast %8 : vector<8x16x128xbf16> to vector<128x128xbf16>
    %c0_49 = arith.constant 0 : index
    %c0_50 = arith.constant 0 : index
    %38 = vector.load %arg6[%c0_49, %c0_50] : memref<128x256xbf16, #tpu.memory_space<vmem>>, vector<128x256xbf16>
    %cst_51 = arith.constant dense<0.000000e+00> : vector<128x256xf32>
    %39 = tpu.matmul %37, %38, %cst_51 {dimension_numbers = #tpu.dot_dimension_numbers<[1], [0], [0], [1], [0, 0, 1, 1], [], []>} : vector<128x128xbf16>, vector<128x256xbf16>, vector<128x256xf32> -> vector<128x256xf32>
    %40 = arith.addf %36, %39 : vector<128x256xf32>
    %c0_52 = arith.constant 0 : index
    %c0_53 = arith.constant 0 : index
    %41 = vector.load %arg7[%c0_52, %c0_53] : memref<1x256xf32, #tpu.memory_space<vmem>>, vector<1x256xf32>
    %42 = vector.broadcast %41 : vector<1x256xf32> to vector<128x256xf32>
    %43 = arith.addf %40, %42 : vector<128x256xf32>
    %cst_54 = arith.constant 0.000000e+00 : f32
    %44 = vector.broadcast %cst_54 : f32 to vector<128x256xf32>
    %45 = arith.maximumf %43, %44 : vector<128x256xf32>
    %46 = vector.shape_cast %45 : vector<128x256xf32> to vector<8x16x256xf32>
    %c0_55 = arith.constant 0 : index
    %c0_56 = arith.constant 0 : index
    %c0_57 = arith.constant 0 : index
    %47 = vector.load %arg8[%c0_55, %c0_56, %c0_57] : memref<8x16x256xf32, #tpu.memory_space<vmem>>, vector<8x16x256xf32>
    tpu.vector_store %arg8[%c0_55, %c0_56, %c0_57], %46 {strides = array<i32>} : memref<8x16x256xf32, #tpu.memory_space<vmem>>, vector<8x16x256xf32>,
    return
  }
  func.func @transform_0(%arg0: i32) -> (i32, i32, i32) {
    %c0_i32 = arith.constant 0 : i32
    %c0_i32_0 = arith.constant 0 : i32
    %c0_i32_1 = arith.constant 0 : i32
    return %arg0, %c0_i32, %c0_i32_0 : i32, i32, i32
  }
  func.func @transform_1(%arg0: i32) -> (i32, i32) {
    %c0_i32 = arith.constant 0 : i32
    %c0_i32_0 = arith.constant 0 : i32
    %c0_i32_1 = arith.constant 0 : i32
    return %c0_i32, %c0_i32_0 : i32, i32
  }
  func.func @transform_2(%arg0: i32) -> (i32, i32) {
    %c0_i32 = arith.constant 0 : i32
    %c0_i32_0 = arith.constant 0 : i32
    %c0_i32_1 = arith.constant 0 : i32
    return %c0_i32, %c0_i32_0 : i32, i32
  }
  func.func @transform_3(%arg0: i32) -> (i32, i32) {
    %c0_i32 = arith.constant 0 : i32
    %c0_i32_0 = arith.constant 0 : i32
    %c0_i32_1 = arith.constant 0 : i32
    return %c0_i32, %c0_i32_0 : i32, i32
  }
  func.func @transform_4(%arg0: i32) -> (i32, i32) {
    %c0_i32 = arith.constant 0 : i32
    %c0_i32_0 = arith.constant 0 : i32
    %c0_i32_1 = arith.constant 0 : i32
    return %c0_i32, %c0_i32_0 : i32, i32
  }
  func.func @transform_5(%arg0: i32) -> (i32, i32) {
    %c0_i32 = arith.constant 0 : i32
    %c0_i32_0 = arith.constant 0 : i32
    %c0_i32_1 = arith.constant 0 : i32
    return %c0_i32, %c0_i32_0 : i32, i32
  }
  func.func @transform_6(%arg0: i32) -> (i32, i32) {
    %c0_i32 = arith.constant 0 : i32
    %c0_i32_0 = arith.constant 0 : i32
    %c0_i32_1 = arith.constant 0 : i32
    return %c0_i32, %c0_i32_0 : i32, i32
  }
  func.func @transform_7(%arg0: i32) -> (i32, i32, i32) {
    %c0_i32 = arith.constant 0 : i32
    %c0_i32_0 = arith.constant 0 : i32
    %c0_i32_1 = arith.constant 0 : i32
    return %arg0, %c0_i32, %c0_i32_0 : i32, i32, i32
  }
}

</mosaic_0001>

<bundles_post_ra>
// kernel: tpu_custom_call.1
= control target key start
LH: loop header
LB: loop body
LE: loop exit
PB: predicated region body
PF: predicated region fallthrough
CT: control target
= control target key end

     0   :  { %s5905_s0 = inlined_call_operand.hbm [shape: bf16[16,16,128], index: 0, kind: input, shape index: {}]   ;;  %s5906_s1 = inlined_call_operand.hbm [shape: bf16[384,256], index: 1, kind: input, shape index: {}]   ;;  %s5907_s2 = inlined_call_operand.hbm [shape: f32[1,256], index: 2, kind: input, shape index: {}]   ;;  %s5908_s3 = inlined_call_operand.hbm [shape: bf16[768,256], index: 3, kind: input, shape index: {}]   ;;  %s5909_s4 = inlined_call_operand.vmem [shape: f32[1,256], index: 4, kind: input, shape index: {}]   ;;  %s5910_s5 = inlined_call_operand.hbm [shape: bf16[128,256], index: 5, kind: input, shape index: {}]   ;;  %s5911_s6 = inlined_call_operand.vmem [shape: f32[1,256], index: 6, kind: input, shape index: {}]   ;;  %s5912_s7 = inlined_call_operand.hbm [shape: f32[16,16,256], index: 7, kind: output, shape index: {}]  }
   0x1   :  { %5932 = sst [smem:[#allocation37_spill]] %s5906_s1 }
   0x2   :  { %12 = vsyncpa [#allocation5], 0 }
   0x3   :  { %14 = vsyncpa [#allocation5 + $0x1], 0 }
   0x4   :  { %15 = vsyncpa [#allocation8], 0 }
   0x5   :  { %16 = vsyncpa [#allocation11], 0 }
   0x6   :  { %17 = vsyncpa [#allocation6], 0 }
   0x7   :  { %19 = vsyncpa [#allocation6 + $0x1], 0  ;;  %s4713_s24 = smov 0   ;;  %s4715_s25 = smov 0  }
   0x8   :  { %s4717_s26 = smov 0   ;;  %s4719_s27 = smov 0  }
   0x9 LB: > { %s4734_s28 = sadd.s32 4294967295, %s4660_s27   ;;  %s3474_s29 = sadd.s32 4294967294, %s4660_s27   ;;  %s4660_s27 = sphi %s4719_s27, %s5984_s27   ;;  %s4656_s26 = sphi %s4717_s26, %s5983_s26   ;;  %s4652_s25 = sphi %s4715_s25, %s5982_s25   ;;  %s4648_s24 = sphi %s4713_s24, %s5981_s24  }
   0xa   : > { %p45_p0 = scmp.ne.s32.totalorder %s4652_s25, %s4648_s24  ;;  %p46_p1 = scmp.eq.s32.totalorder %s4734_s28, 0 }
   0xb   : > { %p195_p2 = scmp.eq.s32.totalorder %s4734_s28, 1  ;;  %p201_p3 = scmp.eq.s32.totalorder %s3474_s29, 1 }
   0xc   : > { %p4743_p4 = por %p46_p1, %p45_p0  ;;  %p3475_p5 = scmp.ge.s32.totalorder %s4660_s27, 1 }
   0xd   : > { %p4748_p6 = por %p201_p3, %p45_p0  ;;  %p208_p7 = scmp.lt.s32.totalorder %s4660_s27, 3 }
   0xe   : > { %s5935_s1 = sld [smem:[#allocation37_spill]]  ;;  %s4662_s13 = smov [#allocation7]  }
   0xf   : > { %p4756_p8 = pnand %p3475_p5, %p208_p7  ;;  %s221_s14 = sshll.u32 %s4662_s13, 4  ;;  %s222_s14 = int_to_ptr.vmem [resolvable:$true] %s221_s14 }
  0x10   : > { %s245_s18 = sshll.u32 %s5908_s3, 4  ;;  %s4663_s19 = smov 128   ;;  %s246_s18 = int_to_ptr.hbm [resolvable:$true] %s245_s18 }
  0x11   : > { %p4362_p9 = pneg %p4756_p8  ;;  %s4664_s20 = smov 8  }
  0x12   : > { %s4665_s21 = smov [#allocation10]   ;;  %s234_s9 = sshll.u32 %s5907_s2, 4  ;;  %s235_s9 = int_to_ptr.hbm [resolvable:$true] %s234_s9 }
  0x13   : > { %p4764_p10 = pnand %p4362_p9, %p46_p1  ;;  %s247_s22 = sshll.u32 %s4665_s21, 4  ;;  %s248_s22 = int_to_ptr.vmem [resolvable:$true] %s247_s22 }
  0x14   : > { %s219_s11 = sshll.u32 %s5935_s1, 4  ;;  %s4667_s17 = smov [#allocation12]   ;;  %s220_s11 = int_to_ptr.hbm [resolvable:$true] %s219_s11 }
  0x15   : > { %4365 = dma.hbm_to_vmem [thread:$0]  (!%p4764_p10), %s220_s11, 6144, %s222_s14, [#allocation8], %s4663_s19, %s4663_s19, %s4664_s20  }
  0x16   : > { %4371 = dma.hbm_to_vmem [thread:$0]  (!%p4764_p10), %s246_s18, 12288, %s248_s22, [#allocation11], %s4663_s19, %s4663_s19, %s4664_s20  }
  0x17   : > { %s262_s11 = sshll.u32 %s5910_s5, 4  ;;  %s4666_s14 = smov [#allocation9]   ;;  %s263_s11 = int_to_ptr.hbm [resolvable:$true] %s262_s11 }
  0x18   : > { %s236_s16 = sshll.u32 %s4666_s14, 4  ;;  %s264_s21 = sshll.u32 %s4667_s17, 4  ;;  %s237_s16 = int_to_ptr.vmem [resolvable:$true] %s236_s16  ;;  %s265_s21 = int_to_ptr.vmem [resolvable:$true] %s264_s21 }
  0x19   : > { %4368 = dma.hbm_to_vmem [thread:$0]  (!%p4764_p10), %s235_s9, 32, %s237_s16, [#allocation8]  }
  0x1a   : > { %4374 = dma.hbm_to_vmem [thread:$0]  (!%p4764_p10), %s263_s11, 2048, %s265_s21, [#allocation11], %s4663_s19, %s4663_s19, %s4664_s20  }
  0x1b   : > { %s4787_s18 = sadd.s32 1, %s4660_s27   ;;  %s32_s22 = sadd.s32 1, %s4656_s26 }
  0x1c   : > { %s29_s23 = ssub.s32 %s4660_s27, %s4787_s18  ;;  %p39_p12 = scmp.ne.s32.totalorder %s4656_s26, %s4652_s25 }
  0x1d   : > { %p30_p13 = scmp.eq.s32.totalorder %s29_s23, 0  ;;  %p40_p0 = scmp.eq.s32.totalorder %s4660_s27, 0 }
  0x1e   : > { %p4797_p3 = por %p195_p2, %p39_p12  ;;  %p4387_p5 = scmp.lt.s32.totalorder %s4660_s27, 2 }
  0x1f   : > { %s4803_s9 = scalar_select %p30_p13, %s4656_s26, %s32_s22  }
  0x20   : > { %p41_p7 = por %p40_p0, %p39_p12  ;;  %s281_s10 = sand.u32 1, %s4656_s26  }
  0x21   : > { %s3481_s15 = sshll.u32 %s281_s10, 6  ;;  %s4171_s19 = sshll.u32 %s4660_s27, 6 }
  0x22   : > { %s291_s11 = scalar_lea.hbm %s5905_s0, %s4171_s19  ;;  %s285_s14 = scalar_lea.vmem [#allocation4], %s3481_s15 }
  0x23   : > { %s294_s16 = sshll.u32 %s285_s14, 4  ;;  %s292_s17 = sshll.u32 %s291_s11, 4  ;;  %s295_s16 = int_to_ptr.vmem [resolvable:$true] %s294_s16  ;;  %s293_s17 = int_to_ptr.hbm [resolvable:$true] %s292_s17 }
  0x24   : > { %p4810_p2 = pnand %p4387_p5, %p41_p7  ;;  %s282_s22 = scalar_lea.sflag [#allocation5], %s281_s10 }
  0x25   : > { %s4556_s23 = sshra.s32 %s293_s17, 4  ;;  %s4563_s20 = scalar_lea.hbm %s5905_s0, 128  ;;  %s4557_s23 = int_to_ptr.hbm [resolvable:$true] %s4556_s23 }
  0x26   : > { %s4558_s1 = scalar_lea.hbm %s4557_s23, 64  ;;  %p4560_p10 = pneg %p4810_p2 }
  0x27   : > { %p4559_p9 = scmp.ne.s32.totalorder %s4557_s23, %s4558_s1  ;;  %p4564_p0 = scmp.lt.s32.totalorder %s4557_s23, %s5905_s0 }
  0x28   : > { %p4565_p5 = scmp.lt.s32.totalorder %s4563_s20, %s4558_s1 }
  0x29   : > { %p4561_p12 = pnand %p4560_p10, %p4559_p9 }
  0x2a   : > { %p4566_p7 = por %p4565_p5, %p4564_p0 }
  0x2b   : > { %p4562_p13 = pneg %p4561_p12 }
  0x2d   : > { %p4567_p11 = pnand %p4566_p7, %p4562_p13 }
  0x2f   : > { %4570 = shalt.err (!%p4567_p11)
}
  0x30   : > { %s4668_s10 = smov 64   ;;  %s4669_s14 = smov 4  }
  0x31   : > { %4378 = dma.hbm_to_vmem [thread:$0]  (!%p4810_p2), %s293_s17, 1024, %s295_s16, %s282_s22, %s4668_s10, %s4668_s10, %s4669_s14  }
  0x32   : > { %306 = sbr.rel (%p4756_p8) target bundleno = 1017 (0x3f9), region = 48 }
  0x37   : > { %s4827_s19 = sand.u32 1, %s4652_s25  }
  0x38   : > { %s3486_s15 = sshll.u32 %s4827_s19, 6  ;;  %s309_s23 = scalar_lea.sflag [#allocation5], %s4827_s19 }
  0x39   : > { %s4831_s1 = scalar_lea.vmem [#allocation4], %s3486_s15 }
  0x3a   : > { %4631 = dma.done.wait (%p4743_p4), %s309_s23, 1024  }
  0x3b   : > { %4633 = vsyncadd (%p4743_p4), %s309_s23, 4294966272 }
  0x3c   : > { %4635 = dma.done.wait (%p46_p1), [#allocation8], 6176  }
  0x3d   : > { %4637 = vsyncadd (%p46_p1), [#allocation8], 4294961120 }
  0x3e   : > { %4639 = dma.done.wait (%p46_p1), [#allocation11], 14336  }
  0x3f   : > { %4641 = vsyncadd (%p46_p1), [#allocation11], 4294952960  ;;  %v4670_v0 = vmov 0.0   ;;  %v3550_v1 = vld [vmem:[#allocation7 + $0x70] sm:$0xf]  ;;  %v4852_v50 = vld [vmem:[%s4831_s1] sm:$0xff]  }
  0x40   : > { %366 = vst [vmem:[#allocation2] sm:$0x1] %v4670_v0  ;;  %v4195_v2 = vld [vmem:[#allocation7 + $0x74] sm:$0xf0]  ;;  %v3614_v3 = vld [vmem:[#allocation7 + $0xf0] sm:$0xf]  ;;  %v449_v53 = vunpack.c.l.bf16 %v4852_v50  ;;  %v450_v54 = vunpack.c.h.bf16 %v4852_v50 }
  0x41   : > { %367 = vst [vmem:[#allocation2 + $0x18] sm:$0x1] %v4670_v0  ;;  %v3551_v4 = vor.u32 %v4195_v2, %v3550_v1  ;;  %v4211_v5 = vld [vmem:[#allocation7 + $0xf4] sm:$0xf0]  ;;  %v3678_v6 = vld [vmem:[#allocation7 + $0x170] sm:$0xf] }
  0x42   : > { %368 = vst [vmem:[#allocation2 + $0x30] sm:$0x1] %v4670_v0  ;;  %v4227_v7 = vld [vmem:[#allocation7 + $0x174] sm:$0xf0]  ;;  %v3615_v8 = vor.u32 %v4211_v5, %v3614_v3  ;;  %v3542_v10 = vld [vmem:[#allocation7 + $0x60] sm:$0xf] }
  0x43   : > { %369 = vst [vmem:[#allocation2 + $0x48] sm:$0x1] %v4670_v0  ;;  %v3679_v9 = vor.u32 %v4227_v7, %v3678_v6  ;;  %v4193_v11 = vld [vmem:[#allocation7 + $0x64] sm:$0xf0]  ;;  %v3606_v12 = vld [vmem:[#allocation7 + $0xe0] sm:$0xf]  ;;  %847 = vmatpush.bf16.msra.mxu0 %v3551_v4 }
  0x44   : > { %370 = vst [vmem:[#allocation2 + $0x60] sm:$0x1] %v4670_v0  ;;  %v3543_v13 = vor.u32 %v4193_v11, %v3542_v10  ;;  %v4209_v14 = vld [vmem:[#allocation7 + $0xe4] sm:$0xf0]  ;;  %v3670_v15 = vld [vmem:[#allocation7 + $0x160] sm:$0xf]  ;;  %896 = vmatpush.bf16.msra.mxu1 %v3615_v8 }
  0x45   : > { %371 = vst [vmem:[#allocation2 + $0x78] sm:$0x1] %v4670_v0  ;;  %v4225_v16 = vld [vmem:[#allocation7 + $0x164] sm:$0xf0]  ;;  %945 = vmatpush.bf16.msra.mxu2 %v3679_v9  ;;  %v3607_v17 = vor.u32 %v4209_v14, %v3606_v12  ;;  %v3534_v19 = vld [vmem:[#allocation7 + $0x50] sm:$0xf] }
  0x46   : > { %v3671_v18 = vor.u32 %v4225_v16, %v3670_v15  ;;  %v4191_v20 = vld [vmem:[#allocation7 + $0x54] sm:$0xf0]  ;;  %v3598_v21 = vld [vmem:[#allocation7 + $0xd0] sm:$0xf]  ;;  %v3526_v28 = vld [vmem:[#allocation7 + $0x40] sm:$0xf] }
  0x47   : > { %v4207_v22 = vld [vmem:[#allocation7 + $0xd4] sm:$0xf0]  ;;  %v3662_v23 = vld [vmem:[#allocation7 + $0x150] sm:$0xf]  ;;  %848 = vmatpush.bf16.msra.mxu0 %v3543_v13  ;;  %v3535_v25 = vor.u32 %v4191_v20, %v3534_v19  ;;  %v4189_v29 = vld [vmem:[#allocation7 + $0x44] sm:$0xf0] }
  0x48   : > { %v4223_v24 = vld [vmem:[#allocation7 + $0x154] sm:$0xf0]  ;;  %897 = vmatpush.bf16.msra.mxu1 %v3607_v17  ;;  %v3599_v26 = vor.u32 %v4207_v22, %v3598_v21  ;;  %v3590_v30 = vld [vmem:[#allocation7 + $0xc0] sm:$0xf]  ;;  %v4205_v31 = vld [vmem:[#allocation7 + $0xc4] sm:$0xf0]  ;;  %v3527_v34 = vor.u32 %v4189_v29, %v3526_v28 }
  0x49   : > { %946 = vmatpush.bf16.msra.mxu2 %v3671_v18  ;;  %v3663_v27 = vor.u32 %v4223_v24, %v3662_v23  ;;  %v3654_v32 = vld [vmem:[#allocation7 + $0x140] sm:$0xf]  ;;  %v4221_v33 = vld [vmem:[#allocation7 + $0x144] sm:$0xf0]  ;;  %v3591_v35 = vor.u32 %v4205_v31, %v3590_v30  ;;  %v3518_v37 = vld [vmem:[#allocation7 + $0x30] sm:$0xf] }
  0x4a   : > { %v3655_v36 = vor.u32 %v4221_v33, %v3654_v32  ;;  %v4187_v38 = vld [vmem:[#allocation7 + $0x34] sm:$0xf0]  ;;  %v3582_v39 = vld [vmem:[#allocation7 + $0xb0] sm:$0xf]  ;;  %v3510_v44 = vld [vmem:[#allocation7 + $0x20] sm:$0xf] }
  0x4b   : > { %849 = vmatpush.bf16.msra.mxu0 %v3535_v25  ;;  %v4203_v40 = vld [vmem:[#allocation7 + $0xb4] sm:$0xf0]  ;;  %v3646_v41 = vld [vmem:[#allocation7 + $0x130] sm:$0xf]  ;;  %v3519_v43 = vor.u32 %v4187_v38, %v3518_v37  ;;  %v4185_v45 = vld [vmem:[#allocation7 + $0x24] sm:$0xf0] }
  0x4c   : > { %898 = vmatpush.bf16.msra.mxu1 %v3599_v26  ;;  %v4219_v42 = vld [vmem:[#allocation7 + $0x134] sm:$0xf0]  ;;  %v3574_v46 = vld [vmem:[#allocation7 + $0xa0] sm:$0xf]  ;;  %v3583_v47 = vor.u32 %v4203_v40, %v3582_v39  ;;  %v4201_v49 = vld [vmem:[#allocation7 + $0xa4] sm:$0xf0]  ;;  %v3511_v56 = vor.u32 %v4185_v45, %v3510_v44 }
  0x4d   : > { %947 = vmatpush.bf16.msra.mxu2 %v3663_v27  ;;  %v3647_v48 = vor.u32 %v4219_v42, %v3646_v41  ;;  %372 = vst [vmem:[#allocation2 + $0x90] sm:$0x1] %v4670_v0  ;;  %v3638_v51 = vld [vmem:[#allocation7 + $0x120] sm:$0xf]  ;;  %v4217_v52 = vld [vmem:[#allocation7 + $0x124] sm:$0xf0]  ;;  %v3575_v59 = vor.u32 %v4201_v49, %v3574_v46 }
  0x4e   : > { %373 = vst [vmem:[#allocation2 + $0xa8] sm:$0x1] %v4670_v0  ;;  %v3502_v55 = vld [vmem:[#allocation7 + $0x10] sm:$0xf]  ;;  %v4183_v57 = vld [vmem:[#allocation7 + $0x14] sm:$0xf0]  ;;  %v3639_v60 = vor.u32 %v4217_v52, %v3638_v51 }
  0x4f   : > { %850 = vmatpush.bf16.msra.mxu0 %v3527_v34  ;;  %374 = vst [vmem:[#allocation2 + $0x11] sm:$0x1] %v4670_v0  ;;  %v3566_v58 = vld [vmem:[#allocation7 + $0x90] sm:$0xf]  ;;  %v4199_v61 = vld [vmem:[#allocation7 + $0x94] sm:$0xf0]  ;;  %v3503_v4 = vor.u32 %v4183_v57, %v3502_v55 }
  0x50   : > { %899 = vmatpush.bf16.msra.mxu1 %v3591_v35  ;;  %465 = vst [vmem:[#allocation2 + $0x1] sm:$0xff] %v449_v53  ;;  %v3630_v62 = vld [vmem:[#allocation7 + $0x110] sm:$0xf]  ;;  %v4215_v63 = vld [vmem:[#allocation7 + $0x114] sm:$0xf0]  ;;  %v4861_v1 = vld [vmem:[%s4831_s1 + $0x8] sm:$0xff]   ;;  %v3567_v8 = vor.u32 %v4199_v61, %v3566_v58 }
  0x51   : > { %948 = vmatpush.bf16.msra.mxu2 %v3655_v36  ;;  %466 = vst [vmem:[#allocation2 + $0x9] sm:$0xff] %v450_v54  ;;  %v3494_v2 = vld [vmem:[#allocation7] sm:$0xf]  ;;  %v4181_v3 = vld [vmem:[#allocation7 + $0x4] sm:$0xf0]  ;;  %v4866_v7 = vld [vmem:[%s4831_s1 + $0x10] sm:$0xff]   ;;  %v3631_v9 = vor.u32 %v4215_v63, %v3630_v62  ;;  %v451_v12 = vunpack.c.l.bf16 %v4861_v1  ;;  %v452_v15 = vunpack.c.h.bf16 %v4861_v1 }
  0x52   : > { %375 = vst [vmem:[#allocation2 + $0x29] sm:$0x1] %v4670_v0  ;;  %v3558_v5 = vld [vmem:[#allocation7 + $0x80] sm:$0xf]  ;;  %v4197_v6 = vld [vmem:[#allocation7 + $0x84] sm:$0xf0]  ;;  %v453_v18 = vunpack.c.l.bf16 %v4866_v7  ;;  %v3495_v19 = vor.u32 %v4181_v3, %v3494_v2  ;;  %v454_v22 = vunpack.c.h.bf16 %v4866_v7 }
  0x53   : > { %851 = vmatpush.bf16.msra.mxu0 %v3519_v43  ;;  %376 = vst [vmem:[#allocation2 + $0x41] sm:$0x1] %v4670_v0  ;;  %v3622_v10 = vld [vmem:[#allocation7 + $0x100] sm:$0xf]  ;;  %v4213_v11 = vld [vmem:[#allocation7 + $0x104] sm:$0xf0]  ;;  %v3559_v23 = vor.u32 %v4197_v6, %v3558_v5 }
  0x54   : > { %900 = vmatpush.bf16.msra.mxu1 %v3583_v47  ;;  %377 = vst [vmem:[#allocation2 + $0x59] sm:$0x1] %v4670_v0  ;;  %v4210_v13 = vld [vmem:[#allocation7 + $0xf4] sm:$0xf]  ;;  %v3616_v14 = vld [vmem:[#allocation7 + $0xf8] sm:$0xf0]  ;;  %v3623_v24 = vor.u32 %v4213_v11, %v3622_v10 }
  0x55   : > { %949 = vmatpush.bf16.msra.mxu2 %v3647_v48  ;;  %378 = vst [vmem:[#allocation2 + $0x71] sm:$0x1] %v4670_v0  ;;  %v4226_v16 = vld [vmem:[#allocation7 + $0x174] sm:$0xf]  ;;  %v3680_v17 = vld [vmem:[#allocation7 + $0x178] sm:$0xf0]  ;;  %v3619_v27 = vor.u32 %v4210_v13, %v3616_v14 }
  0x56   : > { %379 = vst [vmem:[#allocation2 + $0x89] sm:$0x1] %v4670_v0  ;;  %v3683_v28 = vor.u32 %v4226_v16, %v3680_v17  ;;  %v4208_v29 = vld [vmem:[#allocation7 + $0xe4] sm:$0xf]  ;;  %v3608_v30 = vld [vmem:[#allocation7 + $0xe8] sm:$0xf0] }
  0x57   : > { %852 = vmatpush.bf16.msra.mxu0 %v3511_v56  ;;  %380 = vst [vmem:[#allocation2 + $0xa1] sm:$0x1] %v4670_v0  ;;  %v481_v20 = vld [vmem:[#allocation2] sm:$0xff]  ;;  %v3672_v33 = vld [vmem:[#allocation7 + $0x168] sm:$0xf0]  ;;  %v3611_v35 = vor.u32 %v4208_v29, %v3608_v30  ;;  %v4884_v43 = vld [vmem:[%s4831_s1 + $0x18] sm:$0xff]  }
  0x58   : > { %901 = vmatpush.bf16.msra.mxu1 %v3575_v59  ;;  %v482_v21 = vld [vmem:[#allocation2 + $0x8] sm:$0xff]  ;;  %381 = vst [vmem:[#allocation2 + $0xb9] sm:$0x1] %v4670_v0  ;;  %v4224_v32 = vld [vmem:[#allocation7 + $0x164] sm:$0xf]  ;;  %v455_v44 = vunpack.c.l.bf16 %v4884_v43  ;;  %v456_v45 = vunpack.c.h.bf16 %v4884_v43  ;;  %vm1205_vm1 = vcmask 1040384  }
  0x59   : > { %950 = vmatpush.bf16.msra.mxu2 %v3639_v60  ;;  %v513_v25 = vld [vmem:[#allocation2 + $0x2] sm:$0xff]  ;;  %v514_v26 = vld [vmem:[#allocation2 + $0xa] sm:$0xff]  ;;  %467 = vst [vmem:[#allocation2 + $0x19] sm:$0xff] %v451_v12  ;;  %v4876_v31 = vpack.c.bf16 %v482_v21, %v481_v20  ;;  %v3675_v36 = vor.u32 %v4224_v32, %v3672_v33  ;;  %v4206_v37 = vld [vmem:[#allocation7 + $0xd4] sm:$0xf]  ;;  %vm1494_vm2 = vcmask 1046528  }
  0x5a   : > { %468 = vst [vmem:[#allocation2 + $0x21] sm:$0xff] %v452_v15  ;;  %v4878_v34 = vpack.c.bf16 %v514_v26, %v513_v25  ;;  %v3600_v38 = vld [vmem:[#allocation7 + $0xd8] sm:$0xf0]  ;;  %v4222_v40 = vld [vmem:[#allocation7 + $0x154] sm:$0xf]  ;;  %v4896_v58 = vld [vmem:[%s4831_s1 + $0x20] sm:$0xff]  }
  0x5b   : > { %853 = vmatpush.bf16.msra.mxu0 %v3503_v4  ;;  %469 = vst [vmem:[#allocation2 + $0x31] sm:$0xff] %v453_v18  ;;  %v3603_v39 = vor.u32 %v4206_v37, %v3600_v38  ;;  %v3664_v41 = vld [vmem:[#allocation7 + $0x158] sm:$0xf0]  ;;  %v4204_v53 = vld [vmem:[#allocation7 + $0xc4] sm:$0xf]  ;;  %v457_v60 = vunpack.c.l.bf16 %v4896_v58  ;;  %v458_v61 = vunpack.c.h.bf16 %v4896_v58  ;;  %v4908_v12 = vld [vmem:[%s4831_s1 + $0x28] sm:$0xff]  }
  0x5c   : > { %902 = vmatpush.bf16.msra.mxu1 %v3567_v8  ;;  %470 = vst [vmem:[#allocation2 + $0x39] sm:$0xff] %v454_v22  ;;  %v3667_v42 = vor.u32 %v4222_v40, %v3664_v41  ;;  %v3592_v54 = vld [vmem:[#allocation7 + $0xc8] sm:$0xf0]  ;;  %v4220_v55 = vld [vmem:[#allocation7 + $0x144] sm:$0xf]  ;;  %v459_v14 = vunpack.c.l.bf16 %v4908_v12  ;;  %v460_v15 = vunpack.c.h.bf16 %v4908_v12  ;;  %v4920_v38 = vld [vmem:[%s4831_s1 + $0x30] sm:$0xff]  }
  0x5d   : > { %951 = vmatpush.bf16.msra.mxu2 %v3631_v9  ;;  %471 = vst [vmem:[#allocation2 + $0x49] sm:$0xff] %v455_v44  ;;  %v3595_v56 = vor.u32 %v4204_v53, %v3592_v54  ;;  %v3656_v57 = vld [vmem:[#allocation7 + $0x148] sm:$0xf0]  ;;  %v4202_v6 = vld [vmem:[#allocation7 + $0xb4] sm:$0xf]  ;;  %v462_v40 = vunpack.c.h.bf16 %v4920_v38  ;;  %vm1639_vm3 = vcmask 1045504  }
  0x5e   : > { %472 = vst [vmem:[#allocation2 + $0x51] sm:$0xff] %v456_v45  ;;  %v3659_v59 = vor.u32 %v4220_v55, %v3656_v57  ;;  %v3584_v8 = vld [vmem:[#allocation7 + $0xb8] sm:$0xf0]  ;;  %v4218_v9 = vld [vmem:[#allocation7 + $0x134] sm:$0xf]  ;;  %s3491_s21 = sshll.u32 %s4827_s19, 8 }
  0x5f   : > { %854 = vmatpush.bf16.msra.mxu0 %v3495_v19  ;;  %473 = vst [vmem:[#allocation2 + $0x61] sm:$0xff] %v457_v60  ;;  %v3587_v10 = vor.u32 %v4202_v6, %v3584_v8  ;;  %v3648_v11 = vld [vmem:[#allocation7 + $0x138] sm:$0xf0]  ;;  %v4194_v22 = vld [vmem:[#allocation7 + $0x74] sm:$0xf]  ;;  %s5723_s22 = scalar_lea.vmem [#allocation13], %s3491_s21 }
  0x60   : > { %903 = vmatpush.bf16.msra.mxu1 %v3559_v23  ;;  %v483_v46 = vld [vmem:[#allocation2 + $0x18] sm:$0xff]  ;;  %474 = vst [vmem:[#allocation2 + $0x69] sm:$0xff] %v458_v61  ;;  %v3651_v13 = vor.u32 %v4218_v9, %v3648_v11  ;;  %v4200_v25 = vld [vmem:[#allocation7 + $0xa4] sm:$0xf]  ;;  %v3576_v26 = vld [vmem:[#allocation7 + $0xa8] sm:$0xf0] }
  0x61   : > { %952 = vmatpush.bf16.msra.mxu2 %v3623_v24  ;;  %v484_v47 = vld [vmem:[#allocation2 + $0x20] sm:$0xff]  ;;  %475 = vst [vmem:[#allocation2 + $0x79] sm:$0xff] %v459_v14  ;;  %v3552_v23 = vld [vmem:[#allocation7 + $0x78] sm:$0xf0]  ;;  %v3640_v29 = vld [vmem:[#allocation7 + $0x128] sm:$0xf0] }
  0x62   : > { %855 = vmatmul.bf16.vlgmr.msra.gmra.mxu0 %v4876_v31  ;;  %v515_v48 = vld [vmem:[#allocation2 + $0x1a] sm:$0xff]  ;;  %v516_v49 = vld [vmem:[#allocation2 + $0x22] sm:$0xff]  ;;  %v4888_v51 = vpack.c.bf16 %v484_v47, %v483_v46  ;;  %v485_v62 = vld [vmem:[#allocation2 + $0x30] sm:$0xff]  ;;  %476 = vst [vmem:[#allocation2 + $0x81] sm:$0xff] %v460_v15  ;;  %v3555_v24 = vor.u32 %v4194_v22, %v3552_v23  ;;  %s4341_s20 = sshll.u32 %s4734_s28, 8  ;;  %s3360_s14 = sshll.u32 %s5723_s22, 4  ;;  %s3361_s14 = int_to_ptr.vmem [resolvable:$true] %s3360_s14 }
  0x63   : > { %1043 = vmatpush.bf16.msrb.mxu0 %v3619_v27  ;;  %904 = vmatmul.bf16.vlgmr.msra.gmra.mxu1 %v4852_v50  ;;  %v4890_v52 = vpack.c.bf16 %v516_v49, %v515_v48  ;;  %v486_v63 = vld [vmem:[#allocation2 + $0x38] sm:$0xff]  ;;  %v4216_v27 = vld [vmem:[#allocation7 + $0x124] sm:$0xf]  ;;  %v3544_v32 = vld [vmem:[#allocation7 + $0x68] sm:$0xf0]  ;;  %478 = vst [vmem:[#allocation2 + $0x99] sm:$0xff] %v462_v40  ;;  %s3359_s10 = scalar_lea.hbm %s5912_s7, %s4341_s20 }
  0x64   : > { %1092 = vmatpush.bf16.msrb.mxu1 %v3683_v28  ;;  %953 = vmatmul.bf16.vlgmr.msra.gmra.mxu2 %v4878_v34  ;;  %v517_v2 = vld [vmem:[#allocation2 + $0x32] sm:$0xff]  ;;  %v518_v3 = vld [vmem:[#allocation2 + $0x3a] sm:$0xff]  ;;  %v4900_v4 = vpack.c.bf16 %v486_v63, %v485_v62  ;;  %v487_v16 = vld [vmem:[#allocation2 + $0x48] sm:$0xff]  ;;  %v3579_v28 = vor.u32 %v4200_v25, %v3576_v26  ;;  %v3643_v33 = vor.u32 %v4216_v27, %v3640_v29  ;;  %s3362_s15 = sshll.u32 %s3359_s10, 4  ;;  %s3347_s28 = scalar_lea.sflag [#allocation6], %s4827_s19  ;;  %s3363_s15 = int_to_ptr.hbm [resolvable:$true] %s3362_s15 }
  0x65   : > { %v4902_v5 = vpack.c.bf16 %v518_v3, %v517_v2  ;;  %v488_v17 = vld [vmem:[#allocation2 + $0x50] sm:$0xff]  ;;  %994 = vmatpush.bf16.msra.mxu3 %v3555_v24  ;;  %v4192_v30 = vld [vmem:[#allocation7 + $0x64] sm:$0xf]  ;;  %v3536_v37 = vld [vmem:[#allocation7 + $0x58] sm:$0xf0]  ;;  %s4600_s23 = sshra.s32 %s3363_s15, 4  ;;  %s4601_s23 = int_to_ptr.hbm [resolvable:$true] %s4600_s23 }
  0x66   : > { %v519_v18 = vld [vmem:[#allocation2 + $0x4a] sm:$0xff]  ;;  %v520_v19 = vld [vmem:[#allocation2 + $0x52] sm:$0xff]  ;;  %v4912_v20 = vpack.c.bf16 %v488_v17, %v487_v16  ;;  %v489_v45 = vld [vmem:[#allocation2 + $0x60] sm:$0xff]  ;;  %s4606_s16 = scalar_lea.hbm %s5912_s7, 512  ;;  %p4607_p11 = scmp.lt.s32.totalorder %s4601_s23, %s5912_s7 }
  0x67   : > { %1044 = vmatpush.bf16.msrb.mxu0 %v3611_v35  ;;  %v4914_v21 = vpack.c.bf16 %v520_v19, %v519_v18  ;;  %v3547_v35 = vor.u32 %v4192_v30, %v3544_v32  ;;  %v3528_v44 = vld [vmem:[#allocation7 + $0x48] sm:$0xf0]  ;;  %v521_v47 = vld [vmem:[#allocation2 + $0x62] sm:$0xff]  ;;  %v4186_v55 = vld [vmem:[#allocation7 + $0x34] sm:$0xf] }
  0x68   : > { %1093 = vmatpush.bf16.msrb.mxu1 %v3675_v36  ;;  %v4190_v36 = vld [vmem:[#allocation7 + $0x54] sm:$0xf]  ;;  %v490_v46 = vld [vmem:[#allocation2 + $0x68] sm:$0xff]  ;;  %v3632_v63 = vld [vmem:[#allocation7 + $0x118] sm:$0xf0] }
  0x69   : > { %995 = vmatpush.bf16.msra.mxu3 %v3547_v35  ;;  %v3539_v41 = vor.u32 %v4190_v36, %v3536_v37  ;;  %v522_v48 = vld [vmem:[#allocation2 + $0x6a] sm:$0xff]  ;;  %v4924_v53 = vpack.c.bf16 %v490_v46, %v489_v45  ;;  %v4198_v57 = vld [vmem:[#allocation7 + $0x94] sm:$0xf]  ;;  %v4184_v2 = vld [vmem:[#allocation7 + $0x24] sm:$0xf] }
  0x6a   : > { %v4926_v54 = vpack.c.bf16 %v522_v48, %v521_v47  ;;  %v4214_v61 = vld [vmem:[#allocation7 + $0x114] sm:$0xf]  ;;  %v3512_v3 = vld [vmem:[#allocation7 + $0x28] sm:$0xf0]  ;;  %v4932_v11 = vld [vmem:[%s4831_s1 + $0x38] sm:$0xff]  }
  0x6b   : > { %1045 = vmatpush.bf16.msrb.mxu0 %v3603_v39  ;;  %v461_v39 = vunpack.c.l.bf16 %v4920_v38  ;;  %v3635_v6 = vor.u32 %v4214_v61, %v3632_v63  ;;  %v3515_v8 = vor.u32 %v4184_v2, %v3512_v3  ;;  %v4182_v9 = vld [vmem:[#allocation7 + $0x14] sm:$0xf]  ;;  %v464_v14 = vunpack.c.h.bf16 %v4932_v11  ;;  %v4180_v16 = vld [vmem:[#allocation7 + $0x4] sm:$0xf]  ;;  %v3496_v17 = vld [vmem:[#allocation7 + $0x8] sm:$0xf0] }
  0x6c   : > { %1094 = vmatpush.bf16.msrb.mxu1 %v3667_v42  ;;  %v4188_v42 = vld [vmem:[#allocation7 + $0x44] sm:$0xf]  ;;  %v491_v18 = vld [vmem:[#allocation2 + $0x78] sm:$0xff]  ;;  %v3499_v24 = vor.u32 %v4180_v16, %v3496_v17  ;;  %v3624_v32 = vld [vmem:[#allocation7 + $0x108] sm:$0xf0]  ;;  %v382_v3 = vlaneseq }
  0x6d   : > { %477 = vst [vmem:[#allocation2 + $0x91] sm:$0xff] %v461_v39  ;;  %996 = vmatpush.bf16.msra.mxu3 %v3539_v41  ;;  %v3531_v49 = vor.u32 %v4188_v42, %v3528_v44  ;;  %v492_v19 = vld [vmem:[#allocation2 + $0x80] sm:$0xff]  ;;  %v3742_v35 = vld [vmem:[#allocation10 + $0x70] sm:$0xf]  ;;  %v4243_v36 = vld [vmem:[#allocation10 + $0x74] sm:$0xf0] }
  0x6e   : > { %480 = vst [vmem:[#allocation2 + $0xb1] sm:$0xff] %v464_v14  ;;  %v523_v22 = vld [vmem:[#allocation2 + $0x7a] sm:$0xff]  ;;  %v524_v23 = vld [vmem:[#allocation2 + $0x82] sm:$0xff]  ;;  %v4936_v25 = vpack.c.bf16 %v492_v19, %v491_v18  ;;  %v3743_v37 = vor.u32 %v4243_v36, %v3742_v35  ;;  %v4241_v40 = vld [vmem:[#allocation10 + $0x64] sm:$0xf0]  ;;  %vm4952_vm0 = vcmp.lt.s32.totalorder %v382_v3, 256 }
  0x6f   : > { %1046 = vmatpush.bf16.msrb.mxu0 %v3595_v56  ;;  %v3520_v56 = vld [vmem:[#allocation7 + $0x38] sm:$0xf0]  ;;  %v4938_v26 = vpack.c.bf16 %v524_v23, %v523_v22  ;;  %v4196_v27 = vld [vmem:[#allocation7 + $0x84] sm:$0xf]  ;;  %v4233_v2 = vld [vmem:[#allocation10 + $0x24] sm:$0xf0] }
  0x70   : > { %1095 = vmatpush.bf16.msrb.mxu1 %v3659_v59  ;;  %v3568_v59 = vld [vmem:[#allocation7 + $0x98] sm:$0xf0]  ;;  %v3523_v60 = vor.u32 %v4186_v55, %v3520_v56  ;;  %v4212_v29 = vld [vmem:[#allocation7 + $0x104] sm:$0xf]  ;;  %2382 = vmatpush.bf16.msrb.mxu2 %v3743_v37  ;;  %v4229_v22 = vld [vmem:[#allocation10 + $0x4] sm:$0xf0] }
  0x71   : > { %997 = vmatpush.bf16.msra.mxu3 %v3531_v49  ;;  %v3571_v62 = vor.u32 %v4198_v57, %v3568_v59  ;;  %v3734_v39 = vld [vmem:[#allocation10 + $0x60] sm:$0xf]  ;;  %v526_v46 = vld [vmem:[#allocation2 + $0x9a] sm:$0xff]  ;;  %v4237_v57 = vld [vmem:[#allocation10 + $0x44] sm:$0xf0] }
  0x72   : > { %860 = vmatmul.bf16.gmra.mxu0 %v4888_v51  ;;  %v3735_v44 = vor.u32 %v4241_v40, %v3734_v39  ;;  %v4239_v48 = vld [vmem:[#allocation10 + $0x54] sm:$0xf0]  ;;  %v3718_v56 = vld [vmem:[#allocation10 + $0x40] sm:$0xf] }
  0x73   : > { %909 = vmatmul.bf16.gmra.mxu1 %v4861_v1  ;;  %1047 = vmatpush.bf16.msrb.mxu0 %v3587_v10  ;;  %v3504_v10 = vld [vmem:[#allocation7 + $0x18] sm:$0xf0]  ;;  %v3719_v59 = vor.u32 %v4237_v57, %v3718_v56  ;;  %v3702_v63 = vld [vmem:[#allocation10 + $0x20] sm:$0xf] }
  0x74   : > { %958 = vmatmul.bf16.gmra.mxu2 %v4890_v52  ;;  %1096 = vmatpush.bf16.msrb.mxu1 %v3651_v13  ;;  %v463_v13 = vunpack.c.l.bf16 %v4932_v11  ;;  %v3507_v15 = vor.u32 %v4182_v9, %v3504_v10  ;;  %v493_v41 = vld [vmem:[#allocation2 + $0x90] sm:$0xff]  ;;  %v494_v42 = vld [vmem:[#allocation2 + $0x98] sm:$0xff]  ;;  %v3703_v9 = vor.u32 %v4233_v2, %v3702_v63  ;;  %386 = vst.msk [vmem:[#allocation3] ss:$8 sm:$0x3] %vm4952_vm0, %v4670_v0 }
  0x75   : > { %998 = vmatpush.bf16.msra.mxu3 %v3523_v60  ;;  %v525_v45 = vld [vmem:[#allocation2 + $0x92] sm:$0xff]  ;;  %2383 = vmatpush.bf16.msrb.mxu2 %v3735_v44  ;;  %v4944_v47 = vpack.c.bf16 %v494_v42, %v493_v41  ;;  %v4235_v61 = vld [vmem:[#allocation10 + $0x34] sm:$0xf0]  ;;  %389 = vst.msk [vmem:[#allocation3 + $0x30] ss:$8 sm:$0x3] %vm4952_vm0, %v4670_v0 }
  0x76   : > { %479 = vst [vmem:[#allocation2 + $0xa9] sm:$0xff] %v463_v13  ;;  %v4946_v49 = vpack.c.bf16 %v526_v46, %v525_v45  ;;  %v3710_v60 = vld [vmem:[#allocation10 + $0x30] sm:$0xf]  ;;  %v4231_v16 = vld [vmem:[#allocation10 + $0x14] sm:$0xf0] }
  0x77   : > { %1048 = vmatpush.bf16.msrb.mxu0 %v3579_v28  ;;  %v3560_v28 = vld [vmem:[#allocation7 + $0x88] sm:$0xf0]  ;;  %v528_v13 = vld [vmem:[#allocation2 + $0xb2] sm:$0xff]  ;;  %392 = vst.msk [vmem:[#allocation3 + $0x60] ss:$8 sm:$0x3] %vm4952_vm0, %v4670_v0 }
  0x78   : > { %1097 = vmatpush.bf16.msrb.mxu1 %v3643_v33  ;;  %v3563_v30 = vor.u32 %v4196_v27, %v3560_v28  ;;  %v3627_v33 = vor.u32 %v4212_v29, %v3624_v32  ;;  %395 = vst.msk [vmem:[#allocation3 + $0x90] ss:$8 sm:$0x3] %vm4952_vm0, %v4670_v0  ;;  %v3686_v19 = vld [vmem:[#allocation10] sm:$0xf] }
  0x79   : > { %999 = vmatpush.bf16.msra.mxu3 %v3515_v8  ;;  %v3687_v23 = vor.u32 %v4229_v22, %v3686_v19  ;;  %398 = vst.msk [vmem:[#allocation3 + $0xc0] ss:$8 sm:$0x3] %vm4952_vm0, %v4670_v0  ;;  %v3806_v27 = vld [vmem:[#allocation10 + $0xf0] sm:$0xf] }
  0x7a   : > { %401 = vst.msk [vmem:[#allocation3 + $0xf0] ss:$8 sm:$0x3] %vm4952_vm0, %v4670_v0  ;;  %v4259_v28 = vld [vmem:[#allocation10 + $0xf4] sm:$0xf0] }
  0x7b   : > { %1049 = vmatpush.bf16.msrb.mxu0 %v3571_v62  ;;  %v3711_v62 = vor.u32 %v4235_v61, %v3710_v60  ;;  %404 = vst.msk [vmem:[#allocation3 + $0x120] ss:$8 sm:$0x3] %vm4952_vm0, %v4670_v0  ;;  %v3807_v29 = vor.u32 %v4259_v28, %v3806_v27  ;;  %v3798_v45 = vld [vmem:[#allocation10 + $0xe0] sm:$0xf] }
  0x7c   : > { %1098 = vmatpush.bf16.msrb.mxu1 %v3635_v6  ;;  %407 = vst.msk [vmem:[#allocation3 + $0x150] ss:$8 sm:$0x3] %vm4952_vm0, %v4670_v0  ;;  %v4257_v46 = vld [vmem:[#allocation10 + $0xe4] sm:$0xf0] }
  0x7d   : > { %1000 = vmatpush.bf16.msra.mxu3 %v3507_v15  ;;  %v495_v6 = vld [vmem:[#allocation2 + $0xa8] sm:$0xff]  ;;  %v496_v8 = vld [vmem:[#allocation2 + $0xb0] sm:$0xff]  ;;  %410 = vst.msk [vmem:[#allocation3 + $0x21] ss:$8 sm:$0x3] %vm4952_vm0, %v4670_v0 }
  0x7e   : > { %v527_v10 = vld [vmem:[#allocation2 + $0xaa] sm:$0xff]  ;;  %v3694_v15 = vld [vmem:[#allocation10 + $0x10] sm:$0xf]  ;;  %413 = vst.msk [vmem:[#allocation3 + $0x51] ss:$8 sm:$0x3] %vm4952_vm0, %v4670_v0 }
  0x7f   : > { %1050 = vmatpush.bf16.msrb.mxu0 %v3563_v30  ;;  %v4961_v17 = vpack.c.bf16 %v528_v13, %v527_v10  ;;  %v3695_v18 = vor.u32 %v4231_v16, %v3694_v15  ;;  %416 = vst.msk [vmem:[#allocation3 + $0x81] ss:$8 sm:$0x3] %vm4952_vm0, %v4670_v0  ;;  %v4255_v10 = vld [vmem:[#allocation10 + $0xd4] sm:$0xf0] }
  0x80   : > { %1099 = vmatpush.bf16.msrb.mxu1 %v3627_v33  ;;  %419 = vst.msk [vmem:[#allocation3 + $0xb1] ss:$8 sm:$0x3] %vm4952_vm0, %v4670_v0 }
  0x81   : > { %1001 = vmatpush.bf16.msra.mxu3 %v3499_v24  ;;  %422 = vst.msk [vmem:[#allocation3 + $0xe1] ss:$8 sm:$0x3] %vm4952_vm0, %v4670_v0 }
  0x82   : > { %865 = vmatmul.bf16.gmra.mxu0 %v4900_v4  ;;  %425 = vst.msk [vmem:[#allocation3 + $0x111] ss:$8 sm:$0x3] %vm4952_vm0, %v4670_v0 }
  0x83   : > { %914 = vmatmul.bf16.gmra.mxu1 %v4866_v7  ;;  %428 = vst.msk [vmem:[#allocation3 + $0x141] ss:$8 sm:$0x3] %vm4952_vm0, %v4670_v0 }
  0x84   : > { %963 = vmatmul.bf16.gmra.mxu2 %v4902_v5  ;;  %1002 = vmatmul.bf16.vlgmr.msra.gmra.mxu3 %v4876_v31  ;;  %v3726_v31 = vld [vmem:[#allocation10 + $0x50] sm:$0xf]  ;;  %431 = vst.msk [vmem:[#allocation3 + $0x171] ss:$8 sm:$0x3] %vm4952_vm0, %v4670_v0 }
  0x85   : > { %v3727_v55 = vor.u32 %v4239_v48, %v3726_v31  ;;  %2431 = vmatpush.bf16.msrb.mxu3 %v3807_v29  ;;  %v3799_v48 = vor.u32 %v4257_v46, %v3798_v45 }
  0x87   : > { %2384 = vmatpush.bf16.msrb.mxu2 %v3727_v55 }
  0x89   : > { %2432 = vmatpush.bf16.msrb.mxu3 %v3799_v48 }
  0x8b   : > { %2385 = vmatpush.bf16.msrb.mxu2 %v3719_v59 }
  0x8f   : > { %2386 = vmatpush.bf16.msrb.mxu2 %v3711_v62 }
  0x92   : > { %870 = vmatmul.bf16.gmra.mxu0 %v4912_v20 }
  0x93   : > { %919 = vmatmul.bf16.gmra.mxu1 %v4884_v43  ;;  %2387 = vmatpush.bf16.msrb.mxu2 %v3703_v9  ;;  %v3790_v9 = vld [vmem:[#allocation10 + $0xd0] sm:$0xf] }
  0x94   : > { %968 = vmatmul.bf16.gmra.mxu2 %v4914_v21  ;;  %1007 = vmatmul.bf16.gmra.mxu3 %v4888_v51  ;;  %v4959_v51 = vpack.c.bf16 %v496_v8, %v495_v6  ;;  %v3791_v14 = vor.u32 %v4255_v10, %v3790_v9 }
  0x96   : > { %2433 = vmatpush.bf16.msrb.mxu3 %v3791_v14  ;;  %v4275_v14 = vld [vmem:[#allocation10 + $0x174] sm:$0xf0] }
  0x97   : > { %2388 = vmatpush.bf16.msrb.mxu2 %v3695_v18 }
  0x9b   : > { %2389 = vmatpush.bf16.msrb.mxu2 %v3687_v23 }
  0xa2   : > { %875 = vmatmul.bf16.gmra.mxu0 %v4924_v53 }
  0xa3   : > { %924 = vmatmul.bf16.gmra.mxu1 %v4896_v58 }
  0xa4   : > { %973 = vmatmul.bf16.gmra.mxu2 %v4926_v54  ;;  %1012 = vmatmul.bf16.gmra.mxu3 %v4900_v4  ;;  %v4997_v4 = vld [vmem:[#allocation9] sm:$0x3] }
  0xa5   : > { %v5009_v24 = vperm.slane %v4997_v4, 0 }
  0xb2   : > { %880 = vmatmul.bf16.gmra.mxu0 %v4936_v25 }
  0xb3   : > { %929 = vmatmul.bf16.gmra.mxu1 %v4908_v12 }
  0xb4   : > { %978 = vmatmul.bf16.gmra.mxu2 %v4938_v26  ;;  %1017 = vmatmul.bf16.gmra.mxu3 %v4912_v20 }
  0xc2   : > { %885 = vmatmul.bf16.gmra.mxu0 %v4944_v47 }
  0xc3   : > { %934 = vmatmul.bf16.gmra.mxu1 %v4920_v38 }
  0xc4   : > { %983 = vmatmul.bf16.gmra.mxu2 %v4946_v49  ;;  %1022 = vmatmul.bf16.gmra.mxu3 %v4924_v53 }
  0xd2   : > { %890 = vmatmul.bf16.gmra.mxu0 %v4959_v51 }
  0xd3   : > { %939 = vmatmul.bf16.gmra.mxu1 %v4932_v11 }
  0xd4   : > { %988 = vmatmul.bf16.gmra.mxu2 %v4961_v17  ;;  %1027 = vmatmul.bf16.gmra.mxu3 %v4936_v25 }
  0xdf   : > { %v856_v30 = vpop.f32.mrf.mxu0 }
  0xe0   : > { %v905_v32 = vpop.f32.mrf.mxu1  ;;  %v857_v33 = vadd.f32 %v856_v30, %v5009_v24 }
  0xe2   : > { %1051 = vmatmul.bf16.vlgmr.msrb.gmra.mxu0 %v4852_v50  ;;  %v906_v35 = vadd.f32 %v905_v32, %v857_v33 }
  0xe3   : > { %1100 = vmatmul.bf16.vlgmr.msrb.gmra.mxu1 %v4878_v34 }
  0xe4   : > { %1032 = vmatmul.bf16.gmra.mxu3 %v4944_v47 }
  0xe7   : > { %v954_v36 = vpop.f32.mrf.mxu2  ;;  %v858_v39 = vpop.f32.mrf.mxu0 }
  0xe8   : > { %v955_v37 = vadd.f32 %v954_v36, %v906_v35  ;;  %v907_v40 = vpop.f32.mrf.mxu1  ;;  %v859_v42 = vadd.f32 %v858_v39, %v5009_v24  ;;  %v3782_v39 = vld [vmem:[#allocation10 + $0xc0] sm:$0xf] }
  0xea   : > { %v1141_v41 = vmax.f32 %v955_v37, 0.0  ;;  %v908_v0 = vadd.f32 %v907_v40, %v859_v42  ;;  %v4253_v40 = vld [vmem:[#allocation10 + $0xc4] sm:$0xf0] }
  0xeb   : > { %v3783_v42 = vor.u32 %v4253_v40, %v3782_v39  ;;  %v3766_v40 = vld [vmem:[#allocation10 + $0xa0] sm:$0xf] }
  0xec   : > { %v1206_v44 = vrot.slane %v1141_v41, 7 }
  0xed   : > { %2434 = vmatpush.bf16.msrb.mxu3 %v3783_v42 }
  0xee   : > { %1302 = vst [vmem:[#allocation3] sm:$0xfe] %v1206_v44 }
  0xef   : > { %v956_v31 = vpop.f32.mrf.mxu2  ;;  %v861_v55 = vpop.f32.mrf.mxu0 }
  0xf0   : > { %v957_v50 = vadd.f32 %v956_v31, %v908_v0  ;;  %v910_v34 = vpop.f32.mrf.mxu1  ;;  %v862_v56 = vadd.f32 %v861_v55, %v5009_v24 }
  0xf2   : > { %v1143_v20 = vmax.f32 %v957_v50, 0.0  ;;  %1056 = vmatmul.bf16.gmra.mxu0 %v4861_v1  ;;  %v911_v61 = vadd.f32 %v910_v34, %v862_v56 }
  0xf3   : > { %1105 = vmatmul.bf16.gmra.mxu1 %v4890_v52 }
  0xf4   : > { %v1208_v57 = vrot.slane %v1143_v20, 7  ;;  %1037 = vmatmul.bf16.gmra.mxu3 %v4959_v51 }
  0xf5   : > { %v1350_v59 = vld [vmem:[#allocation3] sm:$0xff] }
  0xf6   : > { %v5027_v60 = vsel %vm1205_vm1, %v1206_v44, %v1208_v57  ;;  %1306 = vst [vmem:[#allocation3 + $0x20] sm:$0x1] %v1208_v57 }
  0xf7   : > { %v959_v62 = vpop.f32.mrf.mxu2  ;;  %v5030_v63 = vpack.c.bf16 %v5027_v60, %v1350_v59  ;;  %v863_v3 = vpop.f32.mrf.mxu0 }
  0xf8   : > { %v960_v2 = vadd.f32 %v959_v62, %v911_v61  ;;  %v912_v6 = vpop.f32.mrf.mxu1  ;;  %v864_v52 = vadd.f32 %v863_v3, %v5009_v24  ;;  %v4251_v3 = vld [vmem:[#allocation10 + $0xb4] sm:$0xf0] }
  0xf9   : > { %2390 = vmatmul.bf16.vlgmr.msrb.gmra.mxu2 %v5030_v63 }
  0xfa   : > { %v1145_v1 = vmax.f32 %v960_v2, 0.0  ;;  %v913_v53 = vadd.f32 %v912_v6, %v864_v52  ;;  %v3774_v2 = vld [vmem:[#allocation10 + $0xb0] sm:$0xf] }
  0xfc   : > { %v1212_v8 = vrot.slane %v1145_v1, 7  ;;  %v3775_v1 = vor.u32 %v4251_v3, %v3774_v2  ;;  %v3830_v2 = vld [vmem:[#allocation10 + $0x120] sm:$0xf]  ;;  %v4265_v3 = vld [vmem:[#allocation10 + $0x124] sm:$0xf0] }
  0xfe   : > { %1308 = vst [vmem:[#allocation3 + $0x30] sm:$0xfe] %v1212_v8  ;;  %2435 = vmatpush.bf16.msrb.mxu3 %v3775_v1 }
  0xff   : > { %v961_v13 = vpop.f32.mrf.mxu2  ;;  %v866_v16 = vpop.f32.mrf.mxu0 }
 0x100   : > { %v962_v15 = vadd.f32 %v961_v13, %v913_v53  ;;  %v915_v18 = vpop.f32.mrf.mxu1  ;;  %v867_v22 = vadd.f32 %v866_v16, %v5009_v24  ;;  %v3870_v13 = vld [vmem:[#allocation10 + $0x170] sm:$0xf] }
 0x102   : > { %v1147_v19 = vmax.f32 %v962_v15, 0.0  ;;  %1061 = vmatmul.bf16.gmra.mxu0 %v4866_v7  ;;  %v916_v29 = vadd.f32 %v915_v18, %v867_v22  ;;  %v3871_v15 = vor.u32 %v4275_v14, %v3870_v13 }
 0x103   : > { %1110 = vmatmul.bf16.gmra.mxu1 %v4902_v5 }
 0x104   : > { %v1214_v23 = vrot.slane %v1147_v19, 7  ;;  %2480 = vmatpush.bf16.msra.mxu0 %v3871_v15  ;;  %v3822_v15 = vld [vmem:[#allocation10 + $0x110] sm:$0xf] }
 0x105   : > { %v1354_v27 = vld [vmem:[#allocation3 + $0x30] sm:$0xff] }
 0x106   : > { %v5039_v28 = vsel %vm1205_vm1, %v1212_v8, %v1214_v23  ;;  %1312 = vst [vmem:[#allocation3 + $0x50] sm:$0x1] %v1214_v23  ;;  %v3862_v23 = vld [vmem:[#allocation10 + $0x160] sm:$0xf] }
 0x107   : > { %v964_v30 = vpop.f32.mrf.mxu2  ;;  %v5042_v32 = vpack.c.bf16 %v5039_v28, %v1354_v27  ;;  %v868_v35 = vpop.f32.mrf.mxu0  ;;  %v4273_v27 = vld [vmem:[#allocation10 + $0x164] sm:$0xf0] }
 0x108   : > { %v965_v33 = vadd.f32 %v964_v30, %v916_v29  ;;  %v917_v36 = vpop.f32.mrf.mxu1  ;;  %v869_v5 = vadd.f32 %v868_v35, %v5009_v24 }
 0x109   : > { %2395 = vmatmul.bf16.gmra.mxu2 %v5042_v32 }
 0x10a   : > { %v1149_v7 = vmax.f32 %v965_v33, 0.0  ;;  %v918_v25 = vadd.f32 %v917_v36, %v869_v5  ;;  %v4271_v5 = vld [vmem:[#allocation10 + $0x154] sm:$0xf0] }
 0x10c   : > { %v1218_v37 = vrot.slane %v1149_v7, 7  ;;  %v3854_v7 = vld [vmem:[#allocation10 + $0x150] sm:$0xf] }
 0x10e   : > { %1314 = vst [vmem:[#allocation3 + $0x60] sm:$0xfe] %v1218_v37 }
 0x10f   : > { %v966_v41 = vpop.f32.mrf.mxu2  ;;  %v871_v0 = vpop.f32.mrf.mxu0 }
 0x110   : > { %v967_v44 = vadd.f32 %v966_v41, %v918_v25  ;;  %v920_v45 = vpop.f32.mrf.mxu1  ;;  %v872_v31 = vadd.f32 %v871_v0, %v5009_v24  ;;  %v4249_v41 = vld [vmem:[#allocation10 + $0xa4] sm:$0xf0]  ;;  %v3846_v0 = vld [vmem:[#allocation10 + $0x140] sm:$0xf] }
 0x112   : > { %v1151_v46 = vmax.f32 %v967_v44, 0.0  ;;  %1066 = vmatmul.bf16.gmra.mxu0 %v4884_v43  ;;  %v921_v34 = vadd.f32 %v920_v45, %v872_v31  ;;  %v3767_v44 = vor.u32 %v4249_v41, %v3766_v40  ;;  %v4269_v45 = vld [vmem:[#allocation10 + $0x144] sm:$0xf0] }
 0x113   : > { %1115 = vmatmul.bf16.gmra.mxu1 %v4914_v21 }
 0x114   : > { %v1220_v48 = vrot.slane %v1151_v46, 7  ;;  %2436 = vmatpush.bf16.msrb.mxu3 %v3767_v44  ;;  %v3982_v44 = vld [vmem:[#allocation10 + $0x250] sm:$0xf] }
 0x115   : > { %v1358_v50 = vld [vmem:[#allocation3 + $0x60] sm:$0xff] }
 0x116   : > { %v5051_v55 = vsel %vm1205_vm1, %v1218_v37, %v1220_v48  ;;  %1318 = vst [vmem:[#allocation3 + $0x80] sm:$0x1] %v1220_v48  ;;  %v3855_v37 = vor.u32 %v4271_v5, %v3854_v7  ;;  %v3847_v48 = vor.u32 %v4269_v45, %v3846_v0  ;;  %v4247_v5 = vld [vmem:[#allocation10 + $0x94] sm:$0xf0] }
 0x117   : > { %v969_v20 = vpop.f32.mrf.mxu2  ;;  %v5054_v56 = vpack.c.bf16 %v5051_v55, %v1358_v50  ;;  %v873_v59 = vpop.f32.mrf.mxu0  ;;  %v4303_v0 = vld [vmem:[#allocation10 + $0x254] sm:$0xf0] }
 0x118   : > { %v970_v57 = vadd.f32 %v969_v20, %v921_v34  ;;  %v922_v61 = vpop.f32.mrf.mxu1  ;;  %v874_v21 = vadd.f32 %v873_v59, %v5009_v24  ;;  %v4267_v59 = vld [vmem:[#allocation10 + $0x134] sm:$0xf0] }
 0x119   : > { %2400 = vmatmul.bf16.gmra.mxu2 %v5054_v56 }
 0x11a   : > { %v1153_v43 = vmax.f32 %v970_v57, 0.0  ;;  %v923_v47 = vadd.f32 %v922_v61, %v874_v21  ;;  %v3838_v57 = vld [vmem:[#allocation10 + $0x130] sm:$0xf] }
 0x11b   : > { %v3839_v61 = vor.u32 %v4267_v59, %v3838_v57  ;;  %v3974_v59 = vld [vmem:[#allocation10 + $0x240] sm:$0xf] }
 0x11c   : > { %v1224_v62 = vrot.slane %v1153_v43, 7 }
 0x11e   : > { %1320 = vst [vmem:[#allocation3 + $0x90] sm:$0xfe] %v1224_v62 }
 0x11f   : > { %v971_v6 = vpop.f32.mrf.mxu2  ;;  %v876_v8 = vpop.f32.mrf.mxu0 }
 0x120   : > { %v972_v52 = vadd.f32 %v971_v6, %v923_v47  ;;  %v925_v53 = vpop.f32.mrf.mxu1  ;;  %v877_v10 = vadd.f32 %v876_v8, %v5009_v24  ;;  %v3998_v8 = vld [vmem:[#allocation10 + $0x270] sm:$0xf] }
 0x122   : > { %v1155_v9 = vmax.f32 %v972_v52, 0.0  ;;  %1071 = vmatmul.bf16.gmra.mxu0 %v4896_v58  ;;  %v926_v22 = vadd.f32 %v925_v53, %v877_v10  ;;  %v3863_v58 = vor.u32 %v4273_v27, %v3862_v23  ;;  %v3831_v52 = vor.u32 %v4265_v3, %v3830_v2  ;;  %v3990_v23 = vld [vmem:[#allocation10 + $0x260] sm:$0xf]  ;;  %v4305_v27 = vld [vmem:[#allocation10 + $0x264] sm:$0xf0] }
 0x123   : > { %1120 = vmatmul.bf16.gmra.mxu1 %v4926_v54  ;;  %v3918_v3 = vld [vmem:[#allocation10 + $0x1d0] sm:$0xf] }
 0x124   : > { %v1226_v16 = vrot.slane %v1155_v9, 7  ;;  %2481 = vmatpush.bf16.msra.mxu0 %v3863_v58  ;;  %v4307_v9 = vld [vmem:[#allocation10 + $0x274] sm:$0xf0] }
 0x125   : > { %v1362_v18 = vld [vmem:[#allocation3 + $0x90] sm:$0xff]  ;;  %v4291_v58 = vld [vmem:[#allocation10 + $0x1f4] sm:$0xf0] }
 0x126   : > { %v5063_v19 = vsel %vm1205_vm1, %v1224_v62, %v1226_v16  ;;  %1324 = vst [vmem:[#allocation3 + $0xb0] sm:$0x1] %v1226_v16  ;;  %v4263_v16 = vld [vmem:[#allocation10 + $0x114] sm:$0xf0] }
 0x127   : > { %v974_v29 = vpop.f32.mrf.mxu2  ;;  %v5066_v30 = vpack.c.bf16 %v5063_v19, %v1362_v18  ;;  %v878_v35 = vpop.f32.mrf.mxu0  ;;  %v3823_v18 = vor.u32 %v4263_v16, %v3822_v15  ;;  %v3910_v16 = vld [vmem:[#allocation10 + $0x1c0] sm:$0xf] }
 0x128   : > { %v975_v33 = vadd.f32 %v974_v29, %v926_v22  ;;  %v927_v36 = vpop.f32.mrf.mxu1  ;;  %v879_v51 = vadd.f32 %v878_v35, %v5009_v24  ;;  %2482 = vmatpush.bf16.msra.mxu0 %v3855_v37  ;;  %v3934_v29 = vld [vmem:[#allocation10 + $0x1f0] sm:$0xf]  ;;  %v3814_v37 = vld [vmem:[#allocation10 + $0x100] sm:$0xf] }
 0x129   : > { %2405 = vmatmul.bf16.gmra.mxu2 %v5066_v30 }
 0x12a   : > { %v1157_v54 = vmax.f32 %v975_v33, 0.0  ;;  %v928_v39 = vadd.f32 %v927_v36, %v879_v51  ;;  %v3991_v33 = vor.u32 %v4305_v27, %v3990_v23  ;;  %v5081_v36 = vpop.f32.mrf.mxu3  ;;  %v3935_v51 = vor.u32 %v4291_v58, %v3934_v29  ;;  %v3958_v27 = vld [vmem:[#allocation10 + $0x220] sm:$0xf]  ;;  %v4297_v29 = vld [vmem:[#allocation10 + $0x224] sm:$0xf0] }
 0x12b   : > { %v3959_v58 = vor.u32 %v4297_v29, %v3958_v27 }
 0x12c   : > { %v1230_v25 = vrot.slane %v1157_v54, 7  ;;  %2483 = vmatpush.bf16.msra.mxu0 %v3847_v48  ;;  %v3758_v54 = vld [vmem:[#allocation10 + $0x90] sm:$0xf]  ;;  %2529 = vmatpush.bf16.msra.mxu1 %v3935_v51 }
 0x12d   : > { %v3759_v41 = vor.u32 %v4247_v5, %v3758_v54  ;;  %v4283_v54 = vld [vmem:[#allocation10 + $0x1b4] sm:$0xf0] }
 0x12e   : > { %1326 = vst [vmem:[#allocation3 + $0xc0] sm:$0xfe] %v1230_v25 }
 0x12f   : > { %v976_v42 = vpop.f32.mrf.mxu2  ;;  %v881_v31 = vpop.f32.mrf.mxu0  ;;  %2437 = vmatpush.bf16.msrb.mxu3 %v3759_v41 }
 0x130   : > { %v977_v46 = vadd.f32 %v976_v42, %v928_v39  ;;  %v930_v50 = vpop.f32.mrf.mxu1  ;;  %v882_v20 = vadd.f32 %v881_v31, %v5009_v24  ;;  %2484 = vmatpush.bf16.msra.mxu0 %v3839_v61  ;;  %v4301_v61 = vld [vmem:[#allocation10 + $0x244] sm:$0xf0] }
 0x132   : > { %v1159_v34 = vmax.f32 %v977_v46, 0.0  ;;  %1076 = vmatmul.bf16.gmra.mxu0 %v4908_v12  ;;  %v931_v47 = vadd.f32 %v930_v50, %v882_v20  ;;  %v3983_v46 = vor.u32 %v4303_v0, %v3982_v44  ;;  %v3926_v50 = vld [vmem:[#allocation10 + $0x1e0] sm:$0xf]  ;;  %v4295_v44 = vld [vmem:[#allocation10 + $0x214] sm:$0xf0] }
 0x133   : > { %1125 = vmatmul.bf16.gmra.mxu1 %v4938_v26  ;;  %v3999_v26 = vor.u32 %v4307_v9, %v3998_v8  ;;  %v3966_v9 = vld [vmem:[#allocation10 + $0x230] sm:$0xf] }
 0x134   : > { %v1232_v43 = vrot.slane %v1159_v34, 7  ;;  %2485 = vmatpush.bf16.msra.mxu0 %v3831_v52  ;;  %v4289_v34 = vld [vmem:[#allocation10 + $0x1e4] sm:$0xf0] }
 0x135   : > { %v1366_v21 = vld [vmem:[#allocation3 + $0xc0] sm:$0xff]  ;;  %2578 = vmatpush.bf16.msra.mxu2 %v3999_v26  ;;  %v3927_v20 = vor.u32 %v4289_v34, %v3926_v50 }
 0x136   : > { %v5074_v62 = vsel %vm1205_vm1, %v1230_v25, %v1232_v43  ;;  %1330 = vst [vmem:[#allocation3 + $0xe0] sm:$0x1] %v1232_v43  ;;  %v4261_v25 = vld [vmem:[#allocation10 + $0x104] sm:$0xf0] }
 0x137   : > { %v979_v6 = vpop.f32.mrf.mxu2  ;;  %v5077_v1 = vpack.c.bf16 %v5074_v62, %v1366_v21  ;;  %v883_v53 = vpop.f32.mrf.mxu0  ;;  %v3815_v42 = vor.u32 %v4261_v25, %v3814_v37  ;;  %2530 = vmatpush.bf16.msra.mxu1 %v3927_v20  ;;  %v3975_v21 = vor.u32 %v4301_v61, %v3974_v59  ;;  %v3750_v25 = vld [vmem:[#allocation10 + $0x80] sm:$0xf]  ;;  %v4293_v59 = vld [vmem:[#allocation10 + $0x204] sm:$0xf0] }
 0x138   : > { %v980_v12 = vadd.f32 %v979_v6, %v931_v47  ;;  %v932_v10 = vpop.f32.mrf.mxu1  ;;  %v884_v14 = vadd.f32 %v883_v53, %v5009_v24  ;;  %2486 = vmatpush.bf16.msra.mxu0 %v3823_v18  ;;  %v4287_v6 = vld [vmem:[#allocation10 + $0x1d4] sm:$0xf0]  ;;  %v5092_v53 = vpop.f32.mrf.mxu3  ;;  %v4285_v18 = vld [vmem:[#allocation10 + $0x1c4] sm:$0xf0] }
 0x139   : > { %2410 = vmatmul.bf16.gmra.mxu2 %v5077_v1  ;;  %v3919_v8 = vor.u32 %v4287_v6, %v3918_v3  ;;  %v3886_v3 = vld [vmem:[#allocation10 + $0x190] sm:$0xf]  ;;  %v4279_v6 = vld [vmem:[#allocation10 + $0x194] sm:$0xf0] }
 0x13a   : > { %v1161_v13 = vmax.f32 %v980_v12, 0.0  ;;  %v933_v35 = vadd.f32 %v932_v10, %v884_v14  ;;  %2579 = vmatpush.bf16.msra.mxu2 %v3991_v33  ;;  %v4299_v10 = vld [vmem:[#allocation10 + $0x234] sm:$0xf0] }
 0x13b   : > { %2531 = vmatpush.bf16.msra.mxu1 %v3919_v8  ;;  %v1384_v8 = vld [vmem:[#allocation3 + $0x20] sm:$0x1] }
 0x13c   : > { %v1236_v22 = vrot.slane %v1161_v13, 7  ;;  %2487 = vmatpush.bf16.msra.mxu0 %v3815_v42  ;;  %v3967_v13 = vor.u32 %v4299_v10, %v3966_v9  ;;  %v5108_v9 = vperm.slane %v4997_v4, 1 }
 0x13e   : > { %1332 = vst [vmem:[#allocation3 + $0xf0] sm:$0xfe] %v1236_v22  ;;  %2580 = vmatpush.bf16.msra.mxu2 %v3983_v46  ;;  %v1004_v4 = vadd.f32 %v5081_v36, %v5108_v9 }
 0x13f   : > { %v981_v7 = vpop.f32.mrf.mxu2  ;;  %v886_v40 = vpop.f32.mrf.mxu0 }
 0x140   : > { %v982_v39 = vadd.f32 %v981_v7, %v933_v35  ;;  %v935_v45 = vpop.f32.mrf.mxu1  ;;  %v887_v48 = vadd.f32 %v886_v40, %v5009_v24  ;;  %v3902_v35 = vld [vmem:[#allocation10 + $0x1b0] sm:$0xf]  ;;  %v5097_v46 = vpop.f32.mrf.mxu3 }
 0x141   : > { %v3903_v7 = vor.u32 %v4283_v54, %v3902_v35  ;;  %v3950_v40 = vld [vmem:[#allocation10 + $0x210] sm:$0xf] }
 0x142   : > { %v1163_v31 = vmax.f32 %v982_v39, 0.0  ;;  %1081 = vmatmul.bf16.gmra.mxu0 %v4920_v38  ;;  %v936_v2 = vadd.f32 %v935_v45, %v887_v48  ;;  %2581 = vmatpush.bf16.msra.mxu2 %v3975_v21  ;;  %v4245_v39 = vld [vmem:[#allocation10 + $0x84] sm:$0xf0]  ;;  %v3951_v50 = vor.u32 %v4295_v44, %v3950_v40  ;;  %v4062_v40 = vld [vmem:[#allocation10 + $0x2f0] sm:$0xf] }
 0x143   : > { %1130 = vmatmul.bf16.gmra.mxu1 %v4946_v49  ;;  %v3751_v42 = vor.u32 %v4245_v39, %v3750_v25  ;;  %v4281_v48 = vld [vmem:[#allocation10 + $0x1a4] sm:$0xf0] }
 0x144   : > { %v1238_v57 = vrot.slane %v1163_v31, 7  ;;  %v3894_v31 = vld [vmem:[#allocation10 + $0x1a0] sm:$0xf] }
 0x145   : > { %v1370_v43 = vld [vmem:[#allocation3 + $0xf0] sm:$0xff]  ;;  %2438 = vmatpush.bf16.msrb.mxu3 %v3751_v42  ;;  %v3895_v34 = vor.u32 %v4281_v48, %v3894_v31 }
 0x146   : > { %v5087_v47 = vsel %vm1205_vm1, %v1236_v22, %v1238_v57  ;;  %1336 = vst [vmem:[#allocation3 + $0x110] sm:$0x1] %v1238_v57  ;;  %v3911_v22 = vor.u32 %v4285_v18, %v3910_v16  ;;  %2582 = vmatpush.bf16.msra.mxu2 %v3967_v13  ;;  %v3942_v57 = vld [vmem:[#allocation10 + $0x200] sm:$0xf]  ;;  %v4277_v18 = vld [vmem:[#allocation10 + $0x184] sm:$0xf0] }
 0x147   : > { %v984_v52 = vpop.f32.mrf.mxu2  ;;  %v5090_v38 = vpack.c.bf16 %v5087_v47, %v1370_v43  ;;  %v888_v49 = vpop.f32.mrf.mxu0  ;;  %v3943_v43 = vor.u32 %v4293_v59, %v3942_v57  ;;  %v3878_v16 = vld [vmem:[#allocation10 + $0x180] sm:$0xf]  ;;  %v1388_v57 = vld [vmem:[#allocation3 + $0x50] sm:$0x1] }
 0x148   : > { %v985_v12 = vadd.f32 %v984_v52, %v936_v2  ;;  %v937_v26 = vpop.f32.mrf.mxu1  ;;  %v889_v15 = vadd.f32 %v888_v49, %v5009_v24  ;;  %2532 = vmatpush.bf16.msra.mxu1 %v3911_v22  ;;  %v3879_v22 = vor.u32 %v4277_v18, %v3878_v16 }
 0x149   : > { %2415 = vmatmul.bf16.gmra.mxu2 %v5090_v38 }
 0x14a   : > { %v1165_v14 = vmax.f32 %v985_v12, 0.0  ;;  %v938_v33 = vadd.f32 %v937_v26, %v889_v15  ;;  %2583 = vmatpush.bf16.msra.mxu2 %v3959_v58  ;;  %v3887_v12 = vor.u32 %v4279_v6, %v3886_v3  ;;  %v1382_v26 = vld [vmem:[#allocation3] sm:$0xfe]  ;;  %v1501_v15 = vrot.slane %v1384_v8, 1  ;;  %v5113_v58 = vpop.f32.mrf.mxu3 }
 0x14b   : > { %v1495_v29 = vrot.slane %v1382_v26, 1  ;;  %v1511_v3 = vrot.slane %v1388_v57, 1 }
 0x14c   : > { %v1242_v23 = vrot.slane %v1165_v14, 7  ;;  %2533 = vmatpush.bf16.msra.mxu1 %v3903_v7 }
 0x14e   : > { %1338 = vst [vmem:[#allocation3 + $0x120] sm:$0xfe] %v1242_v23  ;;  %2584 = vmatpush.bf16.msra.mxu2 %v3951_v50  ;;  %v1006_v50 = vadd.f32 %v5092_v53, %v5108_v9  ;;  %v1009_v53 = vadd.f32 %v5097_v46, %v5108_v9 }
 0x14f   : > { %v986_v51 = vpop.f32.mrf.mxu2  ;;  %v891_v37 = vpop.f32.mrf.mxu0 }
 0x150   : > { %v987_v5 = vadd.f32 %v986_v51, %v938_v33  ;;  %v940_v41 = vpop.f32.mrf.mxu1  ;;  %v892_v45 = vadd.f32 %v891_v37, %v5009_v24  ;;  %2534 = vmatpush.bf16.msra.mxu1 %v3895_v34 }
 0x152   : > { %v1167_v0 = vmax.f32 %v987_v5, 0.0  ;;  %1086 = vmatmul.bf16.gmra.mxu0 %v4932_v11  ;;  %v941_v2 = vadd.f32 %v940_v41, %v892_v45  ;;  %2585 = vmatpush.bf16.msra.mxu2 %v3943_v43  ;;  %v4323_v41 = vld [vmem:[#allocation10 + $0x2f4] sm:$0xf0]  ;;  %v5125_v48 = vpop.f32.mrf.mxu3 }
 0x153   : > { %1135 = vmatmul.bf16.gmra.mxu1 %v4961_v17  ;;  %v4063_v36 = vor.u32 %v4323_v41, %v4062_v40  ;;  %v1011_v40 = vadd.f32 %v5113_v58, %v5108_v9 }
 0x154   : > { %v1244_v20 = vrot.slane %v1167_v0, 7  ;;  %2535 = vmatpush.bf16.msra.mxu1 %v3887_v12  ;;  %v1416_v12 = vld [vmem:[#allocation3 + $0x20] sm:$0x3] }
 0x155   : > { %v1374_v61 = vld [vmem:[#allocation3 + $0x120] sm:$0xff]  ;;  %2627 = vmatpush.bf16.msra.mxu3 %v4063_v36 }
 0x156   : > { %v5102_v21 = vsel %vm1205_vm1, %v1242_v23, %v1244_v20  ;;  %1342 = vst [vmem:[#allocation3 + $0x140] sm:$0x1] %v1244_v20  ;;  %v1496_v23 = vrot.slane %v5027_v60, 1 }
 0x157   : > { %v989_v52 = vpop.f32.mrf.mxu2  ;;  %v5105_v11 = vpack.c.bf16 %v5102_v21, %v1374_v61  ;;  %v893_v49 = vpop.f32.mrf.mxu0 }
 0x158   : > { %v990_v17 = vadd.f32 %v989_v52, %v941_v2  ;;  %v942_v10 = vpop.f32.mrf.mxu1  ;;  %v894_v14 = vadd.f32 %v893_v49, %v5009_v24  ;;  %2536 = vmatpush.bf16.msra.mxu1 %v3879_v22  ;;  %v1502_v35 = vsel %vm1494_vm2, %v1496_v23, %v1501_v15  ;;  %v1497_v7 = vsel %vm1494_vm2, %v1495_v29, %v1496_v23  ;;  %v1386_v2 = vld [vmem:[#allocation3 + $0x30] sm:$0xfe]  ;;  %v1414_v49 = vld [vmem:[#allocation3] sm:$0xfc] }
 0x159   : > { %5942 = vst [vmem:[#allocation18_spill] sm:$0xff] %v5105_v11  ;;  %2420 = vmatmul.bf16.gmra.mxu2 %v5105_v11  ;;  %v5119_v25 = vpack.c.bf16 %v1502_v35, %v1497_v7  ;;  %v1506_v52 = vrot.slane %v5039_v28, 1  ;;  %v1505_v8 = vrot.slane %v1386_v2, 1  ;;  %v1640_v22 = vrot.slane %v1414_v49, 2  ;;  %v4054_v35 = vld [vmem:[#allocation10 + $0x2e0] sm:$0xf] }
 0x15a   : > { %v1169_v13 = vmax.f32 %v990_v17, 0.0  ;;  %v943_v33 = vadd.f32 %v942_v10, %v894_v14  ;;  %v5138_v18 = vpop.f32.mrf.mxu3  ;;  %v1641_v23 = vrot.slane %v5027_v60, 2  ;;  %v4252_v11 = vld [vmem:[#allocation10 + $0xc4] sm:$0xf] }
 0x15b   : > { %v1512_v10 = vsel %vm1494_vm2, %v1506_v52, %v1511_v3  ;;  %v1507_v15 = vsel %vm1494_vm2, %v1505_v8, %v1506_v52 }
 0x15c   : > { %v1248_v27 = vrot.slane %v1169_v13, 7  ;;  %v1646_v13 = vrot.slane %v1416_v12, 2 }
 0x15e   : > { %1344 = vst [vmem:[#allocation3 + $0x150] sm:$0xfe] %v1248_v27 }
 0x15f   : > { %v991_v24 = vpop.f32.mrf.mxu2  ;;  %v1052_v51 = vpop.f32.mrf.mxu0 }
 0x160   : > { %v992_v54 = vadd.f32 %v991_v24, %v943_v33  ;;  %v1053_v5 = vadd.f32 %v1052_v51, %v1004_v4  ;;  %v1101_v37 = vpop.f32.mrf.mxu1  ;;  %v5144_v4 = vpack.c.bf16 %v1512_v10, %v1507_v15  ;;  %v4321_v51 = vld [vmem:[#allocation10 + $0x2e4] sm:$0xf0]  ;;  %v1418_v10 = vld [vmem:[#allocation3 + $0x30] sm:$0xfc] }
 0x161   : > { %v4055_v7 = vor.u32 %v4321_v51, %v4054_v35  ;;  %v4046_v51 = vld [vmem:[#allocation10 + $0x2d0] sm:$0xf] }
 0x162   : > { %v1171_v39 = vmax.f32 %v992_v54, 0.0  ;;  %v1102_v42 = vadd.f32 %v1101_v37, %v1053_v5  ;;  %2488 = vmatmul.bf16.vlgmr.msra.gmra.mxu0 %v5119_v25  ;;  %v1647_v54 = vsel %vm1639_vm3, %v1641_v23, %v1646_v13  ;;  %v1642_v37 = vsel %vm1639_vm3, %v1640_v22, %v1641_v23 }
 0x163   : > { %2628 = vmatpush.bf16.msra.mxu3 %v4055_v7  ;;  %v1650_v23 = vrot.slane %v1418_v10, 2 }
 0x164   : > { %v1250_v44 = vrot.slane %v1171_v39, 7  ;;  %v1142_v0 = vmax.f32 %v1102_v42, 0.0  ;;  %v5153_v39 = vpack.c.bf16 %v1647_v54, %v1642_v37 }
 0x165   : > { %v1378_v45 = vld [vmem:[#allocation3 + $0x150] sm:$0xff] }
 0x166   : > { %v5123_v31 = vsel %vm1205_vm1, %v1248_v27, %v1250_v44  ;;  %1348 = vst [vmem:[#allocation3 + $0x170] sm:$0x1] %v1250_v44  ;;  %v1207_v34 = vrot.slane %v1142_v0, 7  ;;  %v1392_v44 = vld [vmem:[#allocation3 + $0x80] sm:$0x1] }
 0x167   : > { %v5130_v20 = vpack.c.bf16 %v5123_v31, %v1378_v45  ;;  %v1054_v59 = vpop.f32.mrf.mxu0  ;;  %5944 = vst [vmem:[#allocation20_spill] sm:$0xff] %v5153_v39 }
 0x168   : > { %1303 = vst [vmem:[#allocation3 + $0x8] sm:$0xfe] %v1207_v34  ;;  %v1055_v61 = vadd.f32 %v1054_v59, %v1006_v50  ;;  %v1103_v43 = vpop.f32.mrf.mxu1  ;;  %v1390_v59 = vld [vmem:[#allocation3 + $0x60] sm:$0xfe] }
 0x169   : > { %5943 = vst [vmem:[#allocation19_spill] sm:$0xff] %v5130_v20  ;;  %2425 = vmatmul.bf16.gmra.mxu2 %v5130_v20  ;;  %v1515_v12 = vrot.slane %v1390_v59, 1 }
 0x16a   : > { %v1104_v6 = vadd.f32 %v1103_v43, %v1055_v61  ;;  %v1521_v61 = vrot.slane %v1392_v44, 1  ;;  %v5159_v43 = vpop.f32.mrf.mxu3 }
 0x16c   : > { %v1144_v17 = vmax.f32 %v1104_v6, 0.0  ;;  %v1516_v6 = vrot.slane %v5051_v55, 1 }
 0x16e   : > { %v1210_v26 = vrot.slane %v1144_v17, 7  ;;  %v1014_v17 = vadd.f32 %v5125_v48, %v5108_v9 }
 0x16f   : > { %v1057_v14 = vpop.f32.mrf.mxu0  ;;  %v1351_v16 = vld [vmem:[#allocation3 + $0x8] sm:$0xff] }
 0x170   : > { %v5142_v27 = vsel %vm1205_vm1, %v1207_v34, %v1210_v26  ;;  %1307 = vst [vmem:[#allocation3 + $0x28] sm:$0x1] %v1210_v26  ;;  %v1058_v46 = vadd.f32 %v1057_v14, %v1009_v53  ;;  %v1106_v29 = vpop.f32.mrf.mxu1  ;;  %v1383_v60 = vld [vmem:[#allocation3 + $0x8] sm:$0xfe]  ;;  %v1420_v53 = vld [vmem:[#allocation3 + $0x50] sm:$0x3]  ;;  %v1522_v26 = vsel %vm1494_vm2, %v1516_v6, %v1521_v61 }
 0x171   : > { %v5147_v33 = vpack.c.bf16 %v5142_v27, %v1351_v16  ;;  %v1499_v42 = vrot.slane %v5142_v27, 1  ;;  %v1498_v36 = vrot.slane %v1383_v60, 1  ;;  %v1656_v14 = vrot.slane %v1420_v53, 2 }
 0x172   : > { %v1107_v24 = vadd.f32 %v1106_v29, %v1058_v46  ;;  %2493 = vmatmul.bf16.gmra.mxu0 %v5144_v4  ;;  %v1517_v16 = vsel %vm1494_vm2, %v1515_v12, %v1516_v6  ;;  %v1651_v46 = vrot.slane %v5039_v28, 2  ;;  %v1020_v28 = vpop.f32.mrf.mxu3  ;;  %v1394_v6 = vld [vmem:[#allocation3 + $0x90] sm:$0xfe] }
 0x173   : > { %2439 = vmatmul.bf16.vlgmr.msrb.gmra.mxu3 %v5147_v33  ;;  %v1500_v58 = vsel %vm1494_vm2, %v1498_v36, %v1499_v42 }
 0x174   : > { %v1146_v5 = vmax.f32 %v1107_v24, 0.0  ;;  %v5177_v24 = vpack.c.bf16 %v1522_v26, %v1517_v16  ;;  %v1657_v7 = vsel %vm1639_vm3, %v1651_v46, %v1656_v14  ;;  %v1652_v36 = vsel %vm1639_vm3, %v1650_v23, %v1651_v46  ;;  %v1424_v14 = vld [vmem:[#allocation3 + $0x80] sm:$0x3] }
 0x175   : > { %v5188_v44 = vpack.c.bf16 %v1657_v7, %v1652_v36 }
 0x176   : > { %v1213_v41 = vrot.slane %v1146_v5, 7  ;;  %v4319_v5 = vld [vmem:[#allocation10 + $0x2d4] sm:$0xf0] }
 0x177   : > { %v1059_v0 = vpop.f32.mrf.mxu0  ;;  %v1385_v45 = vld [vmem:[#allocation3 + $0x28] sm:$0x1]  ;;  %5946 = vst [vmem:[#allocation22_spill] sm:$0xff] %v5188_v44 }
 0x178   : > { %1309 = vst [vmem:[#allocation3 + $0x38] sm:$0xfe] %v1213_v41  ;;  %v1060_v50 = vadd.f32 %v1059_v0, %v1011_v40  ;;  %v1108_v34 = vpop.f32.mrf.mxu1  ;;  %v1503_v57 = vrot.slane %v1385_v45, 1  ;;  %v1016_v0 = vadd.f32 %v5138_v18, %v5108_v9 }
 0x179   : > { %2586 = vmatmul.bf16.vlgmr.msra.gmra.mxu2 %v5153_v39 }
 0x17a   : > { %v1109_v2 = vadd.f32 %v1108_v34, %v1060_v50  ;;  %v1504_v3 = vsel %vm1494_vm2, %v1499_v42, %v1503_v57  ;;  %v1396_v57 = vld [vmem:[#allocation3 + $0xb0] sm:$0x1]  ;;  %v1023_v46 = vpop.f32.mrf.mxu3 }
 0x17b   : > { %v5164_v52 = vpack.c.bf16 %v1504_v3, %v1500_v58  ;;  %v1531_v12 = vrot.slane %v1396_v57, 1 }
 0x17c   : > { %v5166_v8 = vpop.f32.mrf.mxu2  ;;  %v1148_v49 = vmax.f32 %v1109_v2, 0.0 }
 0x17d   : > { %5945 = vst [vmem:[#allocation21_spill] sm:$0xff] %v5164_v52  ;;  %2537 = vmatmul.bf16.vlgmr.msra.gmra.mxu1 %v5164_v52 }
 0x17e   : > { %v1216_v13 = vrot.slane %v1148_v49, 7  ;;  %v1526_v49 = vrot.slane %v5063_v19, 1 }
 0x17f   : > { %v1062_v15 = vpop.f32.mrf.mxu0  ;;  %v1355_v22 = vld [vmem:[#allocation3 + $0x38] sm:$0xff] }
 0x180   : > { %v5175_v29 = vsel %vm1205_vm1, %v1213_v41, %v1216_v13  ;;  %1313 = vst [vmem:[#allocation3 + $0x58] sm:$0x1] %v1216_v13  ;;  %v1063_v48 = vadd.f32 %v1062_v15, %v1014_v17  ;;  %v1111_v35 = vpop.f32.mrf.mxu1  ;;  %v1387_v40 = vld [vmem:[#allocation3 + $0x38] sm:$0xfe]  ;;  %v4047_v41 = vor.u32 %v4319_v5, %v4046_v51  ;;  %v1525_v13 = vrot.slane %v1394_v6, 1 }
 0x181   : > { %v5180_v54 = vpack.c.bf16 %v5175_v29, %v1355_v22  ;;  %v1509_v50 = vrot.slane %v5175_v29, 1  ;;  %v1508_v34 = vrot.slane %v1387_v40, 1  ;;  %v1019_v15 = vadd.f32 %v5159_v43, %v5108_v9  ;;  %v1422_v22 = vld [vmem:[#allocation3 + $0x60] sm:$0xfc] }
 0x182   : > { %v1112_v60 = vadd.f32 %v1111_v35, %v1063_v48  ;;  %2498 = vmatmul.bf16.gmra.mxu0 %v5177_v24  ;;  %2629 = vmatpush.bf16.msra.mxu3 %v4047_v41  ;;  %v1532_v23 = vsel %vm1494_vm2, %v1526_v49, %v1531_v12  ;;  %v1666_v35 = vrot.slane %v1424_v14, 2  ;;  %v1660_v5 = vrot.slane %v1422_v22, 2 }
 0x183   : > { %2444 = vmatmul.bf16.gmra.mxu3 %v5180_v54  ;;  %v1510_v17 = vsel %vm1494_vm2, %v1508_v34, %v1509_v50  ;;  %v1661_v40 = vrot.slane %v5051_v55, 2  ;;  %v1021_v6 = vadd.f32 %v1020_v28, %v5108_v9 }
 0x184   : > { %v5184_v37 = vpop.f32.mrf.mxu2  ;;  %v1150_v42 = vmax.f32 %v1112_v60, 0.0  ;;  %v1527_v60 = vsel %vm1494_vm2, %v1525_v13, %v1526_v49  ;;  %v1025_v13 = vpop.f32.mrf.mxu3 }
 0x185   : > { %v5210_v36 = vpack.c.bf16 %v1532_v23, %v1527_v60  ;;  %v1667_v57 = vsel %vm1639_vm3, %v1661_v40, %v1666_v35  ;;  %v1398_v23 = vld [vmem:[#allocation3 + $0xc0] sm:$0xfe]  ;;  %v1536_v60 = vrot.slane %v5074_v62, 1 }
 0x186   : > { %v1219_v45 = vrot.slane %v1150_v42, 7 }
 0x187   : > { %v1064_v59 = vpop.f32.mrf.mxu0  ;;  %v1389_v61 = vld [vmem:[#allocation3 + $0x58] sm:$0x1] }
 0x188   : > { %1315 = vst [vmem:[#allocation3 + $0x68] sm:$0xfe] %v1219_v45  ;;  %v1065_v2 = vadd.f32 %v1064_v59, %v1016_v0  ;;  %v1113_v58 = vpop.f32.mrf.mxu1  ;;  %v1513_v3 = vrot.slane %v1389_v61, 1  ;;  %v4317_v59 = vld [vmem:[#allocation10 + $0x2c4] sm:$0xf0] }
 0x189   : > { %2591 = vmatmul.bf16.gmra.mxu2 %v5188_v44  ;;  %v4014_v44 = vld [vmem:[#allocation10 + $0x290] sm:$0xf] }
 0x18a   : > { %v1114_v53 = vadd.f32 %v1113_v58, %v1065_v2  ;;  %v1514_v18 = vsel %vm1494_vm2, %v1509_v50, %v1513_v3  ;;  %v4038_v50 = vld [vmem:[#allocation10 + $0x2c0] sm:$0xf]  ;;  %v1662_v58 = vsel %vm1639_vm3, %v1660_v5, %v1661_v40  ;;  %v1535_v40 = vrot.slane %v1398_v23, 1  ;;  %v4315_v23 = vld [vmem:[#allocation10 + $0x2b4] sm:$0xf0] }
 0x18b   : > { %v5197_v10 = vpack.c.bf16 %v1514_v18, %v1510_v17  ;;  %v5221_v3 = vpack.c.bf16 %v1667_v57, %v1662_v58  ;;  %v1400_v18 = vld [vmem:[#allocation3 + $0xe0] sm:$0x1]  ;;  %v1426_v57 = vld [vmem:[#allocation3 + $0x90] sm:$0xfc] }
 0x18c   : > { %v5199_v26 = vpop.f32.mrf.mxu2  ;;  %v1152_v16 = vmax.f32 %v1114_v53, 0.0  ;;  %v1537_v58 = vsel %vm1494_vm2, %v1535_v40, %v1536_v60 }
 0x18d   : > { %5947 = vst [vmem:[#allocation23_spill] sm:$0xff] %v5197_v10  ;;  %2542 = vmatmul.bf16.gmra.mxu1 %v5197_v10 }
 0x18e   : > { %v1222_v48 = vrot.slane %v1152_v16, 7  ;;  %5948 = vst [vmem:[#allocation24_spill] sm:$0xff] %v5221_v3 }
 0x18f   : > { %v1067_v51 = vpop.f32.mrf.mxu0  ;;  %v1359_v7 = vld [vmem:[#allocation3 + $0x68] sm:$0xff] }
 0x190   : > { %v5208_v41 = vsel %vm1205_vm1, %v1219_v45, %v1222_v48  ;;  %1319 = vst [vmem:[#allocation3 + $0x88] sm:$0x1] %v1222_v48  ;;  %v1068_v43 = vadd.f32 %v1067_v51, %v1019_v15  ;;  %v1116_v42 = vpop.f32.mrf.mxu1  ;;  %v1391_v55 = vld [vmem:[#allocation3 + $0x68] sm:$0xfe]  ;;  %v4039_v45 = vor.u32 %v4317_v59, %v4038_v50  ;;  %v1541_v48 = vrot.slane %v1400_v18, 1 }
 0x191   : > { %v5213_v0 = vpack.c.bf16 %v5208_v41, %v1359_v7  ;;  %v1519_v53 = vrot.slane %v5208_v41, 1  ;;  %v1518_v17 = vrot.slane %v1391_v55, 1 }
 0x192   : > { %v1117_v34 = vadd.f32 %v1116_v42, %v1068_v43  ;;  %2503 = vmatmul.bf16.gmra.mxu0 %v5210_v36  ;;  %2630 = vmatpush.bf16.msra.mxu3 %v4039_v45  ;;  %v1428_v43 = vld [vmem:[#allocation3 + $0xb0] sm:$0x3]  ;;  %v1024_v42 = vadd.f32 %v1023_v46, %v5108_v9  ;;  %v1671_v45 = vrot.slane %v5063_v19, 2 }
 0x193   : > { %2449 = vmatmul.bf16.gmra.mxu3 %v5213_v0  ;;  %v1520_v51 = vsel %vm1494_vm2, %v1518_v17, %v1519_v53  ;;  %v1676_v55 = vrot.slane %v1428_v43, 2  ;;  %v4242_v43 = vld [vmem:[#allocation10 + $0x74] sm:$0xf] }
 0x194   : > { %v5217_v61 = vpop.f32.mrf.mxu2  ;;  %v1154_v2 = vmax.f32 %v1117_v34, 0.0  ;;  %v1542_v34 = vsel %vm1494_vm2, %v1536_v60, %v1541_v48  ;;  %v1026_v60 = vadd.f32 %v1025_v13, %v5108_v9  ;;  %v1402_v13 = vld [vmem:[#allocation3 + $0xf0] sm:$0xfe] }
 0x195   : > { %v5241_v18 = vpack.c.bf16 %v1542_v34, %v1537_v58  ;;  %v1677_v19 = vsel %vm1639_vm3, %v1671_v45, %v1676_v55 }
 0x196   : > { %v1225_v12 = vrot.slane %v1154_v2, 7 }
 0x197   : > { %v1069_v49 = vpop.f32.mrf.mxu0  ;;  %v1393_v14 = vld [vmem:[#allocation3 + $0x88] sm:$0x1] }
 0x198   : > { %1321 = vst [vmem:[#allocation3 + $0x98] sm:$0xfe] %v1225_v12  ;;  %v1070_v15 = vadd.f32 %v1069_v49, %v1021_v6  ;;  %v1118_v16 = vpop.f32.mrf.mxu1  ;;  %v1523_v22 = vrot.slane %v1393_v14, 1  ;;  %v1670_v49 = vrot.slane %v1426_v57, 2  ;;  %v1028_v14 = vpop.f32.mrf.mxu3 }
 0x199   : > { %2596 = vmatmul.bf16.gmra.mxu2 %v5221_v3  ;;  %v1436_v3 = vld [vmem:[#allocation3 + $0x110] sm:$0x3] }
 0x19a   : > { %v1119_v35 = vadd.f32 %v1118_v16, %v1070_v15  ;;  %v1524_v28 = vsel %vm1494_vm2, %v1519_v53, %v1523_v22  ;;  %v4030_v16 = vld [vmem:[#allocation10 + $0x2b0] sm:$0xf] }
 0x19b   : > { %v5229_v7 = vpack.c.bf16 %v1524_v28, %v1520_v51  ;;  %v1672_v28 = vsel %vm1639_vm3, %v1670_v49, %v1671_v45  ;;  %v4240_v49 = vld [vmem:[#allocation10 + $0x64] sm:$0xf] }
 0x19c   : > { %v5231_v5 = vpop.f32.mrf.mxu2  ;;  %v1156_v50 = vmax.f32 %v1119_v35, 0.0  ;;  %v4031_v35 = vor.u32 %v4315_v23, %v4030_v16  ;;  %v5253_v40 = vpack.c.bf16 %v1677_v19, %v1672_v28  ;;  %v3736_v16 = vld [vmem:[#allocation10 + $0x68] sm:$0xf0] }
 0x19d   : > { %5949 = vst [vmem:[#allocation25_spill] sm:$0xff] %v5229_v7  ;;  %2547 = vmatmul.bf16.gmra.mxu1 %v5229_v7 }
 0x19e   : > { %v1228_v59 = vrot.slane %v1156_v50, 7  ;;  %5950 = vst [vmem:[#allocation26_spill] sm:$0xff] %v5253_v40  ;;  %2631 = vmatpush.bf16.msra.mxu3 %v4031_v35  ;;  %v1546_v35 = vrot.slane %v5087_v47, 1 }
 0x19f   : > { %v1072_v2 = vpop.f32.mrf.mxu0  ;;  %v1363_v6 = vld [vmem:[#allocation3 + $0x98] sm:$0xff] }
 0x1a0   : > { %v5239_v53 = vsel %vm1205_vm1, %v1225_v12, %v1228_v59  ;;  %1325 = vst [vmem:[#allocation3 + $0xb8] sm:$0x1] %v1228_v59  ;;  %v1073_v17 = vadd.f32 %v1072_v2, %v1024_v42  ;;  %v1121_v46 = vpop.f32.mrf.mxu1  ;;  %v1395_v12 = vld [vmem:[#allocation3 + $0x98] sm:$0xfe]  ;;  %v1404_v59 = vld [vmem:[#allocation3 + $0x110] sm:$0x1] }
 0x1a1   : > { %v5244_v15 = vpack.c.bf16 %v5239_v53, %v1363_v6  ;;  %v3744_v42 = vld [vmem:[#allocation10 + $0x78] sm:$0xf0]  ;;  %v1529_v34 = vrot.slane %v5239_v53, 1  ;;  %v1528_v57 = vrot.slane %v1395_v12, 1  ;;  %v1551_v45 = vrot.slane %v1404_v59, 1 }
 0x1a2   : > { %v1122_v22 = vadd.f32 %v1121_v46, %v1073_v17  ;;  %2508 = vmatmul.bf16.gmra.mxu0 %v5241_v18  ;;  %v3747_v55 = vor.u32 %v4242_v43, %v3744_v42  ;;  %v3739_v12 = vor.u32 %v4240_v49, %v3736_v16  ;;  %v1545_v43 = vrot.slane %v1402_v13, 1  ;;  %v1432_v42 = vld [vmem:[#allocation3 + $0xe0] sm:$0x3] }
 0x1a3   : > { %2454 = vmatmul.bf16.gmra.mxu3 %v5244_v15  ;;  %v1530_v19 = vsel %vm1494_vm2, %v1528_v57, %v1529_v34  ;;  %v1552_v57 = vsel %vm1494_vm2, %v1546_v35, %v1551_v45  ;;  %v1681_v49 = vrot.slane %v5074_v62, 2 }
 0x1a4   : > { %v5248_v48 = vpop.f32.mrf.mxu2  ;;  %v1158_v51 = vmax.f32 %v1122_v22, 0.0  ;;  %2676 = vmatpush.bf16.msrb.mxu0 %v3747_v55  ;;  %v1029_v55 = vadd.f32 %v1028_v14, %v5108_v9  ;;  %v1547_v13 = vsel %vm1494_vm2, %v1545_v43, %v1546_v35  ;;  %v4313_v35 = vld [vmem:[#allocation10 + $0x2a4] sm:$0xf0]  ;;  %v4236_v43 = vld [vmem:[#allocation10 + $0x44] sm:$0xf] }
 0x1a6   : > { %v1231_v50 = vrot.slane %v1158_v51, 7  ;;  %v1030_v51 = vpop.f32.mrf.mxu3 }
 0x1a7   : > { %v1074_v2 = vpop.f32.mrf.mxu0  ;;  %v1397_v58 = vld [vmem:[#allocation3 + $0xb8] sm:$0x1] }
 0x1a8   : > { %1327 = vst [vmem:[#allocation3 + $0xc8] sm:$0xfe] %v1231_v50  ;;  %v1075_v6 = vadd.f32 %v1074_v2, %v1026_v60  ;;  %v1123_v17 = vpop.f32.mrf.mxu1  ;;  %v1533_v46 = vrot.slane %v1397_v58, 1  ;;  %2677 = vmatpush.bf16.msrb.mxu0 %v3739_v12  ;;  %v1430_v2 = vld [vmem:[#allocation3 + $0xc0] sm:$0xfc]  ;;  %v5272_v12 = vpack.c.bf16 %v1552_v57, %v1547_v13 }
 0x1a9   : > { %2601 = vmatmul.bf16.gmra.mxu2 %v5253_v40  ;;  %v3728_v58 = vld [vmem:[#allocation10 + $0x58] sm:$0xf0]  ;;  %v1680_v45 = vrot.slane %v1430_v2, 2 }
 0x1aa   : > { %v1124_v22 = vadd.f32 %v1123_v17, %v1075_v6  ;;  %v1534_v23 = vsel %vm1494_vm2, %v1529_v34, %v1533_v46  ;;  %v4238_v34 = vld [vmem:[#allocation10 + $0x54] sm:$0xf]  ;;  %v1686_v17 = vrot.slane %v1432_v42, 2  ;;  %5952 = vst [vmem:[#allocation28_spill] sm:$0xff] %v5272_v12  ;;  %v4022_v42 = vld [vmem:[#allocation10 + $0x2a0] sm:$0xf] }
 0x1ab   : > { %v5260_v28 = vpack.c.bf16 %v1534_v23, %v1530_v19  ;;  %v3731_v46 = vor.u32 %v4238_v34, %v3728_v58  ;;  %v4023_v57 = vor.u32 %v4313_v35, %v4022_v42  ;;  %v1408_v40 = vld [vmem:[#allocation3 + $0x140] sm:$0x1] }
 0x1ac   : > { %v5262_v60 = vpop.f32.mrf.mxu2  ;;  %v1160_v59 = vmax.f32 %v1124_v22, 0.0  ;;  %v1687_v62 = vsel %vm1639_vm3, %v1681_v49, %v1686_v17  ;;  %v4234_v17 = vld [vmem:[#allocation10 + $0x34] sm:$0xf] }
 0x1ad   : > { %5951 = vst [vmem:[#allocation27_spill] sm:$0xff] %v5260_v28  ;;  %2552 = vmatmul.bf16.gmra.mxu1 %v5260_v28  ;;  %2678 = vmatpush.bf16.msrb.mxu0 %v3731_v46  ;;  %v1682_v46 = vsel %vm1639_vm3, %v1680_v45, %v1681_v49 }
 0x1ae   : > { %v1234_v6 = vrot.slane %v1160_v59, 7  ;;  %v1033_v13 = vpop.f32.mrf.mxu3  ;;  %2632 = vmatpush.bf16.msra.mxu3 %v4023_v57 }
 0x1af   : > { %v1077_v16 = vpop.f32.mrf.mxu0  ;;  %v1367_v19 = vld [vmem:[#allocation3 + $0xc8] sm:$0xff] }
 0x1b0   : > { %v5270_v14 = vsel %vm1205_vm1, %v1231_v50, %v1234_v6  ;;  %1331 = vst [vmem:[#allocation3 + $0xe8] sm:$0x1] %v1234_v6  ;;  %v1078_v22 = vadd.f32 %v1077_v16, %v1029_v55  ;;  %v1126_v23 = vpop.f32.mrf.mxu1  ;;  %v3720_v50 = vld [vmem:[#allocation10 + $0x48] sm:$0xf0]  ;;  %v1031_v16 = vadd.f32 %v1030_v51, %v5108_v9  ;;  %v1406_v51 = vld [vmem:[#allocation3 + $0x120] sm:$0xfe] }
 0x1b1   : > { %v5275_v59 = vpack.c.bf16 %v5270_v14, %v1367_v19  ;;  %v1399_v55 = vld [vmem:[#allocation3 + $0xc8] sm:$0xfe]  ;;  %v3723_v2 = vor.u32 %v4236_v43, %v3720_v50  ;;  %v5284_v19 = vpack.c.bf16 %v1687_v62, %v1682_v46  ;;  %v1539_v28 = vrot.slane %v5270_v14, 1  ;;  %v4274_v46 = vld [vmem:[#allocation10 + $0x174] sm:$0xf] }
 0x1b2   : > { %v1127_v34 = vadd.f32 %v1126_v23, %v1078_v22  ;;  %2513 = vmatmul.bf16.gmra.mxu0 %v5272_v12  ;;  %v3712_v22 = vld [vmem:[#allocation10 + $0x38] sm:$0xf0]  ;;  %v1538_v7 = vrot.slane %v1399_v55, 1  ;;  %v1561_v62 = vrot.slane %v1408_v40, 1  ;;  %v4232_v43 = vld [vmem:[#allocation10 + $0x24] sm:$0xf] }
 0x1b3   : > { %2459 = vmatmul.bf16.gmra.mxu3 %v5275_v59  ;;  %5953 = vst [vmem:[#allocation29_spill] sm:$0xff] %v5284_v19  ;;  %2679 = vmatpush.bf16.msrb.mxu0 %v3723_v2  ;;  %v3715_v10 = vor.u32 %v4234_v17, %v3712_v22  ;;  %v3704_v50 = vld [vmem:[#allocation10 + $0x28] sm:$0xf0]  ;;  %v3872_v17 = vld [vmem:[#allocation10 + $0x178] sm:$0xf0]  ;;  %v1556_v22 = vrot.slane %v5102_v21, 1 }
 0x1b4   : > { %v5279_v58 = vpop.f32.mrf.mxu2  ;;  %v1162_v6 = vmax.f32 %v1127_v34, 0.0  ;;  %v1540_v2 = vsel %vm1494_vm2, %v1538_v7, %v1539_v28  ;;  %v4254_v12 = vld [vmem:[#allocation10 + $0xd4] sm:$0xf] }
 0x1b5   : > { %v1562_v7 = vsel %vm1494_vm2, %v1556_v22, %v1561_v62 }
 0x1b6   : > { %v1237_v23 = vrot.slane %v1162_v6, 7  ;;  %v3707_v6 = vor.u32 %v4232_v43, %v3704_v50  ;;  %v4272_v50 = vld [vmem:[#allocation10 + $0x164] sm:$0xf] }
 0x1b7   : > { %v1079_v42 = vpop.f32.mrf.mxu0  ;;  %v1401_v35 = vld [vmem:[#allocation3 + $0xe8] sm:$0x1]  ;;  %2680 = vmatpush.bf16.msrb.mxu0 %v3715_v10  ;;  %v1034_v10 = vadd.f32 %v1033_v13, %v5108_v9 }
 0x1b8   : > { %1333 = vst [vmem:[#allocation3 + $0xf8] sm:$0xfe] %v1237_v23  ;;  %v1080_v34 = vadd.f32 %v1079_v42, %v1031_v16  ;;  %v1128_v49 = vpop.f32.mrf.mxu1  ;;  %v1543_v45 = vrot.slane %v1401_v35, 1  ;;  %v1555_v35 = vrot.slane %v1406_v51, 1 }
 0x1b9   : > { %2606 = vmatmul.bf16.gmra.mxu2 %v5284_v19  ;;  %v3875_v19 = vor.u32 %v4274_v46, %v3872_v17 }
 0x1ba   : > { %v1129_v57 = vadd.f32 %v1128_v49, %v1080_v34  ;;  %v1544_v55 = vsel %vm1494_vm2, %v1539_v28, %v1543_v45  ;;  %v1434_v28 = vld [vmem:[#allocation3 + $0xf0] sm:$0xfc]  ;;  %v3696_v49 = vld [vmem:[#allocation10 + $0x18] sm:$0xf0]  ;;  %v1557_v46 = vsel %vm1494_vm2, %v1555_v35, %v1556_v22  ;;  %v4228_v35 = vld [vmem:[#allocation10 + $0x4] sm:$0xf] }
 0x1bb   : > { %v5291_v16 = vpack.c.bf16 %v1544_v55, %v1540_v2  ;;  %2681 = vmatpush.bf16.msrb.mxu0 %v3707_v6  ;;  %v4230_v34 = vld [vmem:[#allocation10 + $0x14] sm:$0xf]  ;;  %2774 = vmatpush.bf16.msrb.mxu2 %v3875_v19  ;;  %v3864_v2 = vld [vmem:[#allocation10 + $0x168] sm:$0xf0]  ;;  %v1035_v55 = vpop.f32.mrf.mxu3 }
 0x1bc   : > { %v5293_v42 = vpop.f32.mrf.mxu2  ;;  %v1164_v40 = vmax.f32 %v1129_v57, 0.0  ;;  %v3699_v43 = vor.u32 %v4230_v34, %v3696_v49  ;;  %v1696_v57 = vrot.slane %v1436_v3, 2  ;;  %v3867_v17 = vor.u32 %v4272_v50, %v3864_v2  ;;  %v4258_v22 = vld [vmem:[#allocation10 + $0xf4] sm:$0xf]  ;;  %v3808_v2 = vld [vmem:[#allocation10 + $0xf8] sm:$0xf0] }
 0x1bd   : > { %5954 = vst [vmem:[#allocation30_spill] sm:$0xff] %v5291_v16  ;;  %2557 = vmatmul.bf16.gmra.mxu1 %v5291_v16  ;;  %v1691_v16 = vrot.slane %v5087_v47, 2  ;;  %v1690_v49 = vrot.slane %v1434_v28, 2  ;;  %v4311_v47 = vld [vmem:[#allocation10 + $0x294] sm:$0xf0] }
 0x1be   : > { %v1240_v45 = vrot.slane %v1164_v40, 7  ;;  %v5303_v40 = vpack.c.bf16 %v1562_v7, %v1557_v46  ;;  %v4015_v7 = vor.u32 %v4311_v47, %v4014_v44  ;;  %v4256_v28 = vld [vmem:[#allocation10 + $0xe4] sm:$0xf]  ;;  %v3811_v46 = vor.u32 %v4258_v22, %v3808_v2 }
 0x1bf   : > { %v1082_v51 = vpop.f32.mrf.mxu0  ;;  %v1371_v13 = vld [vmem:[#allocation3 + $0xf8] sm:$0xff]  ;;  %2682 = vmatpush.bf16.msrb.mxu0 %v3699_v43  ;;  %2775 = vmatpush.bf16.msrb.mxu2 %v3867_v17  ;;  %v1692_v17 = vsel %vm1639_vm3, %v1690_v49, %v1691_v16  ;;  %v4268_v22 = vld [vmem:[#allocation10 + $0x144] sm:$0xf] }
 0x1c0   : > { %v5301_v62 = vsel %vm1205_vm1, %v1237_v23, %v1240_v45  ;;  %1337 = vst [vmem:[#allocation3 + $0x118] sm:$0x1] %v1240_v45  ;;  %v1083_v6 = vadd.f32 %v1082_v51, %v1034_v10  ;;  %v1131_v52 = vpop.f32.mrf.mxu1  ;;  %v1403_v19 = vld [vmem:[#allocation3 + $0xf8] sm:$0xfe]  ;;  %v3688_v23 = vld [vmem:[#allocation10 + $0x8] sm:$0xf0]  ;;  %v1697_v10 = vsel %vm1639_vm3, %v1691_v16, %v1696_v57  ;;  %2633 = vmatpush.bf16.msra.mxu3 %v4015_v7 }
 0x1c1   : > { %5955 = vst [vmem:[#allocation31_spill] sm:$0xff] %v5303_v40  ;;  %v5306_v34 = vpack.c.bf16 %v5301_v62, %v1371_v13  ;;  %v3691_v50 = vor.u32 %v4228_v35, %v3688_v23  ;;  %v3800_v51 = vld [vmem:[#allocation10 + $0xe8] sm:$0xf0]  ;;  %v3856_v13 = vld [vmem:[#allocation10 + $0x158] sm:$0xf0]  ;;  %v1548_v39 = vrot.slane %v1403_v19, 1  ;;  %v1036_v57 = vadd.f32 %v1035_v55, %v5108_v9  ;;  %2725 = vmatpush.bf16.msrb.mxu1 %v3811_v46 }
 0x1c2   : > { %v1132_v3 = vadd.f32 %v1131_v52, %v1083_v6  ;;  %2518 = vmatmul.bf16.gmra.mxu0 %v5303_v40  ;;  %v4270_v52 = vld [vmem:[#allocation10 + $0x154] sm:$0xf]  ;;  %v1549_v6 = vrot.slane %v5301_v62, 1  ;;  %v1412_v40 = vld [vmem:[#allocation3 + $0x170] sm:$0x1]  ;;  %v5316_v47 = vpack.c.bf16 %v1697_v10, %v1692_v17 }
 0x1c3   : > { %5956 = vst [vmem:[#allocation32_spill] sm:$0xff] %v5306_v34  ;;  %2464 = vmatmul.bf16.gmra.mxu3 %v5306_v34  ;;  %2683 = vmatpush.bf16.msrb.mxu0 %v3691_v50  ;;  %v3859_v20 = vor.u32 %v4270_v52, %v3856_v13  ;;  %v1410_v35 = vld [vmem:[#allocation3 + $0x150] sm:$0xfe]  ;;  %v3792_v19 = vld [vmem:[#allocation10 + $0xd8] sm:$0xf0]  ;;  %v1038_v10 = vpop.f32.mrf.mxu3  ;;  %v1571_v46 = vrot.slane %v1412_v40, 1 }
 0x1c4   : > { %v5309_v45 = vpop.f32.mrf.mxu2  ;;  %v1166_v43 = vmax.f32 %v1132_v3, 0.0  ;;  %5957 = vst [vmem:[#allocation33_spill] sm:$0xff] %v5316_v47  ;;  %v3803_v3 = vor.u32 %v4256_v28, %v3800_v51  ;;  %v3848_v23 = vld [vmem:[#allocation10 + $0x148] sm:$0xf0]  ;;  %v4006_v55 = vld [vmem:[#allocation10 + $0x280] sm:$0xf]  ;;  %v3795_v17 = vor.u32 %v4254_v12, %v3792_v19 }
 0x1c5   : > { %2776 = vmatpush.bf16.msrb.mxu2 %v3859_v20  ;;  %v3851_v16 = vor.u32 %v4268_v22, %v3848_v23  ;;  %v4309_v28 = vld [vmem:[#allocation10 + $0x284] sm:$0xf0]  ;;  %v1440_v13 = vld [vmem:[#allocation3 + $0x140] sm:$0x3]  ;;  %v4266_v22 = vld [vmem:[#allocation10 + $0x134] sm:$0xf] }
 0x1c6   : > { %v1243_v44 = vrot.slane %v1166_v43, 7  ;;  %v1550_v43 = vsel %vm1494_vm2, %v1548_v39, %v1549_v6  ;;  %2726 = vmatpush.bf16.msrb.mxu1 %v3803_v3  ;;  %v4007_v20 = vor.u32 %v4309_v28, %v4006_v55  ;;  %v3840_v23 = vld [vmem:[#allocation10 + $0x138] sm:$0xf0]  ;;  %v3784_v39 = vld [vmem:[#allocation10 + $0xc8] sm:$0xf0] }
 0x1c7   : > { %v1084_v2 = vpop.f32.mrf.mxu0  ;;  %v1405_v34 = vld [vmem:[#allocation3 + $0x118] sm:$0x1]  ;;  %v3843_v40 = vor.u32 %v4266_v22, %v3840_v23  ;;  %v1438_v3 = vld [vmem:[#allocation3 + $0x120] sm:$0xfc] }
 0x1c8   : > { %1339 = vst [vmem:[#allocation3 + $0x128] sm:$0xfe] %v1243_v44  ;;  %v1085_v49 = vadd.f32 %v1084_v2, %v1036_v57  ;;  %v1133_v7 = vpop.f32.mrf.mxu1  ;;  %v1553_v50 = vrot.slane %v1405_v34, 1  ;;  %v1566_v57 = vrot.slane %v5123_v31, 1  ;;  %2634 = vmatpush.bf16.msra.mxu3 %v4007_v20  ;;  %v4264_v55 = vld [vmem:[#allocation10 + $0x124] sm:$0xf] }
 0x1c9   : > { %2611 = vmatmul.bf16.gmra.mxu2 %v5316_v47  ;;  %v1565_v47 = vrot.slane %v1410_v35, 1  ;;  %v1701_v35 = vrot.slane %v5102_v21, 2 }
 0x1ca   : > { %v1134_v51 = vadd.f32 %v1133_v7, %v1085_v49  ;;  %v1554_v52 = vsel %vm1494_vm2, %v1549_v6, %v1553_v50  ;;  %2777 = vmatpush.bf16.msrb.mxu2 %v3851_v16  ;;  %v1039_v49 = vadd.f32 %v1038_v10, %v5108_v9  ;;  %v1572_v12 = vsel %vm1494_vm2, %v1566_v57, %v1571_v46  ;;  %v4250_v10 = vld [vmem:[#allocation10 + $0xb4] sm:$0xf] }
 0x1cb   : > { %v5322_v34 = vpack.c.bf16 %v1554_v52, %v1550_v43  ;;  %v1706_v7 = vrot.slane %v1440_v13, 2  ;;  %2727 = vmatpush.bf16.msrb.mxu1 %v3795_v17  ;;  %v3787_v50 = vor.u32 %v4252_v11, %v3784_v39  ;;  %v3832_v43 = vld [vmem:[#allocation10 + $0x128] sm:$0xf0]  ;;  %v1567_v16 = vsel %vm1494_vm2, %v1565_v47, %v1566_v57  ;;  %v3776_v17 = vld [vmem:[#allocation10 + $0xb8] sm:$0xf0] }
 0x1cc   : > { %v5324_v2 = vpop.f32.mrf.mxu2  ;;  %v1168_v6 = vmax.f32 %v1134_v51, 0.0  ;;  %v3835_v51 = vor.u32 %v4264_v55, %v3832_v43  ;;  %v5334_v13 = vpack.c.bf16 %v1572_v12, %v1567_v16  ;;  %v1700_v11 = vrot.slane %v1438_v3, 2  ;;  %v3768_v12 = vld [vmem:[#allocation10 + $0xa8] sm:$0xf0]  ;;  %v3824_v3 = vld [vmem:[#allocation10 + $0x118] sm:$0xf0] }
 0x1cd   : > { %5958 = vst [vmem:[#allocation34_spill] sm:$0xff] %v5322_v34  ;;  %2562 = vmatmul.bf16.gmra.mxu1 %v5322_v34  ;;  %v1707_v57 = vsel %vm1639_vm3, %v1701_v35, %v1706_v7  ;;  %v3779_v39 = vor.u32 %v4250_v10, %v3776_v17 }
 0x1ce   : > { %v1246_v19 = vrot.slane %v1168_v6, 7  ;;  %2778 = vmatpush.bf16.msrb.mxu2 %v3843_v40  ;;  %5959 = vst [vmem:[#allocation35_spill] sm:$0xff] %v5334_v13  ;;  %v1040_v40 = vpop.f32.mrf.mxu3  ;;  %v1702_v55 = vsel %vm1639_vm3, %v1700_v11, %v1701_v35 }
 0x1cf   : > { %v1087_v28 = vpop.f32.mrf.mxu0  ;;  %v1375_v52 = vld [vmem:[#allocation3 + $0x128] sm:$0xff]  ;;  %2728 = vmatpush.bf16.msrb.mxu1 %v3787_v50  ;;  %v5345_v16 = vpack.c.bf16 %v1707_v57, %v1702_v55  ;;  %v1041_v7 = vadd.f32 %v1040_v40, %v5108_v9  ;;  %v4290_v40 = vld [vmem:[#allocation10 + $0x1f4] sm:$0xf]  ;;  %v3936_v55 = vld [vmem:[#allocation10 + $0x1f8] sm:$0xf0] }
 0x1d0   : > { %v5332_v20 = vsel %vm1205_vm1, %v1243_v44, %v1246_v19  ;;  %1343 = vst [vmem:[#allocation3 + $0x148] sm:$0x1] %v1246_v19  ;;  %v1088_v46 = vadd.f32 %v1087_v28, %v1039_v49  ;;  %v1136_v22 = vpop.f32.mrf.mxu1  ;;  %v1407_v47 = vld [vmem:[#allocation3 + $0x128] sm:$0xfe]  ;;  %v4262_v44 = vld [vmem:[#allocation10 + $0x114] sm:$0xf] }
 0x1d1   : > { %v5337_v23 = vpack.c.bf16 %v5332_v20, %v1375_v52  ;;  %v4248_v49 = vld [vmem:[#allocation10 + $0xa4] sm:$0xf]  ;;  %v3827_v43 = vor.u32 %v4262_v44, %v3824_v3  ;;  %v1558_v28 = vrot.slane %v1407_v47, 1  ;;  %v1559_v52 = vrot.slane %v5332_v20, 1 }
 0x1d2   : > { %v1137_v21 = vadd.f32 %v1136_v22, %v1088_v46  ;;  %2523 = vmatmul.bf16.gmra.mxu0 %v5334_v13  ;;  %2779 = vmatpush.bf16.msrb.mxu2 %v3835_v51  ;;  %v3771_v10 = vor.u32 %v4248_v49, %v3768_v12  ;;  %v4260_v46 = vld [vmem:[#allocation10 + $0x104] sm:$0xf]  ;;  %v3816_v22 = vld [vmem:[#allocation10 + $0x108] sm:$0xf0]  ;;  %v4246_v51 = vld [vmem:[#allocation10 + $0x94] sm:$0xf] }
 0x1d3   : > { %2469 = vmatmul.bf16.gmra.mxu3 %v5337_v23  ;;  %2729 = vmatpush.bf16.msrb.mxu1 %v3779_v39  ;;  %v3760_v13 = vld [vmem:[#allocation10 + $0x98] sm:$0xf0]  ;;  %v1560_v57 = vsel %vm1494_vm2, %v1558_v28, %v1559_v52  ;;  %v4244_v3 = vld [vmem:[#allocation10 + $0x84] sm:$0xf]  ;;  %v1442_v28 = vld [vmem:[#allocation3 + $0x150] sm:$0xfc] }
 0x1d4   : > { %v5341_v6 = vpop.f32.mrf.mxu2  ;;  %v1170_v19 = vmax.f32 %v1137_v21, 0.0  ;;  %v3819_v21 = vor.u32 %v4260_v46, %v3816_v22  ;;  %v3763_v44 = vor.u32 %v4246_v51, %v3760_v13  ;;  %v1711_v51 = vrot.slane %v5123_v31, 2 }
 0x1d6   : > { %v1249_v50 = vrot.slane %v1170_v19, 7  ;;  %2780 = vmatpush.bf16.msrb.mxu2 %v3827_v43  ;;  %v3752_v19 = vld [vmem:[#allocation10 + $0x88] sm:$0xf0] }
 0x1d7   : > { %v1089_v17 = vpop.f32.mrf.mxu0  ;;  %v1409_v34 = vld [vmem:[#allocation3 + $0x148] sm:$0x1]  ;;  %2730 = vmatpush.bf16.msrb.mxu1 %v3771_v10  ;;  %v1444_v43 = vld [vmem:[#allocation3 + $0x170] sm:$0x3] }
 0x1d8   : > { %1345 = vst [vmem:[#allocation3 + $0x158] sm:$0xfe] %v1249_v50  ;;  %v1090_v35 = vadd.f32 %v1089_v17, %v1041_v7  ;;  %v1563_v11 = vrot.slane %v1409_v34, 1  ;;  %v1138_v47 = vpop.f32.mrf.mxu1  ;;  %v3939_v7 = vor.u32 %v4290_v40, %v3936_v55  ;;  %v1716_v22 = vrot.slane %v1444_v43, 2 }
 0x1d9   : > { %2616 = vmatmul.bf16.gmra.mxu2 %v5345_v16 }
 0x1da   : > { %v1139_v9 = vadd.f32 %v1138_v47, %v1090_v35  ;;  %v1564_v39 = vsel %vm1494_vm2, %v1559_v52, %v1563_v11  ;;  %2781 = vmatpush.bf16.msrb.mxu2 %v3819_v21  ;;  %v3755_v52 = vor.u32 %v4244_v3, %v3752_v19  ;;  %2823 = vmatpush.bf16.msrb.mxu3 %v3939_v7  ;;  %v1710_v35 = vrot.slane %v1442_v28, 2  ;;  %v1417_v3 = vld [vmem:[#allocation3 + $0x28] sm:$0x3] }
 0x1db   : > { %v5352_v49 = vpack.c.bf16 %v1564_v39, %v1560_v57  ;;  %2731 = vmatpush.bf16.msrb.mxu1 %v3763_v44  ;;  %v1648_v43 = vrot.slane %v1417_v3, 2  ;;  %v4288_v7 = vld [vmem:[#allocation10 + $0x1e4] sm:$0xf] }
 0x1dc   : > { %v5354_v12 = vpop.f32.mrf.mxu2  ;;  %v1172_v34 = vmax.f32 %v1139_v9, 0.0  ;;  %v1717_v9 = vsel %vm1639_vm3, %v1711_v51, %v1716_v22  ;;  %v1644_v22 = vrot.slane %v5142_v27, 2 }
 0x1dd   : > { %2567 = vmatmul.bf16.gmra.mxu1 %v5352_v49 }
 0x1de   : > { %v1252_v46 = vrot.slane %v1172_v34, 7 }
 0x1df   : > { %v2489_v13 = vpop.f32.mrf.mxu0  ;;  %v1379_v10 = vld [vmem:[#allocation3 + $0x158] sm:$0xff]  ;;  %2732 = vmatpush.bf16.msrb.mxu1 %v3755_v52 }
 0x1e0   : > { %v5358_v17 = vsel %vm1205_vm1, %v1249_v50, %v1252_v46  ;;  %1349 = vst [vmem:[#allocation3 + $0x178] sm:$0x1] %v1252_v46  ;;  %v1411_v47 = vld [vmem:[#allocation3 + $0x158] sm:$0xfe]  ;;  %v1712_v50 = vsel %vm1639_vm3, %v1710_v35, %v1711_v51  ;;  %v3928_v46 = vld [vmem:[#allocation10 + $0x1e8] sm:$0xf0] }
 0x1e1   : > { %v5362_v21 = vpack.c.bf16 %v5358_v17, %v1379_v10  ;;  %v1569_v57 = vrot.slane %v5358_v17, 1  ;;  %v1568_v39 = vrot.slane %v1411_v47, 1  ;;  %v5371_v31 = vpack.c.bf16 %v1717_v9, %v1712_v50  ;;  %v5385_v35 = vld [vmem:[%s5909_s4] sm:$0x3] }
 0x1e2   : > { %2684 = vmatmul.bf16.vlgmr.msrb.gmra.mxu0 %v5030_v63  ;;  %v1415_v63 = vld [vmem:[#allocation3 + $0x8] sm:$0xfc]  ;;  %v3931_v10 = vor.u32 %v4288_v7, %v3928_v46  ;;  %v1649_v47 = vsel %vm1639_vm3, %v1644_v22, %v1648_v43  ;;  %v1419_v43 = vld [vmem:[#allocation3 + $0x38] sm:$0xfc] }
 0x1e3   : > { %2474 = vmatmul.bf16.gmra.mxu3 %v5362_v21  ;;  %v1570_v55 = vsel %vm1494_vm2, %v1568_v39, %v1569_v57  ;;  %v1643_v51 = vrot.slane %v1415_v63, 2 }
 0x1e4   : > { %v5365_v11 = vpop.f32.mrf.mxu2  ;;  %2824 = vmatpush.bf16.msrb.mxu3 %v3931_v10  ;;  %v4286_v10 = vld [vmem:[#allocation10 + $0x1d4] sm:$0xf] }
 0x1e5   : > { %v1645_v50 = vsel %vm1639_vm3, %v1643_v51, %v1644_v22  ;;  %v3920_v22 = vld [vmem:[#allocation10 + $0x1d8] sm:$0xf0] }
 0x1e6   : > { %v5392_v39 = vpack.c.bf16 %v1649_v47, %v1645_v50  ;;  %v3923_v47 = vor.u32 %v4286_v10, %v3920_v22  ;;  %v1654_v50 = vrot.slane %v5175_v29, 2 }
 0x1e7   : > { %v2491_v44 = vpop.f32.mrf.mxu0  ;;  %v1413_v40 = vld [vmem:[#allocation3 + $0x178] sm:$0x1] }
 0x1e8   : > { %v1573_v19 = vrot.slane %v1413_v40, 1  ;;  %2825 = vmatpush.bf16.msrb.mxu3 %v3923_v47 }
 0x1e9   : > { %2621 = vmatmul.bf16.gmra.mxu2 %v5371_v31 }
 0x1ea   : > { %v1574_v34 = vsel %vm1494_vm2, %v1569_v57, %v1573_v19  ;;  %v5390_v57 = vperm.slane %v5385_v35, 0 }
 0x1eb   : > { %v5376_v28 = vpack.c.bf16 %v1574_v34, %v1570_v55  ;;  %v1421_v55 = vld [vmem:[#allocation3 + $0x58] sm:$0x3] }
 0x1ec   : > { %v5378_v52 = vpop.f32.mrf.mxu2  ;;  %v2392_v40 = vadd.f32 %v5166_v8, %v5390_v57  ;;  %v1658_v46 = vrot.slane %v1421_v55, 2  ;;  %v2394_v8 = vadd.f32 %v5184_v37, %v5390_v57 }
 0x1ed   : > { %5960 = vst [vmem:[#allocation36_spill] sm:$0xff] %v5376_v28  ;;  %2572 = vmatmul.bf16.gmra.mxu1 %v5376_v28  ;;  %v1653_v28 = vrot.slane %v1419_v43, 2 }
 0x1ef   : > { %v2494_v9 = vpop.f32.mrf.mxu0  ;;  %v1655_v55 = vsel %vm1639_vm3, %v1653_v28, %v1654_v50  ;;  %v1423_v28 = vld [vmem:[#allocation3 + $0x68] sm:$0xfc] }
 0x1f2   : > { %2689 = vmatmul.bf16.gmra.mxu0 %v5042_v32 }
 0x1f3   : > { %2635 = vmatmul.bf16.vlgmr.msra.gmra.mxu3 %v5392_v39 }
 0x1f4   : > { %v5395_v27 = vpop.f32.mrf.mxu2 }
 0x1f6   : > { %v2440_v3 = vpop.f32.mrf.mxu3 }
 0x1f7   : > { %v2496_v19 = vpop.f32.mrf.mxu0  ;;  %v2441_v63 = vadd.f32 %v2440_v3, %v2392_v40 }
 0x1f9   : > { %2782 = vmatmul.bf16.vlgmr.msrb.gmra.mxu2 %v5119_v25  ;;  %v2490_v34 = vadd.f32 %v2489_v13, %v2441_v63  ;;  %v1659_v13 = vsel %vm1639_vm3, %v1654_v50, %v1658_v46  ;;  %v4284_v50 = vld [vmem:[#allocation10 + $0x1c4] sm:$0xf] }
 0x1fa   : > { %v2538_v7 = vpop.f32.mrf.mxu1 }
 0x1fb   : > { %v2539_v32 = vadd.f32 %v2538_v7, %v2490_v34  ;;  %v5409_v7 = vpack.c.bf16 %v1659_v13, %v1655_v55  ;;  %v1664_v55 = vrot.slane %v5208_v41, 2 }
 0x1fc   : > { %v2587_v51 = vpop.f32.mrf.mxu2 }
 0x1fd   : > { %2733 = vmatmul.bf16.vlgmr.msrb.gmra.mxu1 %v5147_v33  ;;  %v5405_v40 = vadd.f32 %v2587_v51, %v2539_v32  ;;  %v2397_v33 = vadd.f32 %v5199_v26, %v5390_v57  ;;  %v1425_v51 = vld [vmem:[#allocation3 + $0x88] sm:$0x3]  ;;  %v1663_v26 = vrot.slane %v1423_v28, 2 }
 0x1fe   : > { %v2442_v25 = vpop.f32.mrf.mxu3 }
 0x1ff   : > { %v2499_v3 = vpop.f32.mrf.mxu0  ;;  %v2443_v63 = vadd.f32 %v2442_v25, %v2394_v8  ;;  %v3912_v8 = vld [vmem:[#allocation10 + $0x1c8] sm:$0xf0] }
 0x201   : > { %v2492_v34 = vadd.f32 %v2491_v44, %v2443_v63  ;;  %v3915_v63 = vor.u32 %v4284_v50, %v3912_v8  ;;  %v1429_v50 = vld [vmem:[#allocation3 + $0xb8] sm:$0x3]  ;;  %v1427_v8 = vld [vmem:[#allocation3 + $0x98] sm:$0xfc] }
 0x202   : > { %2694 = vmatmul.bf16.gmra.mxu0 %v5054_v56  ;;  %v2540_v29 = vpop.f32.mrf.mxu1  ;;  %v1668_v56 = vrot.slane %v1425_v51, 2 }
 0x203   : > { %v2541_v43 = vadd.f32 %v2540_v29, %v2492_v34  ;;  %2640 = vmatmul.bf16.gmra.mxu3 %v5409_v7  ;;  %v2399_v34 = vadd.f32 %v5217_v61, %v5390_v57 }
 0x204   : > { %v2589_v37 = vpop.f32.mrf.mxu2  ;;  %2826 = vmatpush.bf16.msrb.mxu3 %v3915_v63  ;;  %v3904_v63 = vld [vmem:[#allocation10 + $0x1b8] sm:$0xf0] }
 0x205   : > { %v5415_v10 = vadd.f32 %v2589_v37, %v2541_v43 }
 0x206   : > { %v2445_v46 = vpop.f32.mrf.mxu3 }
 0x207   : > { %v2501_v22 = vpop.f32.mrf.mxu0  ;;  %v2446_v32 = vadd.f32 %v2445_v46, %v2397_v33  ;;  %v1665_v33 = vsel %vm1639_vm3, %v1663_v26, %v1664_v55 }
 0x209   : > { %2787 = vmatmul.bf16.gmra.mxu2 %v5144_v4  ;;  %v2495_v44 = vadd.f32 %v2494_v9, %v2446_v32  ;;  %v1669_v9 = vsel %vm1639_vm3, %v1664_v55, %v1668_v56 }
 0x20a   : > { %v2543_v47 = vpop.f32.mrf.mxu1  ;;  %v5426_v32 = vpack.c.bf16 %v1669_v9, %v1665_v33  ;;  %v2404_v9 = vadd.f32 %v5248_v48, %v5390_v57  ;;  %v4306_v48 = vld [vmem:[#allocation10 + $0x274] sm:$0xf] }
 0x20b   : > { %v2544_v25 = vadd.f32 %v2543_v47, %v2495_v44 }
 0x20c   : > { %v2592_v13 = vpop.f32.mrf.mxu2 }
 0x20d   : > { %2738 = vmatmul.bf16.gmra.mxu1 %v5180_v54  ;;  %v5422_v29 = vadd.f32 %v2592_v13, %v2544_v25  ;;  %v2402_v54 = vadd.f32 %v5231_v5, %v5390_v57  ;;  %v1678_v25 = vrot.slane %v1429_v50, 2  ;;  %v4282_v13 = vld [vmem:[#allocation10 + $0x1b4] sm:$0xf]  ;;  %v1674_v5 = vrot.slane %v5239_v53, 2 }
 0x20e   : > { %v2447_v4 = vpop.f32.mrf.mxu3  ;;  %v2407_v50 = vadd.f32 %v5262_v60, %v5390_v57  ;;  %v3896_v60 = vld [vmem:[#allocation10 + $0x1a8] sm:$0xf0] }
 0x20f   : > { %v2504_v43 = vpop.f32.mrf.mxu0  ;;  %v2448_v37 = vadd.f32 %v2447_v4, %v2399_v34  ;;  %v3907_v34 = vor.u32 %v4282_v13, %v3904_v63  ;;  %v1673_v4 = vrot.slane %v1427_v8, 2  ;;  %v3992_v13 = vld [vmem:[#allocation10 + $0x268] sm:$0xf0] }
 0x211   : > { %v2497_v46 = vadd.f32 %v2496_v19, %v2448_v37  ;;  %2827 = vmatpush.bf16.msrb.mxu3 %v3907_v34 }
 0x212   : > { %2699 = vmatmul.bf16.gmra.mxu0 %v5066_v30  ;;  %v2545_v41 = vpop.f32.mrf.mxu1 }
 0x213   : > { %v2546_v51 = vadd.f32 %v2545_v41, %v2497_v46  ;;  %2645 = vmatmul.bf16.gmra.mxu3 %v5426_v32  ;;  %v1675_v41 = vsel %vm1639_vm3, %v1673_v4, %v1674_v5  ;;  %v4280_v4 = vld [vmem:[#allocation10 + $0x1a4] sm:$0xf] }
 0x214   : > { %v2594_v61 = vpop.f32.mrf.mxu2 }
 0x215   : > { %v5432_v44 = vadd.f32 %v2594_v61, %v2546_v51 }
 0x216   : > { %v2450_v28 = vpop.f32.mrf.mxu3 }
 0x217   : > { %v5434_v47 = vpop.f32.mrf.mxu0  ;;  %v2451_v56 = vadd.f32 %v2450_v28, %v2402_v54  ;;  %v4000_v54 = vld [vmem:[#allocation10 + $0x278] sm:$0xf0] }
 0x219   : > { %2792 = vmatmul.bf16.gmra.mxu2 %v5177_v24  ;;  %v2500_v19 = vadd.f32 %v2499_v3, %v2451_v56  ;;  %v1679_v3 = vsel %vm1639_vm3, %v1674_v5, %v1678_v25  ;;  %v4003_v56 = vor.u32 %v4306_v48, %v4000_v54 }
 0x21a   : > { %v2548_v30 = vpop.f32.mrf.mxu1  ;;  %v5447_v61 = vpack.c.bf16 %v1679_v3, %v1675_v41  ;;  %v3984_v41 = vld [vmem:[#allocation10 + $0x258] sm:$0xf0] }
 0x21b   : > { %v2549_v55 = vadd.f32 %v2548_v30, %v2500_v19  ;;  %2872 = vmatpush.bf16.msra.mxu0 %v4003_v56 }
 0x21c   : > { %v2597_v26 = vpop.f32.mrf.mxu2 }
 0x21d   : > { %2743 = vmatmul.bf16.gmra.mxu1 %v5213_v0  ;;  %v5441_v37 = vadd.f32 %v2597_v26, %v2549_v55  ;;  %v1431_v26 = vld [vmem:[#allocation3 + $0xc8] sm:$0xfc] }
 0x21e   : > { %v2452_v24 = vpop.f32.mrf.mxu3 }
 0x21f   : > { %v5444_v33 = vpop.f32.mrf.mxu0  ;;  %v2453_v46 = vadd.f32 %v2452_v24, %v2404_v9  ;;  %v4302_v9 = vld [vmem:[#allocation10 + $0x254] sm:$0xf] }
 0x220   : > { %v3987_v48 = vor.u32 %v4302_v9, %v3984_v41  ;;  %v1435_v41 = vld [vmem:[#allocation3 + $0xf8] sm:$0xfc] }
 0x221   : > { %v2502_v51 = vadd.f32 %v2501_v22, %v2453_v46  ;;  %v1433_v22 = vld [vmem:[#allocation3 + $0xe8] sm:$0x3]  ;;  %v3899_v46 = vor.u32 %v4280_v4, %v3896_v60 }
 0x222   : > { %2704 = vmatmul.bf16.gmra.mxu0 %v5077_v1  ;;  %v2550_v53 = vpop.f32.mrf.mxu1  ;;  %v4304_v1 = vld [vmem:[#allocation10 + $0x264] sm:$0xf]  ;;  %v1688_v34 = vrot.slane %v1433_v22, 2 }
 0x223   : > { %v2551_v0 = vadd.f32 %v2550_v53, %v2502_v51  ;;  %2650 = vmatmul.bf16.gmra.mxu3 %v5447_v61  ;;  %v3995_v63 = vor.u32 %v4304_v1, %v3992_v13  ;;  %v1684_v51 = vrot.slane %v5270_v14, 2  ;;  %v1683_v53 = vrot.slane %v1431_v26, 2  ;;  %v4298_v1 = vld [vmem:[#allocation10 + $0x234] sm:$0xf]  ;;  %v3968_v13 = vld [vmem:[#allocation10 + $0x238] sm:$0xf0] }
 0x224   : > { %v2599_v28 = vpop.f32.mrf.mxu2  ;;  %2828 = vmatpush.bf16.msrb.mxu3 %v3899_v46  ;;  %v3971_v26 = vor.u32 %v4298_v1, %v3968_v13 }
 0x225   : > { %v5453_v19 = vadd.f32 %v2599_v28, %v2551_v0  ;;  %2873 = vmatpush.bf16.msra.mxu0 %v3995_v63  ;;  %v1689_v0 = vsel %vm1639_vm3, %v1684_v51, %v1688_v34  ;;  %v1685_v14 = vsel %vm1639_vm3, %v1683_v53, %v1684_v51  ;;  %v2412_v34 = vadd.f32 %v5293_v42, %v5390_v57  ;;  %v3888_v42 = vld [vmem:[#allocation10 + $0x198] sm:$0xf0] }
 0x226   : > { %v2455_v8 = vpop.f32.mrf.mxu3 }
 0x227   : > { %v5455_v30 = vpop.f32.mrf.mxu0  ;;  %v2456_v25 = vadd.f32 %v2455_v8, %v2407_v50  ;;  %v4300_v50 = vld [vmem:[#allocation10 + $0x244] sm:$0xf]  ;;  %v3976_v8 = vld [vmem:[#allocation10 + $0x248] sm:$0xf0] }
 0x228   : > { %v3979_v22 = vor.u32 %v4300_v50, %v3976_v8  ;;  %v3952_v50 = vld [vmem:[#allocation10 + $0x218] sm:$0xf0]  ;;  %v4158_v8 = vld [vmem:[#allocation12 + $0x70] sm:$0xf] }
 0x229   : > { %2797 = vmatmul.bf16.gmra.mxu2 %v5210_v36  ;;  %v2505_v55 = vadd.f32 %v2504_v43, %v2456_v25  ;;  %v2409_v36 = vadd.f32 %v5279_v58, %v5390_v57  ;;  %2874 = vmatpush.bf16.msra.mxu0 %v3987_v48  ;;  %v5469_v58 = vpack.c.bf16 %v1689_v0, %v1685_v14  ;;  %v4278_v48 = vld [vmem:[#allocation10 + $0x194] sm:$0xf]  ;;  %v4339_v14 = vld [vmem:[#allocation12 + $0x74] sm:$0xf0] }
 0x22a   : > { %v2553_v5 = vpop.f32.mrf.mxu1 }
 0x22b   : > { %v2554_v24 = vadd.f32 %v2553_v5, %v2505_v55 }
 0x22c   : > { %v2602_v3 = vpop.f32.mrf.mxu2 }
 0x22d   : > { %2748 = vmatmul.bf16.gmra.mxu1 %v5244_v15  ;;  %v5462_v43 = vadd.f32 %v2602_v3, %v2554_v24  ;;  %2875 = vmatpush.bf16.msra.mxu0 %v3979_v22  ;;  %v3960_v24 = vld [vmem:[#allocation10 + $0x228] sm:$0xf0]  ;;  %v1694_v22 = vrot.slane %v5301_v62, 2 }
 0x22e   : > { %v2457_v54 = vpop.f32.mrf.mxu3 }
 0x22f   : > { %v5465_v28 = vpop.f32.mrf.mxu0  ;;  %v2458_v56 = vadd.f32 %v2457_v54, %v2409_v36  ;;  %v4294_v36 = vld [vmem:[#allocation10 + $0x214] sm:$0xf] }
 0x231   : > { %v2507_v25 = vadd.f32 %v5434_v47, %v2458_v56  ;;  %v1437_v47 = vld [vmem:[#allocation3 + $0x118] sm:$0x3]  ;;  %2876 = vmatpush.bf16.msra.mxu0 %v3971_v26  ;;  %v3891_v56 = vor.u32 %v4278_v48, %v3888_v42  ;;  %v4337_v26 = vld [vmem:[#allocation12 + $0x64] sm:$0xf0]  ;;  %v4320_v48 = vld [vmem:[#allocation10 + $0x2e4] sm:$0xf] }
 0x232   : > { %2709 = vmatmul.bf16.gmra.mxu0 %v5090_v38  ;;  %v2555_v15 = vpop.f32.mrf.mxu1  ;;  %v4296_v38 = vld [vmem:[#allocation10 + $0x224] sm:$0xf]  ;;  %v1698_v51 = vrot.slane %v1437_v47, 2  ;;  %v4056_v42 = vld [vmem:[#allocation10 + $0x2e8] sm:$0xf0] }
 0x233   : > { %v2556_v63 = vadd.f32 %v2555_v15, %v2507_v25  ;;  %2655 = vmatmul.bf16.gmra.mxu3 %v5469_v58  ;;  %v3963_v3 = vor.u32 %v4296_v38, %v3960_v24  ;;  %v1693_v25 = vrot.slane %v1435_v41, 2  ;;  %v4159_v15 = vor.u32 %v4339_v14, %v4158_v8  ;;  %v4322_v38 = vld [vmem:[#allocation10 + $0x2f4] sm:$0xf]  ;;  %v5961_v41 = vld [vmem:[#allocation18_spill] sm:$0xff] }
 0x234   : > { %v2604_v55 = vpop.f32.mrf.mxu2  ;;  %2829 = vmatpush.bf16.msrb.mxu3 %v3891_v56  ;;  %v4335_v56 = vld [vmem:[#allocation12 + $0x54] sm:$0xf0]  ;;  %v2417_v8 = vadd.f32 %v5324_v2, %v5390_v57 }
 0x235   : > { %v5475_v5 = vadd.f32 %v2604_v55, %v2556_v63  ;;  %2877 = vmatpush.bf16.msra.mxu0 %v3963_v3  ;;  %v1699_v63 = vsel %vm1639_vm3, %v1694_v22, %v1698_v51  ;;  %3114 = vmatpush.bf16.msra.mxu2 %v4159_v15  ;;  %v4150_v55 = vld [vmem:[#allocation12 + $0x60] sm:$0xf]  ;;  %v1695_v47 = vsel %vm1639_vm3, %v1693_v25, %v1694_v22  ;;  %v1441_v25 = vld [vmem:[#allocation3 + $0x148] sm:$0x3]  ;;  %v4333_v15 = vld [vmem:[#allocation12 + $0x44] sm:$0xf0] }
 0x236   : > { %v2460_v4 = vpop.f32.mrf.mxu3  ;;  %v5492_v24 = vpack.c.bf16 %v1699_v63, %v1695_v47  ;;  %v1439_v47 = vld [vmem:[#allocation3 + $0x128] sm:$0xfc]  ;;  %v1708_v2 = vrot.slane %v1441_v25, 2  ;;  %v4118_v25 = vld [vmem:[#allocation12 + $0x20] sm:$0xf] }
 0x237   : > { %v5477_v60 = vpop.f32.mrf.mxu0  ;;  %v2461_v9 = vadd.f32 %v2460_v4, %v2412_v34  ;;  %v4151_v4 = vor.u32 %v4337_v26, %v4150_v55  ;;  %v5962_v55 = vld [vmem:[#allocation28_spill] sm:$0xff] }
 0x238   : > { %v4318_v26 = vld [vmem:[#allocation10 + $0x2d4] sm:$0xf] }
 0x239   : > { %2802 = vmatmul.bf16.gmra.mxu2 %v5241_v18  ;;  %v2510_v46 = vadd.f32 %v5444_v33, %v2461_v9  ;;  %v3955_v18 = vor.u32 %v4294_v36, %v3952_v50  ;;  %v2414_v33 = vadd.f32 %v5309_v45, %v5390_v57  ;;  %v4292_v9 = vld [vmem:[#allocation10 + $0x204] sm:$0xf]  ;;  %v3944_v45 = vld [vmem:[#allocation10 + $0x208] sm:$0xf0]  ;;  %v4142_v36 = vld [vmem:[#allocation12 + $0x50] sm:$0xf] }
 0x23a   : > { %v2558_v53 = vpop.f32.mrf.mxu1  ;;  %v3947_v3 = vor.u32 %v4292_v9, %v3944_v45  ;;  %3115 = vmatpush.bf16.msra.mxu2 %v4151_v4  ;;  %v4143_v50 = vor.u32 %v4335_v56, %v4142_v36  ;;  %v1704_v36 = vrot.slane %v5332_v20, 2  ;;  %v2419_v56 = vadd.f32 %v5341_v6, %v5390_v57  ;;  %v4032_v6 = vld [vmem:[#allocation10 + $0x2b8] sm:$0xf0] }
 0x23b   : > { %v2559_v54 = vadd.f32 %v2558_v53, %v2510_v46  ;;  %2878 = vmatpush.bf16.msra.mxu0 %v3955_v18  ;;  %v4064_v46 = vld [vmem:[#allocation10 + $0x2f8] sm:$0xf0]  ;;  %v4134_v18 = vld [vmem:[#allocation12 + $0x40] sm:$0xf] }
 0x23c   : > { %v2607_v0 = vpop.f32.mrf.mxu2  ;;  %v4067_v53 = vor.u32 %v4322_v38, %v4064_v46  ;;  %v4135_v63 = vor.u32 %v4333_v15, %v4134_v18  ;;  %v4276_v38 = vld [vmem:[#allocation10 + $0x184] sm:$0xf]  ;;  %v4329_v18 = vld [vmem:[#allocation12 + $0x24] sm:$0xf0] }
 0x23d   : > { %2753 = vmatmul.bf16.gmra.mxu1 %v5275_v59  ;;  %v5485_v1 = vadd.f32 %v2607_v0, %v2559_v54 }
 0x23e   : > { %v2462_v13 = vpop.f32.mrf.mxu3  ;;  %2921 = vmatpush.bf16.msra.mxu1 %v4067_v53  ;;  %3116 = vmatpush.bf16.msra.mxu2 %v4143_v50  ;;  %v4040_v53 = vld [vmem:[#allocation10 + $0x2c8] sm:$0xf0] }
 0x23f   : > { %v5488_v34 = vpop.f32.mrf.mxu0  ;;  %v2463_v62 = vadd.f32 %v2462_v13, %v2414_v33  ;;  %2879 = vmatpush.bf16.msra.mxu0 %v3947_v3  ;;  %v4316_v3 = vld [vmem:[#allocation10 + $0x2c4] sm:$0xf] }
 0x241   : > { %v2512_v59 = vadd.f32 %v5455_v30, %v2463_v62  ;;  %v4059_v30 = vor.u32 %v4320_v48, %v4056_v42  ;;  %v4048_v62 = vld [vmem:[#allocation10 + $0x2d8] sm:$0xf0]  ;;  %v4126_v48 = vld [vmem:[#allocation12 + $0x30] sm:$0xf]  ;;  %v4331_v42 = vld [vmem:[#allocation12 + $0x34] sm:$0xf0] }
 0x242   : > { %2714 = vmatmul.bf16.gmra.mxu0 %v5961_v41  ;;  %v2560_v51 = vpop.f32.mrf.mxu1  ;;  %v4051_v9 = vor.u32 %v4318_v26, %v4048_v62  ;;  %3117 = vmatpush.bf16.msra.mxu2 %v4135_v63 }
 0x243   : > { %v2561_v54 = vadd.f32 %v2560_v51, %v2512_v59  ;;  %2660 = vmatmul.bf16.gmra.mxu3 %v5492_v24  ;;  %2922 = vmatpush.bf16.msra.mxu1 %v4059_v30  ;;  %v3880_v59 = vld [vmem:[#allocation10 + $0x188] sm:$0xf0]  ;;  %v5963_v30 = vld [vmem:[#allocation32_spill] sm:$0xff] }
 0x244   : > { %v2609_v0 = vpop.f32.mrf.mxu2  ;;  %v3883_v51 = vor.u32 %v4276_v38, %v3880_v59  ;;  %v4110_v38 = vld [vmem:[#allocation12 + $0x10] sm:$0xf] }
 0x245   : > { %v5498_v14 = vadd.f32 %v2609_v0, %v2561_v54  ;;  %v1703_v54 = vrot.slane %v1439_v47, 2  ;;  %v4043_v0 = vor.u32 %v4316_v3, %v4040_v53  ;;  %v5964_v47 = vld [vmem:[#allocation19_spill] sm:$0xff] }
 0x246   : > { %v2465_v22 = vpop.f32.mrf.mxu3  ;;  %2830 = vmatpush.bf16.msrb.mxu3 %v3883_v51 }
 0x247   : > { %v5500_v33 = vpop.f32.mrf.mxu0  ;;  %v2466_v13 = vadd.f32 %v2465_v22, %v2417_v8  ;;  %2923 = vmatpush.bf16.msra.mxu1 %v4051_v9  ;;  %v1709_v22 = vsel %vm1639_vm3, %v1704_v36, %v1708_v2  ;;  %v1705_v63 = vsel %vm1639_vm3, %v1703_v54, %v1704_v36  ;;  %v4312_v9 = vld [vmem:[#allocation10 + $0x2a4] sm:$0xf]  ;;  %v4325_v36 = vld [vmem:[#allocation12 + $0x4] sm:$0xf0] }
 0x248   : > { %v5515_v62 = vpack.c.bf16 %v1709_v22, %v1705_v63  ;;  %v4016_v22 = vld [vmem:[#allocation10 + $0x298] sm:$0xf0] }
 0x249   : > { %2807 = vmatmul.bf16.gmra.mxu2 %v5962_v55  ;;  %v2515_v4 = vadd.f32 %v5465_v28, %v2466_v13  ;;  %v4127_v28 = vor.u32 %v4331_v42, %v4126_v48  ;;  %v4119_v13 = vor.u32 %v4329_v18, %v4118_v25  ;;  %v4314_v55 = vld [vmem:[#allocation10 + $0x2b4] sm:$0xf]  ;;  %v4102_v42 = vld [vmem:[#allocation12] sm:$0xf]  ;;  %v1443_v18 = vld [vmem:[#allocation3 + $0x158] sm:$0xfc] }
 0x24a   : > { %v2563_v45 = vpop.f32.mrf.mxu1 }
 0x24b   : > { %v2564_v46 = vadd.f32 %v2563_v45, %v2515_v4  ;;  %3118 = vmatpush.bf16.msra.mxu2 %v4127_v28  ;;  %2924 = vmatpush.bf16.msra.mxu1 %v4043_v0  ;;  %v4035_v4 = vor.u32 %v4314_v55, %v4032_v6  ;;  %v4024_v45 = vld [vmem:[#allocation10 + $0x2a8] sm:$0xf0]  ;;  %v1445_v28 = vld [vmem:[#allocation3 + $0x178] sm:$0x3]  ;;  %v4308_v6 = vld [vmem:[#allocation10 + $0x284] sm:$0xf] }
 0x24c   : > { %v2612_v41 = vpop.f32.mrf.mxu2 }
 0x24d   : > { %2758 = vmatmul.bf16.gmra.mxu1 %v5963_v30  ;;  %v5508_v50 = vadd.f32 %v2612_v41, %v2564_v46  ;;  %v4327_v46 = vld [vmem:[#allocation12 + $0x14] sm:$0xf0]  ;;  %v4027_v41 = vor.u32 %v4312_v9, %v4024_v45  ;;  %v5965_v30 = vld [vmem:[#allocation31_spill] sm:$0xff]  ;;  %v4160_v45 = vld [vmem:[#allocation12 + $0x78] sm:$0xf0] }
 0x24e   : > { %v2467_v8 = vpop.f32.mrf.mxu3  ;;  %v4111_v51 = vor.u32 %v4327_v46, %v4110_v38  ;;  %v2424_v38 = vadd.f32 %v5365_v11, %v5390_v57 }
 0x24f   : > { %v5511_v15 = vpop.f32.mrf.mxu0  ;;  %v2468_v20 = vadd.f32 %v2467_v8, %v2419_v56  ;;  %3119 = vmatpush.bf16.msra.mxu2 %v4119_v13  ;;  %2925 = vmatpush.bf16.msra.mxu1 %v4035_v4  ;;  %v4103_v56 = vor.u32 %v4325_v36, %v4102_v42  ;;  %v4310_v8 = vld [vmem:[#allocation10 + $0x294] sm:$0xf]  ;;  %v1718_v13 = vrot.slane %v1445_v28, 2 }
 0x250   : > { %v4338_v4 = vld [vmem:[#allocation12 + $0x74] sm:$0xf] }
 0x251   : > { %v2517_v26 = vadd.f32 %v5477_v60, %v2468_v20  ;;  %v2422_v60 = vadd.f32 %v5354_v12, %v5390_v57  ;;  %v4019_v20 = vor.u32 %v4310_v8, %v4016_v22  ;;  %v5966_v42 = vld [vmem:[#allocation20_spill] sm:$0xff]  ;;  %v5967_v22 = vld [vmem:[#allocation35_spill] sm:$0xff] }
 0x252   : > { %2719 = vmatmul.bf16.gmra.mxu0 %v5964_v47  ;;  %v2565_v2 = vpop.f32.mrf.mxu1  ;;  %v1714_v47 = vrot.slane %v5358_v17, 2 }
 0x253   : > { %v2566_v59 = vadd.f32 %v2565_v2, %v2517_v26  ;;  %2665 = vmatmul.bf16.gmra.mxu3 %v5515_v62  ;;  %3120 = vmatpush.bf16.msra.mxu2 %v4111_v51  ;;  %v4008_v26 = vld [vmem:[#allocation10 + $0x288] sm:$0xf0]  ;;  %v1713_v2 = vrot.slane %v1443_v18, 2 }
 0x254   : > { %v2614_v3 = vpop.f32.mrf.mxu2  ;;  %2926 = vmatpush.bf16.msra.mxu1 %v4027_v41  ;;  %v4011_v9 = vor.u32 %v4308_v6, %v4008_v26  ;;  %v1719_v46 = vsel %vm1639_vm3, %v1714_v47, %v1718_v13  ;;  %v4152_v13 = vld [vmem:[#allocation12 + $0x68] sm:$0xf0] }
 0x255   : > { %v5521_v53 = vadd.f32 %v2614_v3, %v2566_v59  ;;  %v4163_v59 = vor.u32 %v4338_v4, %v4160_v45  ;;  %v1715_v17 = vsel %vm1639_vm3, %v1713_v2, %v1714_v47 }
 0x256   : > { %v2470_v48 = vpop.f32.mrf.mxu3 }
 0x257   : > { %v2526_v54 = vpop.f32.mrf.mxu0  ;;  %v2471_v0 = vadd.f32 %v2470_v48, %v2422_v60  ;;  %3121 = vmatpush.bf16.msra.mxu2 %v4103_v56  ;;  %3163 = vmatpush.bf16.msra.mxu3 %v4163_v59  ;;  %v5534_v48 = vpack.c.bf16 %v1719_v46, %v1715_v17  ;;  %v5552_v59 = vld [vmem:[%s4831_s1] sm:$0xff] }
 0x258   : > { %2927 = vmatpush.bf16.msra.mxu1 %v4019_v20 }
 0x259   : > { %2812 = vmatmul.bf16.gmra.mxu2 %v5965_v30  ;;  %v2520_v25 = vadd.f32 %v5488_v34, %v2471_v0  ;;  %v2427_v0 = vadd.f32 %v5378_v52, %v5390_v57 }
 0x25a   : > { %v2568_v12 = vpop.f32.mrf.mxu1 }
 0x25b   : > { %v2569_v63 = vadd.f32 %v2568_v12, %v2520_v25  ;;  %v4336_v12 = vld [vmem:[#allocation12 + $0x64] sm:$0xf] }
 0x25c   : > { %v2617_v55 = vpop.f32.mrf.mxu2  ;;  %2928 = vmatpush.bf16.msra.mxu1 %v4011_v9 }
 0x25d   : > { %2763 = vmatmul.bf16.gmra.mxu1 %v5337_v23  ;;  %v5529_v34 = vadd.f32 %v2617_v55, %v2569_v63  ;;  %v4155_v63 = vor.u32 %v4336_v12, %v4152_v13  ;;  %v2429_v55 = vadd.f32 %v5395_v27, %v5390_v57  ;;  %v5555_v57 = vperm.slane %v5385_v35, 1 }
 0x25e   : > { %v2472_v3 = vpop.f32.mrf.mxu3 }
 0x25f   : > { %v2685_v41 = vpop.f32.mrf.mxu0  ;;  %v2473_v51 = vadd.f32 %v2472_v3, %v2424_v38  ;;  %3164 = vmatpush.bf16.msra.mxu3 %v4155_v63  ;;  %v5969_v38 = vld [vmem:[#allocation21_spill] sm:$0xff] }
 0x261   : > { %v2522_v60 = vadd.f32 %v5500_v33, %v2473_v51 }
 0x262   : > { %2880 = vmatmul.bf16.vlgmr.msra.gmra.mxu0 %v5966_v42  ;;  %v2570_v11 = vpop.f32.mrf.mxu1  ;;  %v4334_v42 = vld [vmem:[#allocation12 + $0x54] sm:$0xf] }
 0x263   : > { %v2571_v23 = vadd.f32 %v2570_v11, %v2522_v60  ;;  %2670 = vmatmul.bf16.gmra.mxu3 %v5534_v48  ;;  %v4144_v11 = vld [vmem:[#allocation12 + $0x58] sm:$0xf0] }
 0x264   : > { %v2619_v36 = vpop.f32.mrf.mxu2 }
 0x265   : > { %v5540_v28 = vadd.f32 %v2619_v36, %v2571_v23  ;;  %v4147_v23 = vor.u32 %v4334_v42, %v4144_v11 }
 0x266   : > { %v2475_v56 = vpop.f32.mrf.mxu3 }
 0x267   : > { %v2687_v30 = vpop.f32.mrf.mxu0  ;;  %v2476_v8 = vadd.f32 %v2475_v56, %v2427_v0  ;;  %3165 = vmatpush.bf16.msra.mxu3 %v4147_v23 }
 0x268   : > { %v2688_v56 = vadd.f32 %v2687_v30, %v5555_v57 }
 0x269   : > { %2817 = vmatmul.bf16.gmra.mxu2 %v5967_v22  ;;  %v2525_v33 = vadd.f32 %v5511_v15, %v2476_v8  ;;  %v5968_v15 = vld [vmem:[#allocation22_spill] sm:$0xff] }
 0x26a   : > { %v2573_v25 = vpop.f32.mrf.mxu1 }
 0x26b   : > { %v2574_v18 = vadd.f32 %v2573_v25, %v2525_v33  ;;  %v5971_v25 = vld [vmem:[#allocation23_spill] sm:$0xff] }
 0x26c   : > { %v2622_v20 = vpop.f32.mrf.mxu2 }
 0x26d   : > { %2768 = vmatmul.bf16.gmra.mxu1 %v5362_v21  ;;  %v5547_v52 = vadd.f32 %v2622_v20, %v2574_v18  ;;  %v5574_v18 = vld [vmem:[%s4831_s1 + $0x8] sm:$0xff] }
 0x26e   : > { %v2477_v6 = vpop.f32.mrf.mxu3 }
 0x26f   : > { %v2690_v26 = vpop.f32.mrf.mxu0  ;;  %v2478_v4 = vadd.f32 %v2477_v6, %v2429_v55  ;;  %v4332_v6 = vld [vmem:[#allocation12 + $0x44] sm:$0xf] }
 0x271   : > { %v2527_v47 = vadd.f32 %v2526_v54, %v2478_v4  ;;  %v2686_v54 = vadd.f32 %v2685_v41, %v5555_v57  ;;  %v5970_v41 = vld [vmem:[#allocation24_spill] sm:$0xff]  ;;  %v4136_v4 = vld [vmem:[#allocation12 + $0x48] sm:$0xf0] }
 0x272   : > { %2885 = vmatmul.bf16.gmra.mxu0 %v5968_v15  ;;  %v2575_v2 = vpop.f32.mrf.mxu1 }
 0x273   : > { %v2576_v9 = vadd.f32 %v2575_v2, %v2527_v47  ;;  %2831 = vmatmul.bf16.vlgmr.msrb.gmra.mxu3 %v5969_v38  ;;  %v4139_v47 = vor.u32 %v4332_v6, %v4136_v4 }
 0x274   : > { %v2624_v45 = vpop.f32.mrf.mxu2 }
 0x275   : > { %v5557_v21 = vadd.f32 %v2624_v45, %v2576_v9  ;;  %3166 = vmatpush.bf16.msra.mxu3 %v4139_v47 }
 0x276   : > { %v2636_v27 = vpop.f32.mrf.mxu3 }
 0x277   : > { %v2692_v3 = vpop.f32.mrf.mxu0  ;;  %v5560_v46 = vadd.f32 %v2636_v27, %v5405_v40 }
 0x278   : > { %v2693_v9 = vadd.f32 %v2692_v3, %v5555_v57 }
 0x279   : > { %3122 = vmatmul.bf16.vlgmr.msra.gmra.mxu2 %v5552_v59 }
 0x27a   : > { %v2734_v51 = vpop.f32.mrf.mxu1 }
 0x27b   : > { %v2735_v17 = vadd.f32 %v2734_v51, %v2686_v54  ;;  %v5973_v54 = vld [vmem:[#allocation25_spill] sm:$0xff] }
 0x27c   : > { %v2783_v60 = vpop.f32.mrf.mxu2 }
 0x27d   : > { %2929 = vmatmul.bf16.vlgmr.msra.gmra.mxu1 %v5392_v39  ;;  %v5565_v35 = vadd.f32 %v2783_v60, %v2735_v17  ;;  %v5593_v17 = vld [vmem:[%s4831_s1 + $0x10] sm:$0xff] }
 0x27e   : > { %v2638_v36 = vpop.f32.mrf.mxu3 }
 0x27f   : > { %v5568_v40 = vadd.f32 %v2638_v36, %v5415_v10  ;;  %v2695_v0 = vpop.f32.mrf.mxu0  ;;  %v2691_v10 = vadd.f32 %v2690_v26, %v5555_v57  ;;  %v5972_v26 = vld [vmem:[#allocation26_spill] sm:$0xff]  ;;  %v4330_v36 = vld [vmem:[#allocation12 + $0x34] sm:$0xf] }
 0x282   : > { %2890 = vmatmul.bf16.gmra.mxu0 %v5970_v41  ;;  %v2736_v8 = vpop.f32.mrf.mxu1 }
 0x283   : > { %v2737_v22 = vadd.f32 %v2736_v8, %v2688_v56  ;;  %2836 = vmatmul.bf16.gmra.mxu3 %v5971_v25  ;;  %v4128_v56 = vld [vmem:[#allocation12 + $0x38] sm:$0xf0] }
 0x284   : > { %v2785_v33 = vpop.f32.mrf.mxu2  ;;  %v4131_v41 = vor.u32 %v4330_v36, %v4128_v56  ;;  %v5977_v36 = vld [vmem:[#allocation30_spill] sm:$0xff] }
 0x285   : > { %v5576_v39 = vadd.f32 %v2785_v33, %v2737_v22  ;;  %v5631_v56 = vld [vmem:[%s4831_s1 + $0x20] sm:$0xff] }
 0x286   : > { %v2641_v20 = vpop.f32.mrf.mxu3  ;;  %3167 = vmatpush.bf16.msra.mxu3 %v4131_v41 }
 0x287   : > { %v5579_v12 = vadd.f32 %v2641_v20, %v5422_v29  ;;  %v2697_v30 = vpop.f32.mrf.mxu0 }
 0x288   : > { %v2698_v25 = vadd.f32 %v2697_v30, %v5555_v57 }
 0x289   : > { %3127 = vmatmul.bf16.gmra.mxu2 %v5574_v18 }
 0x28a   : > { %v2739_v13 = vpop.f32.mrf.mxu1 }
 0x28b   : > { %v2740_v63 = vadd.f32 %v2739_v13, %v2691_v10 }
 0x28c   : > { %v2788_v55 = vpop.f32.mrf.mxu2 }
 0x28d   : > { %2934 = vmatmul.bf16.gmra.mxu1 %v5409_v7  ;;  %v5584_v15 = vadd.f32 %v2788_v55, %v2740_v63  ;;  %v5975_v63 = vld [vmem:[#allocation27_spill] sm:$0xff]  ;;  %v5612_v55 = vld [vmem:[%s4831_s1 + $0x18] sm:$0xff] }
 0x28e   : > { %v2643_v2 = vpop.f32.mrf.mxu3 }
 0x28f   : > { %v5587_v29 = vadd.f32 %v2643_v2, %v5432_v44  ;;  %v2700_v51 = vpop.f32.mrf.mxu0  ;;  %v2696_v44 = vadd.f32 %v2695_v0, %v5555_v57  ;;  %v5974_v0 = vld [vmem:[#allocation29_spill] sm:$0xff] }
 0x292   : > { %2895 = vmatmul.bf16.gmra.mxu0 %v5972_v26  ;;  %v2741_v45 = vpop.f32.mrf.mxu1  ;;  %v4328_v26 = vld [vmem:[#allocation12 + $0x24] sm:$0xf] }
 0x293   : > { %v2742_v38 = vadd.f32 %v2741_v45, %v2693_v9  ;;  %2841 = vmatmul.bf16.gmra.mxu3 %v5973_v54  ;;  %v4120_v45 = vld [vmem:[#allocation12 + $0x28] sm:$0xf0] }
 0x294   : > { %v2790_v27 = vpop.f32.mrf.mxu2 }
 0x295   : > { %v5595_v7 = vadd.f32 %v2790_v27, %v2742_v38  ;;  %v4123_v38 = vor.u32 %v4328_v26, %v4120_v45  ;;  %v5978_v26 = vld [vmem:[#allocation34_spill] sm:$0xff] }
 0x296   : > { %v2646_v60 = vpop.f32.mrf.mxu3  ;;  %v5650_v45 = vld [vmem:[%s4831_s1 + $0x28] sm:$0xff] }
 0x297   : > { %v5598_v42 = vadd.f32 %v2646_v60, %v5441_v37  ;;  %v2702_v22 = vpop.f32.mrf.mxu0  ;;  %3168 = vmatpush.bf16.msra.mxu3 %v4123_v38 }
 0x298   : > { %v2703_v60 = vadd.f32 %v2702_v22, %v5555_v57 }
 0x299   : > { %3132 = vmatmul.bf16.gmra.mxu2 %v5593_v17 }
 0x29a   : > { %v2744_v3 = vpop.f32.mrf.mxu1 }
 0x29b   : > { %v2745_v11 = vadd.f32 %v2744_v3, %v2696_v44 }
 0x29c   : > { %v2793_v23 = vpop.f32.mrf.mxu2 }
 0x29d   : > { %2939 = vmatmul.bf16.gmra.mxu1 %v5426_v32  ;;  %v5603_v8 = vadd.f32 %v2793_v23, %v2745_v11 }
 0x29e   : > { %v2648_v33 = vpop.f32.mrf.mxu3 }
 0x29f   : > { %v5606_v37 = vadd.f32 %v2648_v33, %v5453_v19  ;;  %v2705_v47 = vpop.f32.mrf.mxu0  ;;  %v2701_v19 = vadd.f32 %v2700_v51, %v5555_v57  ;;  %v5976_v51 = vld [vmem:[#allocation33_spill] sm:$0xff] }
 0x2a2   : > { %2900 = vmatmul.bf16.gmra.mxu0 %v5974_v0  ;;  %v2746_v20 = vpop.f32.mrf.mxu1 }
 0x2a3   : > { %v2747_v10 = vadd.f32 %v2746_v20, %v2698_v25  ;;  %2846 = vmatmul.bf16.gmra.mxu3 %v5975_v63  ;;  %v4326_v20 = vld [vmem:[#allocation12 + $0x14] sm:$0xf] }
 0x2a4   : > { %v2795_v13 = vpop.f32.mrf.mxu2 }
 0x2a5   : > { %v5614_v32 = vadd.f32 %v2795_v13, %v2747_v10  ;;  %v4112_v10 = vld [vmem:[#allocation12 + $0x18] sm:$0xf0] }
 0x2a6   : > { %v2651_v6 = vpop.f32.mrf.mxu3  ;;  %v4115_v63 = vor.u32 %v4326_v20, %v4112_v10  ;;  %v5669_v10 = vld [vmem:[%s4831_s1 + $0x30] sm:$0xff] }
 0x2a7   : > { %v5617_v4 = vadd.f32 %v2651_v6, %v5462_v43  ;;  %v2707_v44 = vpop.f32.mrf.mxu0 }
 0x2a8   : > { %3169 = vmatpush.bf16.msra.mxu3 %v4115_v63 }
 0x2a9   : > { %3137 = vmatmul.bf16.gmra.mxu2 %v5612_v55 }
 0x2aa   : > { %v2749_v30 = vpop.f32.mrf.mxu1 }
 0x2ab   : > { %v2750_v2 = vadd.f32 %v2749_v30, %v2701_v19  ;;  %v2708_v30 = vadd.f32 %v2707_v44, %v5555_v57 }
 0x2ac   : > { %v2798_v9 = vpop.f32.mrf.mxu2 }
 0x2ad   : > { %2944 = vmatmul.bf16.gmra.mxu1 %v5447_v61  ;;  %v5622_v27 = vadd.f32 %v2798_v9, %v2750_v2 }
 0x2ae   : > { %v2653_v54 = vpop.f32.mrf.mxu3 }
 0x2af   : > { %v5625_v43 = vadd.f32 %v2653_v54, %v5475_v5  ;;  %v2706_v5 = vadd.f32 %v2705_v47, %v5555_v57  ;;  %v2710_v13 = vpop.f32.mrf.mxu0 }
 0x2b2   : > { %2905 = vmatmul.bf16.gmra.mxu0 %v5976_v51  ;;  %v2751_v3 = vpop.f32.mrf.mxu1 }
 0x2b3   : > { %v2752_v11 = vadd.f32 %v2751_v3, %v2703_v60  ;;  %2851 = vmatmul.bf16.gmra.mxu3 %v5977_v36  ;;  %v4324_v3 = vld [vmem:[#allocation12 + $0x4] sm:$0xf] }
 0x2b4   : > { %v2800_v23 = vpop.f32.mrf.mxu2 }
 0x2b5   : > { %v5633_v61 = vadd.f32 %v2800_v23, %v2752_v11  ;;  %v4104_v11 = vld [vmem:[#allocation12 + $0x8] sm:$0xf0] }
 0x2b6   : > { %v2656_v41 = vpop.f32.mrf.mxu3  ;;  %v4107_v23 = vor.u32 %v4324_v3, %v4104_v11 }
 0x2b7   : > { %v5636_v33 = vadd.f32 %v2656_v41, %v5485_v1 }
 0x2b8   : > { %3170 = vmatpush.bf16.msra.mxu3 %v4107_v23 }
 0x2b9   : > { %3142 = vmatmul.bf16.gmra.mxu2 %v5631_v56 }
 0x2ba   : > { %v2754_v22 = vpop.f32.mrf.mxu1 }
 0x2bb   : > { %v2755_v25 = vadd.f32 %v2754_v22, %v2706_v5 }
 0x2bc   : > { %v2803_v0 = vpop.f32.mrf.mxu2 }
 0x2bd   : > { %2949 = vmatmul.bf16.gmra.mxu1 %v5469_v58  ;;  %v5641_v6 = vadd.f32 %v2803_v0, %v2755_v25  ;;  %v2712_v58 = vpop.f32.mrf.mxu0 }
 0x2be   : > { %v2658_v19 = vpop.f32.mrf.mxu3  ;;  %v2713_v22 = vadd.f32 %v2712_v58, %v5555_v57 }
 0x2bf   : > { %v5644_v1 = vadd.f32 %v2658_v19, %v5498_v14  ;;  %v2711_v14 = vadd.f32 %v2710_v13, %v5555_v57 }
 0x2c2   : > { %2910 = vmatmul.bf16.gmra.mxu0 %v5345_v16  ;;  %v2756_v47 = vpop.f32.mrf.mxu1 }
 0x2c3   : > { %v2757_v2 = vadd.f32 %v2756_v47, %v2708_v30  ;;  %2856 = vmatmul.bf16.gmra.mxu3 %v5978_v26 }
 0x2c4   : > { %v2805_v9 = vpop.f32.mrf.mxu2 }
 0x2c5   : > { %v5652_v38 = vadd.f32 %v2805_v9, %v2757_v2  ;;  %v2715_v5 = vpop.f32.mrf.mxu0 }
 0x2c6   : > { %v2661_v54 = vpop.f32.mrf.mxu3 }
 0x2c7   : > { %v5655_v60 = vadd.f32 %v2661_v54, %v5508_v50 }
 0x2c9   : > { %3147 = vmatmul.bf16.gmra.mxu2 %v5650_v45 }
 0x2ca   : > { %v2759_v44 = vpop.f32.mrf.mxu1 }
 0x2cb   : > { %v2760_v16 = vadd.f32 %v2759_v44, %v2711_v14  ;;  %v5979_v14 = vld [vmem:[#allocation36_spill] sm:$0xff] }
 0x2cc   : > { %v2808_v51 = vpop.f32.mrf.mxu2 }
 0x2cd   : > { %2954 = vmatmul.bf16.gmra.mxu1 %v5492_v24  ;;  %v5660_v36 = vadd.f32 %v2808_v51, %v2760_v16  ;;  %v2717_v19 = vpop.f32.mrf.mxu0  ;;  %v5687_v16 = vld [vmem:[%s4831_s1 + $0x38] sm:$0xff]  ;;  %s4602_s1 = scalar_lea.hbm %s4601_s23, 256 }
 0x2ce   : > { %v2663_v41 = vpop.f32.mrf.mxu3  ;;  %p4603_p1 = scmp.ne.s32.totalorder %s4601_s23, %s4602_s1  ;;  %p4608_p2 = scmp.lt.s32.totalorder %s4606_s16, %s4602_s1 }
 0x2cf   : > { %v5663_v50 = vadd.f32 %v2663_v41, %v5521_v53  ;;  %v2716_v53 = vadd.f32 %v2715_v5, %v5555_v57 }
 0x2d0   : > { %p4604_p4 = pnand %p4603_p1, %p4797_p3  ;;  %p4609_p9 = por %p4608_p2, %p4607_p11 }
 0x2d2   : > { %2915 = vmatmul.bf16.gmra.mxu0 %v5371_v31  ;;  %v2761_v25 = vpop.f32.mrf.mxu1  ;;  %p4605_p8 = pneg %p4604_p4 }
 0x2d3   : > { %v2762_v0 = vadd.f32 %v2761_v25, %v2713_v22  ;;  %2861 = vmatmul.bf16.gmra.mxu3 %v5352_v49 }
 0x2d4   : > { %v2810_v20 = vpop.f32.mrf.mxu2  ;;  %p4610_p10 = pnand %p4609_p9, %p4605_p8 }
 0x2d5   : > { %v5671_v24 = vadd.f32 %v2810_v20, %v2762_v0  ;;  %v2720_v44 = vpop.f32.mrf.mxu0 }
 0x2d6   : > { %v2666_v13 = vpop.f32.mrf.mxu3 }
 0x2d7   : > { %v5674_v63 = vadd.f32 %v2666_v13, %v5529_v34  ;;  %v2718_v34 = vadd.f32 %v2717_v19, %v5555_v57 }
 0x2d9   : > { %3152 = vmatmul.bf16.gmra.mxu2 %v5669_v10 }
 0x2da   : > { %v2764_v31 = vpop.f32.mrf.mxu1 }
 0x2db   : > { %v2765_v30 = vadd.f32 %v2764_v31, %v2716_v53 }
 0x2dc   : > { %v2813_v47 = vpop.f32.mrf.mxu2 }
 0x2dd   : > { %2959 = vmatmul.bf16.gmra.mxu1 %v5515_v62  ;;  %v5679_v49 = vadd.f32 %v2813_v47, %v2765_v30  ;;  %v2722_v22 = vpop.f32.mrf.mxu0  ;;  %v5712_v30 = vld [vmem:[%s5911_s6] sm:$0x3] }
 0x2de   : > { %v2668_v2 = vpop.f32.mrf.mxu3 }
 0x2df   : > { %v5682_v9 = vadd.f32 %v2668_v2, %v5540_v28  ;;  %v2721_v28 = vadd.f32 %v2720_v44, %v5555_v57 }
 0x2e2   : > { %v2766_v26 = vpop.f32.mrf.mxu1 }
 0x2e3   : > { %v2767_v58 = vadd.f32 %v2766_v26, %v2718_v34  ;;  %2866 = vmatmul.bf16.gmra.mxu3 %v5979_v14 }
 0x2e4   : > { %v2815_v54 = vpop.f32.mrf.mxu2 }
 0x2e5   : > { %v5689_v51 = vadd.f32 %v2815_v54, %v2767_v58 }
 0x2e6   : > { %v2671_v3 = vpop.f32.mrf.mxu3 }
 0x2e7   : > { %v5692_v62 = vadd.f32 %v2671_v3, %v5547_v52  ;;  %v2723_v52 = vadd.f32 %v2722_v22, %v5555_v57 }
 0x2e9   : > { %3157 = vmatmul.bf16.gmra.mxu2 %v5687_v16 }
 0x2ea   : > { %v2769_v11 = vpop.f32.mrf.mxu1 }
 0x2eb   : > { %v2770_v23 = vadd.f32 %v2769_v11, %v2721_v28 }
 0x2ec   : > { %v2818_v41 = vpop.f32.mrf.mxu2 }
 0x2ed   : > { %2964 = vmatmul.bf16.gmra.mxu1 %v5534_v48  ;;  %v5697_v5 = vadd.f32 %v2818_v41, %v2770_v23 }
 0x2ee   : > { %v2673_v25 = vpop.f32.mrf.mxu3 }
 0x2ef   : > { %v5700_v0 = vadd.f32 %v2673_v25, %v5557_v21  ;;  %v5715_v21 = vperm.slane %v5712_v30, 0 }
 0x2f2   : > { %v2771_v20 = vpop.f32.mrf.mxu1 }
 0x2f3   : > { %v2772_v13 = vadd.f32 %v2771_v20, %v2723_v52  ;;  %3171 = vmatmul.bf16.vlgmr.msra.gmra.mxu3 %v5552_v59 }
 0x2f4   : > { %v2820_v53 = vpop.f32.mrf.mxu2 }
 0x2f5   : > { %v5704_v19 = vadd.f32 %v2820_v53, %v2772_v13 }
 0x2f6   : > { %v2832_v31 = vpop.f32.mrf.mxu3 }
 0x2f7   : > { %v5707_v48 = vadd.f32 %v2832_v31, %v5565_v35 }
 0x2fc   : > { %v3123_v57 = vpop.f32.mrf.mxu2 }
 0x2fd   : > { %v3212_v47 = vadd.f32 %v3123_v57, %v5560_v46 }
 0x2fe   : > { %v2834_v2 = vpop.f32.mrf.mxu3 }
 0x2ff   : > { %v3250_v59 = vadd.f32 %v5715_v21, %v3212_v47  ;;  %v5721_v34 = vadd.f32 %v2834_v2, %v5576_v39 }
 0x301   : > { %v3282_v35 = vmax.f32 %v3250_v59, 0.0 }
 0x303   : > { %3314 = vst [vmem:[%s5723_s22] sm:$0xff] %v3282_v35  ;;  %3176 = vmatmul.bf16.gmra.mxu3 %v5574_v18 }
 0x304   : > { %v3125_v26 = vpop.f32.mrf.mxu2 }
 0x305   : > { %v3214_v58 = vadd.f32 %v3125_v26, %v5568_v40 }
 0x306   : > { %v2837_v54 = vpop.f32.mrf.mxu3 }
 0x307   : > { %v3252_v46 = vadd.f32 %v5715_v21, %v3214_v58  ;;  %v5730_v14 = vadd.f32 %v2837_v54, %v5584_v15 }
 0x309   : > { %v3284_v39 = vmax.f32 %v3252_v46, 0.0 }
 0x30b   : > { %3316 = vst [vmem:[%s5723_s22 + $0x10] sm:$0xff] %v3284_v39 }
 0x30c   : > { %v3128_v44 = vpop.f32.mrf.mxu2 }
 0x30d   : > { %v3216_v3 = vadd.f32 %v3128_v44, %v5579_v12 }
 0x30e   : > { %v2839_v11 = vpop.f32.mrf.mxu3 }
 0x30f   : > { %v3254_v28 = vadd.f32 %v5715_v21, %v3216_v3  ;;  %v5736_v23 = vadd.f32 %v2839_v11, %v5595_v7 }
 0x311   : > { %v3286_v18 = vmax.f32 %v3254_v28, 0.0 }
 0x313   : > { %3318 = vst [vmem:[%s5723_s22 + $0x20] sm:$0xff] %v3286_v18  ;;  %3181 = vmatmul.bf16.gmra.mxu3 %v5593_v17 }
 0x314   : > { %v3130_v40 = vpop.f32.mrf.mxu2 }
 0x315   : > { %v3218_v15 = vadd.f32 %v3130_v40, %v5587_v29 }
 0x316   : > { %v2842_v22 = vpop.f32.mrf.mxu3 }
 0x317   : > { %v3256_v41 = vadd.f32 %v5715_v21, %v3218_v15  ;;  %v5743_v25 = vadd.f32 %v2842_v22, %v5603_v8 }
 0x319   : > { %v3288_v12 = vmax.f32 %v3256_v41, 0.0 }
 0x31b   : > { %3320 = vst [vmem:[%s5723_s22 + $0x30] sm:$0xff] %v3288_v12 }
 0x31c   : > { %v3133_v52 = vpop.f32.mrf.mxu2 }
 0x31d   : > { %v3220_v7 = vadd.f32 %v3133_v52, %v5598_v42 }
 0x31e   : > { %v2844_v13 = vpop.f32.mrf.mxu3 }
 0x31f   : > { %v3258_v20 = vadd.f32 %v5715_v21, %v3220_v7  ;;  %v5749_v53 = vadd.f32 %v2844_v13, %v5614_v32 }
 0x321   : > { %v3290_v17 = vmax.f32 %v3258_v20, 0.0 }
 0x323   : > { %3322 = vst [vmem:[%s5723_s22 + $0x40] sm:$0xff] %v3290_v17  ;;  %3186 = vmatmul.bf16.gmra.mxu3 %v5612_v55 }
 0x324   : > { %v3135_v29 = vpop.f32.mrf.mxu2 }
 0x325   : > { %v3222_v8 = vadd.f32 %v3135_v29, %v5606_v37 }
 0x326   : > { %v2847_v57 = vpop.f32.mrf.mxu3 }
 0x327   : > { %v3260_v31 = vadd.f32 %v5715_v21, %v3222_v8  ;;  %v5756_v47 = vadd.f32 %v2847_v57, %v5622_v27 }
 0x329   : > { %v3292_v42 = vmax.f32 %v3260_v31, 0.0 }
 0x32b   : > { %3324 = vst [vmem:[%s5723_s22 + $0x50] sm:$0xff] %v3292_v42 }
 0x32c   : > { %v3138_v59 = vpop.f32.mrf.mxu2 }
 0x32d   : > { %v3224_v32 = vadd.f32 %v3138_v59, %v5617_v4 }
 0x32e   : > { %v2849_v35 = vpop.f32.mrf.mxu3 }
 0x32f   : > { %v3262_v2 = vadd.f32 %v5715_v21, %v3224_v32  ;;  %v5762_v26 = vadd.f32 %v2849_v35, %v5633_v61 }
 0x331   : > { %v3294_v55 = vmax.f32 %v3262_v2, 0.0 }
 0x333   : > { %3326 = vst [vmem:[%s5723_s22 + $0x60] sm:$0xff] %v3294_v55  ;;  %3191 = vmatmul.bf16.gmra.mxu3 %v5631_v56 }
 0x334   : > { %v3140_v37 = vpop.f32.mrf.mxu2 }
 0x335   : > { %v3226_v27 = vadd.f32 %v3140_v37, %v5625_v43 }
 0x336   : > { %v2852_v46 = vpop.f32.mrf.mxu3 }
 0x337   : > { %v3264_v58 = vadd.f32 %v5715_v21, %v3226_v27  ;;  %v5769_v54 = vadd.f32 %v2852_v46, %v5641_v6 }
 0x339   : > { %v3296_v4 = vmax.f32 %v3264_v58, 0.0 }
 0x33b   : > { %3328 = vst [vmem:[%s5723_s22 + $0x70] sm:$0xff] %v3296_v4 }
 0x33c   : > { %v3143_v39 = vpop.f32.mrf.mxu2 }
 0x33d   : > { %v3228_v61 = vadd.f32 %v3143_v39, %v5636_v33 }
 0x33e   : > { %v2854_v3 = vpop.f32.mrf.mxu3 }
 0x33f   : > { %v3266_v44 = vadd.f32 %v5715_v21, %v3228_v61  ;;  %v5775_v28 = vadd.f32 %v2854_v3, %v5652_v38 }
 0x341   : > { %v3298_v56 = vmax.f32 %v3266_v44, 0.0 }
 0x343   : > { %3330 = vst [vmem:[%s5723_s22 + $0x80] sm:$0xff] %v3298_v56  ;;  %3196 = vmatmul.bf16.gmra.mxu3 %v5650_v45 }
 0x344   : > { %v3145_v43 = vpop.f32.mrf.mxu2 }
 0x345   : > { %v3230_v6 = vadd.f32 %v3145_v43, %v5644_v1  ;;  %v2881_v1 = vpop.f32.mrf.mxu0 }
 0x346   : > { %v2857_v18 = vpop.f32.mrf.mxu3  ;;  %v2882_v39 = vadd.f32 %v2881_v1, %v5707_v48 }
 0x347   : > { %v3268_v11 = vadd.f32 %v5715_v21, %v3230_v6  ;;  %v5782_v40 = vadd.f32 %v2857_v18, %v5660_v36  ;;  %v2930_v36 = vpop.f32.mrf.mxu1 }
 0x348   : > { %v2931_v3 = vadd.f32 %v2930_v36, %v2882_v39 }
 0x349   : > { %v3300_v33 = vmax.f32 %v3268_v11, 0.0 }
 0x34b   : > { %3332 = vst [vmem:[%s5723_s22 + $0x90] sm:$0xff] %v3300_v33 }
 0x34c   : > { %v3148_v15 = vpop.f32.mrf.mxu2 }
 0x34d   : > { %v3232_v38 = vadd.f32 %v3148_v15, %v5655_v60  ;;  %v2883_v29 = vpop.f32.mrf.mxu0 }
 0x34e   : > { %v2859_v22 = vpop.f32.mrf.mxu3  ;;  %v2884_v11 = vadd.f32 %v2883_v29, %v5721_v34 }
 0x34f   : > { %v3270_v41 = vadd.f32 %v5715_v21, %v3232_v38  ;;  %v5788_v12 = vadd.f32 %v2859_v22, %v5671_v24  ;;  %v2932_v31 = vpop.f32.mrf.mxu1 }
 0x351   : > { %v3302_v45 = vmax.f32 %v3270_v41, 0.0 }
 0x353   : > { %3334 = vst [vmem:[%s5723_s22 + $0xa0] sm:$0xff] %v3302_v45  ;;  %3201 = vmatmul.bf16.gmra.mxu3 %v5669_v10 }
 0x354   : > { %v3150_v52 = vpop.f32.mrf.mxu2 }
 0x355   : > { %v3234_v7 = vadd.f32 %v3150_v52, %v5663_v50  ;;  %v2886_v32 = vpop.f32.mrf.mxu0 }
 0x356   : > { %v2862_v13 = vpop.f32.mrf.mxu3  ;;  %v2887_v41 = vadd.f32 %v2886_v32, %v5730_v14 }
 0x357   : > { %v3272_v20 = vadd.f32 %v5715_v21, %v3234_v7  ;;  %v5795_v60 = vadd.f32 %v2862_v13, %v5679_v49  ;;  %v2935_v55 = vpop.f32.mrf.mxu1 }
 0x358   : > { %v2936_v1 = vadd.f32 %v2935_v55, %v2887_v41 }
 0x359   : > { %v3304_v17 = vmax.f32 %v3272_v20, 0.0 }
 0x35b   : > { %3336 = vst [vmem:[%s5723_s22 + $0xb0] sm:$0xff] %v3304_v17 }
 0x35c   : > { %v3153_v24 = vpop.f32.mrf.mxu2 }
 0x35d   : > { %v3236_v8 = vadd.f32 %v3153_v24, %v5674_v63 }
 0x35e   : > { %v2864_v57 = vpop.f32.mrf.mxu3 }
 0x35f   : > { %v3274_v10 = vadd.f32 %v5715_v21, %v3236_v8  ;;  %v5801_v42 = vadd.f32 %v2864_v57, %v5689_v51  ;;  %v2937_v61 = vpop.f32.mrf.mxu1 }
 0x361   : > { %v3306_v50 = vmax.f32 %v3274_v10, 0.0 }
 0x363   : > { %3338 = vst [vmem:[%s5723_s22 + $0xc0] sm:$0xff] %v3306_v50  ;;  %3206 = vmatmul.bf16.gmra.mxu3 %v5687_v16 }
 0x364   : > { %v3155_v59 = vpop.f32.mrf.mxu2 }
 0x365   : > { %v3238_v49 = vadd.f32 %v3155_v59, %v5682_v9  ;;  %v2888_v9 = vpop.f32.mrf.mxu0 }
 0x366   : > { %v2867_v63 = vpop.f32.mrf.mxu3  ;;  %v2889_v7 = vadd.f32 %v2888_v9, %v5736_v23 }
 0x367   : > { %v3276_v2 = vadd.f32 %v5715_v21, %v3238_v49  ;;  %v5808_v35 = vadd.f32 %v2867_v63, %v5697_v5  ;;  %v2940_v15 = vpop.f32.mrf.mxu1 }
 0x368   : > { %v2938_v17 = vadd.f32 %v2937_v61, %v2889_v7 }
 0x369   : > { %v3308_v37 = vmax.f32 %v3276_v2, 0.0 }
 0x36b   : > { %3340 = vst [vmem:[%s5723_s22 + $0xd0] sm:$0xff] %v3308_v37 }
 0x36c   : > { %v3158_v51 = vpop.f32.mrf.mxu2 }
 0x36d   : > { %v3240_v27 = vadd.f32 %v3158_v51, %v5692_v62  ;;  %v5820_v62 = vperm.slane %v5712_v30, 1  ;;  %v2891_v18 = vpop.f32.mrf.mxu0 }
 0x36e   : > { %v2869_v46 = vpop.f32.mrf.mxu3 }
 0x36f   : > { %v3278_v58 = vadd.f32 %v5715_v21, %v3240_v27  ;;  %v5814_v16 = vadd.f32 %v2869_v46, %v5704_v19  ;;  %v2942_v34 = vpop.f32.mrf.mxu1 }
 0x371   : > { %v3310_v4 = vmax.f32 %v3278_v58, 0.0 }
 0x373   : > { %3342 = vst [vmem:[%s5723_s22 + $0xe0] sm:$0xff] %v3310_v4 }
 0x374   : > { %v3160_v5 = vpop.f32.mrf.mxu2 }
 0x375   : > { %v3242_v44 = vadd.f32 %v3160_v5, %v5700_v0  ;;  %v2933_v0 = vadd.f32 %v2932_v31, %v2884_v11  ;;  %v2893_v45 = vpop.f32.mrf.mxu0  ;;  %v2892_v31 = vadd.f32 %v2891_v18, %v5743_v25 }
 0x376   : > { %v3172_v43 = vpop.f32.mrf.mxu3  ;;  %v2894_v32 = vadd.f32 %v2893_v45, %v5749_v53 }
 0x377   : > { %v3280_v56 = vadd.f32 %v5715_v21, %v3242_v44  ;;  %v3213_v19 = vadd.f32 %v3172_v43, %v2931_v3  ;;  %v2945_v8 = vpop.f32.mrf.mxu1  ;;  %v2941_v50 = vadd.f32 %v2940_v15, %v2892_v31 }
 0x378   : > { %v2943_v37 = vadd.f32 %v2942_v34, %v2894_v32 }
 0x379   : > { %v3312_v6 = vmax.f32 %v3280_v56, 0.0  ;;  %v3251_v48 = vadd.f32 %v5820_v62, %v3213_v19 }
 0x37b   : > { %3344 = vst [vmem:[%s5723_s22 + $0xf0] sm:$0xff] %v3312_v6  ;;  %v3283_v33 = vmax.f32 %v3251_v48, 0.0 }
 0x37d   : > { %3315 = vst [vmem:[%s5723_s22 + $0x8] sm:$0xff] %v3283_v33  ;;  %v2896_v24 = vpop.f32.mrf.mxu0 }
 0x37e   : > { %v3174_v38 = vpop.f32.mrf.mxu3  ;;  %v2897_v27 = vadd.f32 %v2896_v24, %v5756_v47 }
 0x37f   : > { %v3215_v30 = vadd.f32 %v3174_v38, %v2933_v0  ;;  %v2947_v63 = vpop.f32.mrf.mxu1 }
 0x380   : > { %v2946_v39 = vadd.f32 %v2945_v8, %v2897_v27 }
 0x381   : > { %v3253_v21 = vadd.f32 %v5820_v62, %v3215_v30 }
 0x383   : > { %v3285_v22 = vmax.f32 %v3253_v21, 0.0 }
 0x385   : > { %3317 = vst [vmem:[%s5723_s22 + $0x18] sm:$0xff] %v3285_v22  ;;  %v2898_v49 = vpop.f32.mrf.mxu0 }
 0x386   : > { %v3177_v52 = vpop.f32.mrf.mxu3  ;;  %v2899_v5 = vadd.f32 %v2898_v49, %v5762_v26 }
 0x387   : > { %v3217_v36 = vadd.f32 %v3177_v52, %v2936_v1  ;;  %v2950_v4 = vpop.f32.mrf.mxu1 }
 0x388   : > { %v2948_v43 = vadd.f32 %v2947_v63, %v2899_v5 }
 0x389   : > { %v3255_v20 = vadd.f32 %v5820_v62, %v3217_v36 }
 0x38b   : > { %v3287_v13 = vmax.f32 %v3255_v20, 0.0 }
 0x38d   : > { %3319 = vst [vmem:[%s5723_s22 + $0x28] sm:$0xff] %v3287_v13  ;;  %v2901_v46 = vpop.f32.mrf.mxu0 }
 0x38e   : > { %v3179_v14 = vpop.f32.mrf.mxu3  ;;  %v2902_v11 = vadd.f32 %v2901_v46, %v5769_v54 }
 0x38f   : > { %v3219_v29 = vadd.f32 %v3179_v14, %v2938_v17  ;;  %v2952_v47 = vpop.f32.mrf.mxu1 }
 0x390   : > { %v2951_v33 = vadd.f32 %v2950_v4, %v2902_v11 }
 0x391   : > { %v3257_v10 = vadd.f32 %v5820_v62, %v3219_v29 }
 0x393   : > { %v3289_v57 = vmax.f32 %v3257_v10, 0.0 }
 0x395   : > { %3321 = vst [vmem:[%s5723_s22 + $0x38] sm:$0xff] %v3289_v57  ;;  %v2903_v56 = vpop.f32.mrf.mxu0 }
 0x396   : > { %v3182_v59 = vpop.f32.mrf.mxu3  ;;  %v2904_v30 = vadd.f32 %v2903_v56, %v5775_v28 }
 0x397   : > { %v3221_v23 = vadd.f32 %v3182_v59, %v2941_v50  ;;  %v2955_v38 = vpop.f32.mrf.mxu1 }
 0x398   : > { %v2953_v22 = vadd.f32 %v2952_v47, %v2904_v30 }
 0x399   : > { %v3259_v2 = vadd.f32 %v5820_v62, %v3221_v23 }
 0x39b   : > { %v3291_v55 = vmax.f32 %v3259_v2, 0.0 }
 0x39d   : > { %3323 = vst [vmem:[%s5723_s22 + $0x48] sm:$0xff] %v3291_v55  ;;  %v2906_v15 = vpop.f32.mrf.mxu0 }
 0x39e   : > { %v3184_v51 = vpop.f32.mrf.mxu3  ;;  %v2907_v34 = vadd.f32 %v2906_v15, %v5782_v40 }
 0x39f   : > { %v3223_v25 = vadd.f32 %v3184_v51, %v2943_v37  ;;  %v2957_v36 = vpop.f32.mrf.mxu1 }
 0x3a0   : > { %v2956_v20 = vadd.f32 %v2955_v38, %v2907_v34 }
 0x3a1   : > { %v3261_v58 = vadd.f32 %v5820_v62, %v3223_v25 }
 0x3a3   : > { %v3293_v9 = vmax.f32 %v3261_v58, 0.0 }
 0x3a5   : > { %3325 = vst [vmem:[%s5723_s22 + $0x58] sm:$0xff] %v3293_v9  ;;  %v2908_v1 = vpop.f32.mrf.mxu0 }
 0x3a6   : > { %v3187_v53 = vpop.f32.mrf.mxu3  ;;  %v2909_v17 = vadd.f32 %v2908_v1, %v5788_v12 }
 0x3a7   : > { %v3225_v61 = vadd.f32 %v3187_v53, %v2946_v39  ;;  %v2960_v8 = vpop.f32.mrf.mxu1 }
 0x3a8   : > { %v2958_v31 = vadd.f32 %v2957_v36, %v2909_v17 }
 0x3a9   : > { %v3263_v44 = vadd.f32 %v5820_v62, %v3225_v61 }
 0x3ab   : > { %v3295_v3 = vmax.f32 %v3263_v44, 0.0 }
 0x3ad   : > { %3327 = vst [vmem:[%s5723_s22 + $0x68] sm:$0xff] %v3295_v3  ;;  %v2911_v14 = vpop.f32.mrf.mxu0 }
 0x3ae   : > { %v3189_v19 = vpop.f32.mrf.mxu3  ;;  %v2912_v57 = vadd.f32 %v2911_v14, %v5795_v60 }
 0x3af   : > { %v3227_v6 = vadd.f32 %v3189_v19, %v2948_v43  ;;  %v2962_v12 = vpop.f32.mrf.mxu1 }
 0x3b0   : > { %v2961_v49 = vadd.f32 %v2960_v8, %v2912_v57 }
 0x3b1   : > { %v3265_v48 = vadd.f32 %v5820_v62, %v3227_v6 }
 0x3b3   : > { %v3297_v18 = vmax.f32 %v3265_v48, 0.0 }
 0x3b5   : > { %3329 = vst [vmem:[%s5723_s22 + $0x78] sm:$0xff] %v3297_v18  ;;  %v2913_v23 = vpop.f32.mrf.mxu0 }
 0x3b6   : > { %v3192_v26 = vpop.f32.mrf.mxu3  ;;  %v2914_v63 = vadd.f32 %v2913_v23, %v5801_v42 }
 0x3b7   : > { %v3229_v0 = vadd.f32 %v3192_v26, %v2951_v33  ;;  %v2965_v58 = vpop.f32.mrf.mxu1 }
 0x3b8   : > { %v2963_v51 = vadd.f32 %v2962_v12, %v2914_v63 }
 0x3b9   : > { %v3267_v41 = vadd.f32 %v5820_v62, %v3229_v0 }
 0x3bb   : > { %v3299_v21 = vmax.f32 %v3267_v41, 0.0 }
 0x3bd   : > { %3331 = vst [vmem:[%s5723_s22 + $0x88] sm:$0xff] %v3299_v21  ;;  %v2916_v25 = vpop.f32.mrf.mxu0 }
 0x3be   : > { %v3194_v45 = vpop.f32.mrf.mxu3  ;;  %v2917_v46 = vadd.f32 %v2916_v25, %v5808_v35 }
 0x3bf   : > { %v3231_v54 = vadd.f32 %v3194_v45, %v2953_v22  ;;  %v2967_v3 = vpop.f32.mrf.mxu1 }
 0x3c0   : > { %v2966_v39 = vadd.f32 %v2965_v58, %v2917_v46 }
 0x3c1   : > { %v3269_v52 = vadd.f32 %v5820_v62, %v3231_v54 }
 0x3c3   : > { %v3301_v7 = vmax.f32 %v3269_v52, 0.0 }
 0x3c5   : > { %3333 = vst [vmem:[%s5723_s22 + $0x98] sm:$0xff] %v3301_v7  ;;  %v2918_v61 = vpop.f32.mrf.mxu0 }
 0x3c6   : > { %v3197_v13 = vpop.f32.mrf.mxu3  ;;  %v2919_v5 = vadd.f32 %v2918_v61, %v5814_v16 }
 0x3c7   : > { %v3233_v28 = vadd.f32 %v3197_v13, %v2956_v20 }
 0x3c8   : > { %v2968_v35 = vadd.f32 %v2967_v3, %v2919_v5 }
 0x3c9   : > { %v3271_v24 = vadd.f32 %v5820_v62, %v3233_v28 }
 0x3cb   : > { %v3303_v29 = vmax.f32 %v3271_v24, 0.0 }
 0x3cd   : > { %3335 = vst [vmem:[%s5723_s22 + $0xa8] sm:$0xff] %v3303_v29 }
 0x3ce   : > { %v3199_v40 = vpop.f32.mrf.mxu3 }
 0x3cf   : > { %v3235_v10 = vadd.f32 %v3199_v40, %v2958_v31 }
 0x3d1   : > { %v3273_v50 = vadd.f32 %v5820_v62, %v3235_v10 }
 0x3d3   : > { %v3305_v59 = vmax.f32 %v3273_v50, 0.0 }
 0x3d5   : > { %3337 = vst [vmem:[%s5723_s22 + $0xb8] sm:$0xff] %v3305_v59 }
 0x3d6   : > { %v3202_v32 = vpop.f32.mrf.mxu3 }
 0x3d7   : > { %v3237_v2 = vadd.f32 %v3202_v32, %v2961_v49 }
 0x3d9   : > { %v3275_v55 = vadd.f32 %v5820_v62, %v3237_v2 }
 0x3db   : > { %v3307_v37 = vmax.f32 %v3275_v55, 0.0 }
 0x3dd   : > { %3339 = vst [vmem:[%s5723_s22 + $0xc8] sm:$0xff] %v3307_v37 }
 0x3de   : > { %v3204_v60 = vpop.f32.mrf.mxu3 }
 0x3df   : > { %v3239_v27 = vadd.f32 %v3204_v60, %v2963_v51 }
 0x3e1   : > { %v3277_v9 = vadd.f32 %v5820_v62, %v3239_v27 }
 0x3e3   : > { %v3309_v4 = vmax.f32 %v3277_v9, 0.0 }
 0x3e5   : > { %3341 = vst [vmem:[%s5723_s22 + $0xd8] sm:$0xff] %v3309_v4 }
 0x3e6   : > { %v3207_v42 = vpop.f32.mrf.mxu3 }
 0x3e7   : > { %v3241_v53 = vadd.f32 %v3207_v42, %v2966_v39 }
 0x3e9   : > { %v3279_v44 = vadd.f32 %v5820_v62, %v3241_v53 }
 0x3eb   : > { %v3311_v56 = vmax.f32 %v3279_v44, 0.0 }
 0x3ed   : > { %3343 = vst [vmem:[%s5723_s22 + $0xe8] sm:$0xff] %v3311_v56 }
 0x3ee   : > { %v3209_v43 = vpop.f32.mrf.mxu3 }
 0x3ef   : > { %v3243_v47 = vadd.f32 %v3209_v43, %v2968_v35 }
 0x3f1   : > { %v3281_v16 = vadd.f32 %v5820_v62, %v3243_v47 }
 0x3f3   : > { %v3313_v19 = vmax.f32 %v3281_v16, 0.0 }
 0x3f5   : > { %3345 = vst [vmem:[%s5723_s22 + $0xf8] sm:$0xff] %v3313_v19 }
 0x3f6   : > { %4613 = shalt.err (!%p4610_p10)
}
 0x3f7   : > { %s4671_s19 = smov 256   ;;  %s4672_s22 = smov 16  }
 0x3f8   : > { %4360 = dma.vmem_to_hbm [thread:$0]  (%p4797_p3), %s3361_s14, 4096, %s3363_s15, %s3347_s28, %s4671_s19, %s4671_s19, %s4672_s22  }
 0x3f9 PF: > { %s3377_s20 = sand.u32 1, %s4648_s24   ;;  %p5980_p12 = scmp.ge.s32.totalorder %s4660_s27, 2 }
 0x3fa   : > { %s3378_s13 = scalar_lea.sflag [#allocation6], %s3377_s20 }
 0x3fb   : > { %p4380_p13 = pnand %p5980_p12, %p4748_p6 }
 0x3fd   : > { %p4381_p0 = pneg %p4380_p13 }
 0x3ff   : > { %4643 = dma.done.wait (%p4381_p0), %s3378_s13, 4096  }
 0x400   : > { %4645 = vsyncadd (%p4381_p0), %s3378_s13, 4294963200  ;;  %p22_p5 = scmp.ge.s32.totalorder %s4787_s18, 4   ;;  %s5981_s24 = smov %s4652_s25 }
 0x401   : > { %s5982_s25 = smov %s4656_s26  ;;  %s5983_s26 = smov %s4803_s9 }
 0x402   : > { %s5984_s27 = smov %s4787_s18  ;;  %24 = sbr.rel (!%p22_p5) target bundleno = 9 (0x9), region = 124 }
 0x407   :  { %3384 = vsyncpa [#allocation5], 1 }
 0x408   :  { %3386 = vsyncpa [#allocation5 + $0x1], 1 }
 0x409   :  { %3387 = vsyncpa [#allocation8], 1 }
 0x40a   :  { %3388 = vsyncpa [#allocation11], 1 }
 0x40b   :  { %3389 = vsyncpa [#allocation6], 1 }
 0x40c   :  { %3391 = vsyncpa [#allocation6 + $0x1], 1 }

</bundles_post_ra>
